<compile_context>
chip_gen: v6e
topology: v6e:2x2x1
jax: 0.10.0
libtpu: 0.0.40
codegen_flags: <defaults>
</compile_context>

<pallas_src>
import numpy as np

import jax
import jax.numpy as jnp
from jax.experimental import pallas as pl
from jax.experimental.pallas import tpu as pltpu


NUM_CLASSES = 10
LANES = 128            # all GEMM outputs padded to a full lane width
C1_PAD = 128           # conv1 out-channels padded 10 -> 128 (lane-dense)
K1_PAD = 32            # conv1 GEMM K: 28 image columns padded to 32
N1 = 12 * C1_PAD       # 1536: conv1 GEMM N = (wo parity, wo half, channel)


# ---------------------------------------------------------------------------
# Fused Pallas kernel: conv1 + conv2 + fc head, one batch block per grid step
# ---------------------------------------------------------------------------

def _fused_cnn_kernel(x_ref, w1_ref, b1_ref, w2_ref, b2_ref,
                      wf1_ref, bf1_ref, wf2_ref, bf2_ref, o_ref):
    TB = x_ref.shape[0]
    x = x_ref[...]                                     # (TB, 4, 7, 32) bf16
    b1 = b1_ref[...]                                   # (1, 1536) f32

    # ---- conv1 + ReLU: stride-2 5x5 conv as 2(parity) x 5(kh) matmuls ------
    # h1[q][b, m, pc, c2, co] == conv1(x)[b, ho=2m+q, wo=2*c2+pc, co]
    # (co >= 10 identically zero; folded into the conv2 weight).
    h1 = []
    for q in range(2):                                 # output-row parity
        acc = jnp.zeros((TB * 6, N1), jnp.float32)
        for kh in range(5):
            row = 2 * q + kh                           # input-row offset (0..6)
            xs = x[:, row % 4, row // 4: row // 4 + 6, :]        # (TB, 6, 32)
            acc = acc + jnp.dot(xs.reshape(TB * 6, K1_PAD), w1_ref[kh],
                                preferred_element_type=jnp.float32)
        hq = jnp.maximum(acc + b1, 0.0)                # f32 epilogue
        h1.append(hq.astype(jnp.bfloat16).reshape(TB, 6, 2, 6, C1_PAD))

    # ---- conv2 + ReLU: 25 per-(kh,kw) channel-contraction matmuls ----------
    acc2 = jnp.zeros((TB * 16, LANES), jnp.float32)
    for kh in range(5):
        hsel = h1[kh % 2]
        for kw in range(5):
            patch = hsel[:, kh // 2: kh // 2 + 4, kw % 2,
                         kw // 2: kw // 2 + 4, :]      # (TB, 4, 4, 128)
            acc2 = acc2 + jnp.dot(patch.reshape(TB * 16, C1_PAD),
                                  w2_ref[kh * 5 + kw],
                                  preferred_element_type=jnp.float32)
    h2 = jnp.maximum(acc2 + b2_ref[...], 0.0)          # (TB*16, 128) f32
    # Dropout2d / F.dropout: identity in eval mode.

    # ---- fc1 + ReLU + fc2 + masked, lane-dense log_softmax -----------------
    # PyTorch's NCHW .view(-1, 320) permutation is folded into wf1.
    h2f = h2.astype(jnp.bfloat16).reshape(TB, 16 * LANES)         # (TB, 2048)
    h3 = jnp.dot(h2f, wf1_ref[...], preferred_element_type=jnp.float32)
    h3 = jnp.maximum(h3 + bf1_ref[...], 0.0)                      # f32 epilogue
    logits = jnp.dot(h3.astype(jnp.bfloat16), wf2_ref[...],
                     preferred_element_type=jnp.float32) + bf2_ref[...]
    col = jax.lax.broadcasted_iota(jnp.int32, logits.shape, 1)
    logits = jnp.where(col < NUM_CLASSES, logits, jnp.float32(-1e30))
    m = jnp.max(logits, axis=1, keepdims=True)
    lse = m + jnp.log(jnp.sum(jnp.exp(logits - m), axis=1, keepdims=True))
    o_ref[...] = (logits - lse)[None]                  # (1, TB, 128) store


# ---------------------------------------------------------------------------
# One-time weight preparation (outside the hot path)
# ---------------------------------------------------------------------------

def prepare_params(params):
    """Fold conv/fc layouts, pad to lane-dense shapes, cast MXU operands to bf16."""
    w1 = np.asarray(params["conv1_w"], np.float32)      # (10, 1, 5, 5)
    b1 = np.asarray(params["conv1_b"], np.float32)
    w2 = np.asarray(params["conv2_w"], np.float32)      # (20, 10, 5, 5)
    b2 = np.asarray(params["conv2_b"], np.float32)
    f1w = np.asarray(params["fc1_w"], np.float32)       # (50, 320)
    f1b = np.asarray(params["fc1_b"], np.float32)
    f2w = np.asarray(params["fc2_w"], np.float32)       # (10, 50)
    f2b = np.asarray(params["fc2_b"], np.float32)

    # conv1: per-kh structured GEMM weight; absorbs kw taps + stride-2 columns.
    # Column order of N = (wo parity pc, wo half c2, out channel co).
    w1k = np.zeros((5, K1_PAD, 2, 6, C1_PAD), np.float32)
    for kh in range(5):
        for wo in range(12):
            pc, c2 = wo % 2, wo // 2
            for kw in range(5):
                w1k[kh, 2 * wo + kw, pc, c2, :10] = w1[:, 0, kh, kw]
    w1k = w1k.reshape(5, K1_PAD, N1)

    b1r = np.zeros((1, 2, 6, C1_PAD), np.float32)
    b1r[..., :10] = b1
    b1r = b1r.reshape(1, N1)

    # conv2: per-(kh,kw) channel-contraction weights, lane-dense in and out.
    w2k = np.zeros((25, C1_PAD, LANES), np.float32)
    for kh in range(5):
        for kw in range(5):
            w2k[kh * 5 + kw, :10, :20] = w2[:, :, kh, kw].T
    b2r = np.zeros((1, LANES), np.float32)
    b2r[0, :20] = b2

    # fc1: fold PyTorch's NCHW .view(-1, 320) permutation and the 128-channel
    # padding of the conv2 output into the weight:
    #   h2_flat[b, s*128 + c] = conv2_out[b, s, c]   (s = ho2*4 + wo2)
    #   wf1[s*128 + c, o]     = fc1_w[o, c*16 + s]
    wf1 = np.zeros((16, LANES, LANES), np.float32)
    wf1[:, :20, :50] = np.transpose(f1w.reshape(50, 20, 16), (2, 1, 0))
    wf1 = wf1.reshape(16 * LANES, LANES)
    bf1 = np.zeros((1, LANES), np.float32)
    bf1[0, :50] = f1b

    wf2 = np.zeros((LANES, LANES), np.float32)
    wf2[:50, :10] = f2w.T
    bf2 = np.zeros((1, LANES), np.float32)
    bf2[0, :10] = f2b

    bf16 = jnp.bfloat16
    return {
        "w1k": jnp.asarray(w1k, bf16), "b1r": jnp.asarray(b1r),
        "w2k": jnp.asarray(w2k, bf16), "b2r": jnp.asarray(b2r),
        "wf1": jnp.asarray(wf1, bf16), "bf1": jnp.asarray(bf1),
        "wf2": jnp.asarray(wf2, bf16), "bf2": jnp.asarray(bf2),
    }


# ---------------------------------------------------------------------------
# pallas_call wrapper
# ---------------------------------------------------------------------------

def _pick_tb(batch, cap=8):
    # Largest divisor of `batch` that still leaves >= 2 grid steps (when
    # batch >= 2) so both v7x TensorCores get work; never a partial tile.
    target = min(cap, max(1, batch // 2))
    for t in range(target, 0, -1):
        if batch % t == 0:
            return t
    return 1


def cnn_forward(prep, x_nchw):
    B = x_nchw.shape[0]
    TB = _pick_tb(B)
    G = B // TB

    # Row-mod-4 split of the 28x28 image (+ column pad 28 -> 32) so every
    # stride-2 row access inside the kernel is a contiguous static slice.
    x = x_nchw.reshape(B, 28, 28)
    x = jnp.pad(x, ((0, 0), (0, 0), (0, K1_PAD - 28)))
    x = x.reshape(B, 7, 4, K1_PAD).transpose(0, 2, 1, 3)     # (B, 4, 7, 32)
    x = x.astype(jnp.bfloat16)

    w1k, b1r = prep["w1k"], prep["b1r"]
    w2k, b2r = prep["w2k"], prep["b2r"]
    wf1, bf1 = prep["wf1"], prep["bf1"]
    wf2, bf2 = prep["wf2"], prep["bf2"]

    flops = B * (10 * 6 * K1_PAD * N1 * 2            # conv1 (2 parities x 5 kh)
                 + 25 * 16 * C1_PAD * LANES * 2      # conv2
                 + 16 * LANES * LANES * 2            # fc1
                 + LANES * LANES * 2)                # fc2
    bytes_accessed = int(
        x.size * 2 + B * LANES * 4
        + sum(int(a.size) * a.dtype.itemsize
              for a in (w1k, b1r, w2k, b2r, wf1, bf1, wf2, bf2)))

    out = pl.pallas_call(
        _fused_cnn_kernel,
        out_shape=jax.ShapeDtypeStruct((G, TB, LANES), jnp.float32),
        grid=(G,),
        in_specs=[
            pl.BlockSpec((TB, 4, 7, K1_PAD), lambda i: (i, 0, 0, 0)),
            pl.BlockSpec((5, K1_PAD, N1), lambda i: (0, 0, 0)),
            pl.BlockSpec((1, N1), lambda i: (0, 0)),
            pl.BlockSpec((25, C1_PAD, LANES), lambda i: (0, 0, 0)),
            pl.BlockSpec((1, LANES), lambda i: (0, 0)),
            pl.BlockSpec((16 * LANES, LANES), lambda i: (0, 0)),
            pl.BlockSpec((1, LANES), lambda i: (0, 0)),
            pl.BlockSpec((LANES, LANES), lambda i: (0, 0)),
            pl.BlockSpec((1, LANES), lambda i: (0, 0)),
        ],
        out_specs=pl.BlockSpec((1, TB, LANES), lambda i: (i, 0, 0)),
        compiler_params=pltpu.CompilerParams(
            dimension_semantics=("parallel",),
            vmem_limit_bytes=32 * 1024 * 1024,
        ),
        cost_estimate=pl.CostEstimate(
            flops=flops,
            transcendentals=B * (LANES + 1),
            bytes_accessed=bytes_accessed),
    )(x, w1k, b1r, w2k, b2r, wf1, bf1, wf2, bf2)

    return out.reshape(B, LANES)[:, :NUM_CLASSES]            # (B, 10) log-probs


# ---------------------------------------------------------------------------
# Parameters (PyTorch layouts) and plain-JAX f32 reference
# ---------------------------------------------------------------------------

def init_params(key):
    ks = jax.random.split(key, 8)
    scale = 0.1
    return {
        "conv1_w": scale * jax.random.normal(ks[0], (10, 1, 5, 5), jnp.float32),
        "conv1_b": scale * jax.random.normal(ks[1], (10,), jnp.float32),
        "conv2_w": scale * jax.random.normal(ks[2], (20, 10, 5, 5), jnp.float32),
        "conv2_b": scale * jax.random.normal(ks[3], (20,), jnp.float32),
        "fc1_w": scale * jax.random.normal(ks[4], (50, 320), jnp.float32),
        "fc1_b": scale * jax.random.normal(ks[5], (50,), jnp.float32),
        "fc2_w": scale * jax.random.normal(ks[6], (10, 50), jnp.float32),
        "fc2_b": scale * jax.random.normal(ks[7], (10,), jnp.float32),
    }


def cnn_forward_ref(params, x_nchw):
    dn = ("NCHW", "OIHW", "NCHW")
    x = jax.lax.conv_general_dilated(x_nchw, params["conv1_w"], (2, 2), "VALID",
                                     dimension_numbers=dn)
    x = jax.nn.relu(x + params["conv1_b"][None, :, None, None])
    x = jax.lax.conv_general_dilated(x, params["conv2_w"], (2, 2), "VALID",
                                     dimension_numbers=dn)
    x = jax.nn.relu(x + params["conv2_b"][None, :, None, None])
    x = x.reshape(-1, 320)
    x = jax.nn.relu(x @ params["fc1_w"].T + params["fc1_b"])
    x = x @ params["fc2_w"].T + params["fc2_b"]
    return jax.nn.log_softmax(x, axis=1)


if __name__ == "__main__":
    key = jax.random.PRNGKey(0)
    pkey, xkey = jax.random.split(key)
    params = init_params(pkey)
    prep = prepare_params(params)        # one-time weight layout prep (hoisted)

    # Input implied by the module: 1-channel 28x28 (so that view(-1, 320) holds).
    x = jax.random.normal(xkey, (2, 1, 28, 28), jnp.float32)

    fwd = jax.jit(cnn_forward)
    out = jax.block_until_ready(fwd(prep, x))

    ref = jax.block_until_ready(cnn_forward_ref(params, x))
    assert out.shape == (2, 10), out.shape
    # bf16 matmul operands with f32 accumulation -> slightly looser tolerance.
    assert jnp.allclose(out, ref, atol=5e-2, rtol=5e-2), "mismatch vs reference"

    print("KERNEL_OK")
</pallas_src>

<mosaic_0001>
module attributes {stable_mosaic.version = 11 : i64} {
  func.func @_fused_cnn_kernel(%arg0: i32, %arg1: memref<1x4x7x32xbf16, #tpu.memory_space<vmem>>, %arg2: memref<5x32x1536xbf16, #tpu.memory_space<vmem>>, %arg3: memref<1x1536xf32, #tpu.memory_space<vmem>>, %arg4: memref<25x128x128xbf16, #tpu.memory_space<vmem>>, %arg5: memref<1x128xf32, #tpu.memory_space<vmem>>, %arg6: memref<2048x128xbf16, #tpu.memory_space<vmem>>, %arg7: memref<1x128xf32, #tpu.memory_space<vmem>>, %arg8: memref<128x128xbf16, #tpu.memory_space<vmem>>, %arg9: memref<1x128xf32, #tpu.memory_space<vmem>>, %arg10: memref<1x1x128xf32, #tpu.memory_space<vmem>>) attributes {dimension_semantics = [#tpu.dimension_semantics<parallel>], iteration_bounds = array<i64: 2>, scalar_prefetch = 0 : i64, scratch_operands = 0 : i64, tpu.core_type = #tpu.core_type<tc>, window_params = [{transform_indices = @transform_0, window_bounds = array<i64: 1, 4, 7, 32>}, {pipeline_mode = #tpu.pipeline_mode<synchronous>, transform_indices = @transform_1, window_bounds = array<i64: 5, 32, 1536>}, {pipeline_mode = #tpu.pipeline_mode<synchronous>, transform_indices = @transform_2, window_bounds = array<i64: 1, 1536>}, {pipeline_mode = #tpu.pipeline_mode<synchronous>, transform_indices = @transform_3, window_bounds = array<i64: 25, 128, 128>}, {pipeline_mode = #tpu.pipeline_mode<synchronous>, transform_indices = @transform_4, window_bounds = array<i64: 1, 128>}, {pipeline_mode = #tpu.pipeline_mode<synchronous>, transform_indices = @transform_5, window_bounds = array<i64: 2048, 128>}, {pipeline_mode = #tpu.pipeline_mode<synchronous>, transform_indices = @transform_6, window_bounds = array<i64: 1, 128>}, {pipeline_mode = #tpu.pipeline_mode<synchronous>, transform_indices = @transform_7, window_bounds = array<i64: 128, 128>}, {pipeline_mode = #tpu.pipeline_mode<synchronous>, transform_indices = @transform_8, window_bounds = array<i64: 1, 128>}, {transform_indices = @transform_9, window_bounds = array<i64: 1, 1, 128>}]} {
    %c0 = arith.constant 0 : index
    %c0_0 = arith.constant 0 : index
    %c0_1 = arith.constant 0 : index
    %c0_2 = arith.constant 0 : index
    %0 = vector.load %arg1[%c0, %c0_0, %c0_1, %c0_2] : memref<1x4x7x32xbf16, #tpu.memory_space<vmem>>, vector<1x4x7x32xbf16>
    %c0_3 = arith.constant 0 : index
    %c0_4 = arith.constant 0 : index
    %1 = vector.load %arg3[%c0_3, %c0_4] : memref<1x1536xf32, #tpu.memory_space<vmem>>, vector<1x1536xf32>
    %cst = arith.constant 0.000000e+00 : f32
    %2 = vector.broadcast %cst : f32 to vector<6x1536xf32>
    %3 = vector.extract_strided_slice %0 {offsets = [0, 0, 0, 0], sizes = [1, 1, 6, 32], strides = [1, 1, 1, 1]} : vector<1x4x7x32xbf16> to vector<1x1x6x32xbf16>
    %4 = vector.shape_cast %3 : vector<1x1x6x32xbf16> to vector<1x6x32xbf16>
    %5 = vector.shape_cast %4 : vector<1x6x32xbf16> to vector<6x32xbf16>
    %c0_5 = arith.constant 0 : index
    %c0_6 = arith.constant 0 : index
    %c0_7 = arith.constant 0 : index
    %6 = vector.load %arg2[%c0_5, %c0_6, %c0_7] : memref<5x32x1536xbf16, #tpu.memory_space<vmem>>, vector<1x32x1536xbf16>
    %7 = vector.shape_cast %6 : vector<1x32x1536xbf16> to vector<32x1536xbf16>
    %cst_8 = arith.constant dense<0.000000e+00> : vector<6x1536xf32>
    %8 = tpu.matmul %5, %7, %cst_8 {dimension_numbers = #tpu.dot_dimension_numbers<[1], [0], [0], [1], [0, 0, 1, 1], [], []>} : vector<6x32xbf16>, vector<32x1536xbf16>, vector<6x1536xf32> -> vector<6x1536xf32>
    %9 = arith.addf %2, %8 : vector<6x1536xf32>
    %10 = vector.extract_strided_slice %0 {offsets = [0, 1, 0, 0], sizes = [1, 1, 6, 32], strides = [1, 1, 1, 1]} : vector<1x4x7x32xbf16> to vector<1x1x6x32xbf16>
    %11 = vector.shape_cast %10 : vector<1x1x6x32xbf16> to vector<1x6x32xbf16>
    %12 = vector.shape_cast %11 : vector<1x6x32xbf16> to vector<6x32xbf16>
    %c1 = arith.constant 1 : index
    %c0_9 = arith.constant 0 : index
    %c0_10 = arith.constant 0 : index
    %13 = vector.load %arg2[%c1, %c0_9, %c0_10] : memref<5x32x1536xbf16, #tpu.memory_space<vmem>>, vector<1x32x1536xbf16>
    %14 = vector.shape_cast %13 : vector<1x32x1536xbf16> to vector<32x1536xbf16>
    %cst_11 = arith.constant dense<0.000000e+00> : vector<6x1536xf32>
    %15 = tpu.matmul %12, %14, %cst_11 {dimension_numbers = #tpu.dot_dimension_numbers<[1], [0], [0], [1], [0, 0, 1, 1], [], []>} : vector<6x32xbf16>, vector<32x1536xbf16>, vector<6x1536xf32> -> vector<6x1536xf32>
    %16 = arith.addf %9, %15 : vector<6x1536xf32>
    %17 = vector.extract_strided_slice %0 {offsets = [0, 2, 0, 0], sizes = [1, 1, 6, 32], strides = [1, 1, 1, 1]} : vector<1x4x7x32xbf16> to vector<1x1x6x32xbf16>
    %18 = vector.shape_cast %17 : vector<1x1x6x32xbf16> to vector<1x6x32xbf16>
    %19 = vector.shape_cast %18 : vector<1x6x32xbf16> to vector<6x32xbf16>
    %c2 = arith.constant 2 : index
    %c0_12 = arith.constant 0 : index
    %c0_13 = arith.constant 0 : index
    %20 = vector.load %arg2[%c2, %c0_12, %c0_13] : memref<5x32x1536xbf16, #tpu.memory_space<vmem>>, vector<1x32x1536xbf16>
    %21 = vector.shape_cast %20 : vector<1x32x1536xbf16> to vector<32x1536xbf16>
    %cst_14 = arith.constant dense<0.000000e+00> : vector<6x1536xf32>
    %22 = tpu.matmul %19, %21, %cst_14 {dimension_numbers = #tpu.dot_dimension_numbers<[1], [0], [0], [1], [0, 0, 1, 1], [], []>} : vector<6x32xbf16>, vector<32x1536xbf16>, vector<6x1536xf32> -> vector<6x1536xf32>
    %23 = arith.addf %16, %22 : vector<6x1536xf32>
    %24 = vector.extract_strided_slice %0 {offsets = [0, 3, 0, 0], sizes = [1, 1, 6, 32], strides = [1, 1, 1, 1]} : vector<1x4x7x32xbf16> to vector<1x1x6x32xbf16>
    %25 = vector.shape_cast %24 : vector<1x1x6x32xbf16> to vector<1x6x32xbf16>
    %26 = vector.shape_cast %25 : vector<1x6x32xbf16> to vector<6x32xbf16>
    %c3 = arith.constant 3 : index
    %c0_15 = arith.constant 0 : index
    %c0_16 = arith.constant 0 : index
    %27 = vector.load %arg2[%c3, %c0_15, %c0_16] : memref<5x32x1536xbf16, #tpu.memory_space<vmem>>, vector<1x32x1536xbf16>
    %28 = vector.shape_cast %27 : vector<1x32x1536xbf16> to vector<32x1536xbf16>
    %cst_17 = arith.constant dense<0.000000e+00> : vector<6x1536xf32>
    %29 = tpu.matmul %26, %28, %cst_17 {dimension_numbers = #tpu.dot_dimension_numbers<[1], [0], [0], [1], [0, 0, 1, 1], [], []>} : vector<6x32xbf16>, vector<32x1536xbf16>, vector<6x1536xf32> -> vector<6x1536xf32>
    %30 = arith.addf %23, %29 : vector<6x1536xf32>
    %31 = vector.extract_strided_slice %0 {offsets = [0, 0, 1, 0], sizes = [1, 1, 6, 32], strides = [1, 1, 1, 1]} : vector<1x4x7x32xbf16> to vector<1x1x6x32xbf16>
    %32 = vector.shape_cast %31 : vector<1x1x6x32xbf16> to vector<1x6x32xbf16>
    %33 = vector.shape_cast %32 : vector<1x6x32xbf16> to vector<6x32xbf16>
    %c4 = arith.constant 4 : index
    %c0_18 = arith.constant 0 : index
    %c0_19 = arith.constant 0 : index
    %34 = vector.load %arg2[%c4, %c0_18, %c0_19] : memref<5x32x1536xbf16, #tpu.memory_space<vmem>>, vector<1x32x1536xbf16>
    %35 = vector.shape_cast %34 : vector<1x32x1536xbf16> to vector<32x1536xbf16>
    %cst_20 = arith.constant dense<0.000000e+00> : vector<6x1536xf32>
    %36 = tpu.matmul %33, %35, %cst_20 {dimension_numbers = #tpu.dot_dimension_numbers<[1], [0], [0], [1], [0, 0, 1, 1], [], []>} : vector<6x32xbf16>, vector<32x1536xbf16>, vector<6x1536xf32> -> vector<6x1536xf32>
    %37 = arith.addf %30, %36 : vector<6x1536xf32>
    %38 = vector.broadcast %1 : vector<1x1536xf32> to vector<6x1536xf32>
    %39 = arith.addf %37, %38 : vector<6x1536xf32>
    %cst_21 = arith.constant 0.000000e+00 : f32
    %40 = vector.broadcast %cst_21 : f32 to vector<6x1536xf32>
    %41 = arith.maximumf %39, %40 : vector<6x1536xf32>
    %42 = arith.truncf %41 : vector<6x1536xf32> to vector<6x1536xbf16>
    %43 = vector.shape_cast %42 : vector<6x1536xbf16> to vector<1x6x2x6x128xbf16>
    %cst_22 = arith.constant 0.000000e+00 : f32
    %44 = vector.broadcast %cst_22 : f32 to vector<6x1536xf32>
    %45 = vector.extract_strided_slice %0 {offsets = [0, 2, 0, 0], sizes = [1, 1, 6, 32], strides = [1, 1, 1, 1]} : vector<1x4x7x32xbf16> to vector<1x1x6x32xbf16>
    %46 = vector.shape_cast %45 : vector<1x1x6x32xbf16> to vector<1x6x32xbf16>
    %47 = vector.shape_cast %46 : vector<1x6x32xbf16> to vector<6x32xbf16>
    %c0_23 = arith.constant 0 : index
    %c0_24 = arith.constant 0 : index
    %c0_25 = arith.constant 0 : index
    %48 = vector.load %arg2[%c0_23, %c0_24, %c0_25] : memref<5x32x1536xbf16, #tpu.memory_space<vmem>>, vector<1x32x1536xbf16>
    %49 = vector.shape_cast %48 : vector<1x32x1536xbf16> to vector<32x1536xbf16>
    %cst_26 = arith.constant dense<0.000000e+00> : vector<6x1536xf32>
    %50 = tpu.matmul %47, %49, %cst_26 {dimension_numbers = #tpu.dot_dimension_numbers<[1], [0], [0], [1], [0, 0, 1, 1], [], []>} : vector<6x32xbf16>, vector<32x1536xbf16>, vector<6x1536xf32> -> vector<6x1536xf32>
    %51 = arith.addf %44, %50 : vector<6x1536xf32>
    %52 = vector.extract_strided_slice %0 {offsets = [0, 3, 0, 0], sizes = [1, 1, 6, 32], strides = [1, 1, 1, 1]} : vector<1x4x7x32xbf16> to vector<1x1x6x32xbf16>
    %53 = vector.shape_cast %52 : vector<1x1x6x32xbf16> to vector<1x6x32xbf16>
    %54 = vector.shape_cast %53 : vector<1x6x32xbf16> to vector<6x32xbf16>
    %c1_27 = arith.constant 1 : index
    %c0_28 = arith.constant 0 : index
    %c0_29 = arith.constant 0 : index
    %55 = vector.load %arg2[%c1_27, %c0_28, %c0_29] : memref<5x32x1536xbf16, #tpu.memory_space<vmem>>, vector<1x32x1536xbf16>
    %56 = vector.shape_cast %55 : vector<1x32x1536xbf16> to vector<32x1536xbf16>
    %cst_30 = arith.constant dense<0.000000e+00> : vector<6x1536xf32>
    %57 = tpu.matmul %54, %56, %cst_30 {dimension_numbers = #tpu.dot_dimension_numbers<[1], [0], [0], [1], [0, 0, 1, 1], [], []>} : vector<6x32xbf16>, vector<32x1536xbf16>, vector<6x1536xf32> -> vector<6x1536xf32>
    %58 = arith.addf %51, %57 : vector<6x1536xf32>
    %59 = vector.extract_strided_slice %0 {offsets = [0, 0, 1, 0], sizes = [1, 1, 6, 32], strides = [1, 1, 1, 1]} : vector<1x4x7x32xbf16> to vector<1x1x6x32xbf16>
    %60 = vector.shape_cast %59 : vector<1x1x6x32xbf16> to vector<1x6x32xbf16>
    %61 = vector.shape_cast %60 : vector<1x6x32xbf16> to vector<6x32xbf16>
    %c2_31 = arith.constant 2 : index
    %c0_32 = arith.constant 0 : index
    %c0_33 = arith.constant 0 : index
    %62 = vector.load %arg2[%c2_31, %c0_32, %c0_33] : memref<5x32x1536xbf16, #tpu.memory_space<vmem>>, vector<1x32x1536xbf16>
    %63 = vector.shape_cast %62 : vector<1x32x1536xbf16> to vector<32x1536xbf16>
    %cst_34 = arith.constant dense<0.000000e+00> : vector<6x1536xf32>
    %64 = tpu.matmul %61, %63, %cst_34 {dimension_numbers = #tpu.dot_dimension_numbers<[1], [0], [0], [1], [0, 0, 1, 1], [], []>} : vector<6x32xbf16>, vector<32x1536xbf16>, vector<6x1536xf32> -> vector<6x1536xf32>
    %65 = arith.addf %58, %64 : vector<6x1536xf32>
    %66 = vector.extract_strided_slice %0 {offsets = [0, 1, 1, 0], sizes = [1, 1, 6, 32], strides = [1, 1, 1, 1]} : vector<1x4x7x32xbf16> to vector<1x1x6x32xbf16>
    %67 = vector.shape_cast %66 : vector<1x1x6x32xbf16> to vector<1x6x32xbf16>
    %68 = vector.shape_cast %67 : vector<1x6x32xbf16> to vector<6x32xbf16>
    %c3_35 = arith.constant 3 : index
    %c0_36 = arith.constant 0 : index
    %c0_37 = arith.constant 0 : index
    %69 = vector.load %arg2[%c3_35, %c0_36, %c0_37] : memref<5x32x1536xbf16, #tpu.memory_space<vmem>>, vector<1x32x1536xbf16>
    %70 = vector.shape_cast %69 : vector<1x32x1536xbf16> to vector<32x1536xbf16>
    %cst_38 = arith.constant dense<0.000000e+00> : vector<6x1536xf32>
    %71 = tpu.matmul %68, %70, %cst_38 {dimension_numbers = #tpu.dot_dimension_numbers<[1], [0], [0], [1], [0, 0, 1, 1], [], []>} : vector<6x32xbf16>, vector<32x1536xbf16>, vector<6x1536xf32> -> vector<6x1536xf32>
    %72 = arith.addf %65, %71 : vector<6x1536xf32>
    %73 = vector.extract_strided_slice %0 {offsets = [0, 2, 1, 0], sizes = [1, 1, 6, 32], strides = [1, 1, 1, 1]} : vector<1x4x7x32xbf16> to vector<1x1x6x32xbf16>
    %74 = vector.shape_cast %73 : vector<1x1x6x32xbf16> to vector<1x6x32xbf16>
    %75 = vector.shape_cast %74 : vector<1x6x32xbf16> to vector<6x32xbf16>
    %c4_39 = arith.constant 4 : index
    %c0_40 = arith.constant 0 : index
    %c0_41 = arith.constant 0 : index
    %76 = vector.load %arg2[%c4_39, %c0_40, %c0_41] : memref<5x32x1536xbf16, #tpu.memory_space<vmem>>, vector<1x32x1536xbf16>
    %77 = vector.shape_cast %76 : vector<1x32x1536xbf16> to vector<32x1536xbf16>
    %cst_42 = arith.constant dense<0.000000e+00> : vector<6x1536xf32>
    %78 = tpu.matmul %75, %77, %cst_42 {dimension_numbers = #tpu.dot_dimension_numbers<[1], [0], [0], [1], [0, 0, 1, 1], [], []>} : vector<6x32xbf16>, vector<32x1536xbf16>, vector<6x1536xf32> -> vector<6x1536xf32>
    %79 = arith.addf %72, %78 : vector<6x1536xf32>
    %80 = vector.broadcast %1 : vector<1x1536xf32> to vector<6x1536xf32>
    %81 = arith.addf %79, %80 : vector<6x1536xf32>
    %cst_43 = arith.constant 0.000000e+00 : f32
    %82 = vector.broadcast %cst_43 : f32 to vector<6x1536xf32>
    %83 = arith.maximumf %81, %82 : vector<6x1536xf32>
    %84 = arith.truncf %83 : vector<6x1536xf32> to vector<6x1536xbf16>
    %85 = vector.shape_cast %84 : vector<6x1536xbf16> to vector<1x6x2x6x128xbf16>
    %cst_44 = arith.constant 0.000000e+00 : f32
    %86 = vector.broadcast %cst_44 : f32 to vector<16x128xf32>
    %87 = vector.extract_strided_slice %43 {offsets = [0, 0, 0, 0, 0], sizes = [1, 4, 1, 4, 128], strides = [1, 1, 1, 1, 1]} : vector<1x6x2x6x128xbf16> to vector<1x4x1x4x128xbf16>
    %88 = vector.shape_cast %87 : vector<1x4x1x4x128xbf16> to vector<1x4x4x128xbf16>
    %89 = vector.shape_cast %88 : vector<1x4x4x128xbf16> to vector<16x128xbf16>
    %c0_45 = arith.constant 0 : index
    %c0_46 = arith.constant 0 : index
    %c0_47 = arith.constant 0 : index
    %90 = vector.load %arg4[%c0_45, %c0_46, %c0_47] : memref<25x128x128xbf16, #tpu.memory_space<vmem>>, vector<1x128x128xbf16>
    %91 = vector.shape_cast %90 : vector<1x128x128xbf16> to vector<128x128xbf16>
    %cst_48 = arith.constant dense<0.000000e+00> : vector<16x128xf32>
    %92 = tpu.matmul %89, %91, %cst_48 {dimension_numbers = #tpu.dot_dimension_numbers<[1], [0], [0], [1], [0, 0, 1, 1], [], []>} : vector<16x128xbf16>, vector<128x128xbf16>, vector<16x128xf32> -> vector<16x128xf32>
    %93 = arith.addf %86, %92 : vector<16x128xf32>
    %94 = vector.extract_strided_slice %43 {offsets = [0, 0, 1, 0, 0], sizes = [1, 4, 1, 4, 128], strides = [1, 1, 1, 1, 1]} : vector<1x6x2x6x128xbf16> to vector<1x4x1x4x128xbf16>
    %95 = vector.shape_cast %94 : vector<1x4x1x4x128xbf16> to vector<1x4x4x128xbf16>
    %96 = vector.shape_cast %95 : vector<1x4x4x128xbf16> to vector<16x128xbf16>
    %c1_49 = arith.constant 1 : index
    %c0_50 = arith.constant 0 : index
    %c0_51 = arith.constant 0 : index
    %97 = vector.load %arg4[%c1_49, %c0_50, %c0_51] : memref<25x128x128xbf16, #tpu.memory_space<vmem>>, vector<1x128x128xbf16>
    %98 = vector.shape_cast %97 : vector<1x128x128xbf16> to vector<128x128xbf16>
    %cst_52 = arith.constant dense<0.000000e+00> : vector<16x128xf32>
    %99 = tpu.matmul %96, %98, %cst_52 {dimension_numbers = #tpu.dot_dimension_numbers<[1], [0], [0], [1], [0, 0, 1, 1], [], []>} : vector<16x128xbf16>, vector<128x128xbf16>, vector<16x128xf32> -> vector<16x128xf32>
    %100 = arith.addf %93, %99 : vector<16x128xf32>
    %101 = vector.extract_strided_slice %43 {offsets = [0, 0, 0, 1, 0], sizes = [1, 4, 1, 4, 128], strides = [1, 1, 1, 1, 1]} : vector<1x6x2x6x128xbf16> to vector<1x4x1x4x128xbf16>
    %102 = vector.shape_cast %101 : vector<1x4x1x4x128xbf16> to vector<1x4x4x128xbf16>
    %103 = vector.shape_cast %102 : vector<1x4x4x128xbf16> to vector<16x128xbf16>
    %c2_53 = arith.constant 2 : index
    %c0_54 = arith.constant 0 : index
    %c0_55 = arith.constant 0 : index
    %104 = vector.load %arg4[%c2_53, %c0_54, %c0_55] : memref<25x128x128xbf16, #tpu.memory_space<vmem>>, vector<1x128x128xbf16>
    %105 = vector.shape_cast %104 : vector<1x128x128xbf16> to vector<128x128xbf16>
    %cst_56 = arith.constant dense<0.000000e+00> : vector<16x128xf32>
    %106 = tpu.matmul %103, %105, %cst_56 {dimension_numbers = #tpu.dot_dimension_numbers<[1], [0], [0], [1], [0, 0, 1, 1], [], []>} : vector<16x128xbf16>, vector<128x128xbf16>, vector<16x128xf32> -> vector<16x128xf32>
    %107 = arith.addf %100, %106 : vector<16x128xf32>
    %108 = vector.extract_strided_slice %43 {offsets = [0, 0, 1, 1, 0], sizes = [1, 4, 1, 4, 128], strides = [1, 1, 1, 1, 1]} : vector<1x6x2x6x128xbf16> to vector<1x4x1x4x128xbf16>
    %109 = vector.shape_cast %108 : vector<1x4x1x4x128xbf16> to vector<1x4x4x128xbf16>
    %110 = vector.shape_cast %109 : vector<1x4x4x128xbf16> to vector<16x128xbf16>
    %c3_57 = arith.constant 3 : index
    %c0_58 = arith.constant 0 : index
    %c0_59 = arith.constant 0 : index
    %111 = vector.load %arg4[%c3_57, %c0_58, %c0_59] : memref<25x128x128xbf16, #tpu.memory_space<vmem>>, vector<1x128x128xbf16>
    %112 = vector.shape_cast %111 : vector<1x128x128xbf16> to vector<128x128xbf16>
    %cst_60 = arith.constant dense<0.000000e+00> : vector<16x128xf32>
    %113 = tpu.matmul %110, %112, %cst_60 {dimension_numbers = #tpu.dot_dimension_numbers<[1], [0], [0], [1], [0, 0, 1, 1], [], []>} : vector<16x128xbf16>, vector<128x128xbf16>, vector<16x128xf32> -> vector<16x128xf32>
    %114 = arith.addf %107, %113 : vector<16x128xf32>
    %115 = vector.extract_strided_slice %43 {offsets = [0, 0, 0, 2, 0], sizes = [1, 4, 1, 4, 128], strides = [1, 1, 1, 1, 1]} : vector<1x6x2x6x128xbf16> to vector<1x4x1x4x128xbf16>
    %116 = vector.shape_cast %115 : vector<1x4x1x4x128xbf16> to vector<1x4x4x128xbf16>
    %117 = vector.shape_cast %116 : vector<1x4x4x128xbf16> to vector<16x128xbf16>
    %c4_61 = arith.constant 4 : index
    %c0_62 = arith.constant 0 : index
    %c0_63 = arith.constant 0 : index
    %118 = vector.load %arg4[%c4_61, %c0_62, %c0_63] : memref<25x128x128xbf16, #tpu.memory_space<vmem>>, vector<1x128x128xbf16>
    %119 = vector.shape_cast %118 : vector<1x128x128xbf16> to vector<128x128xbf16>
    %cst_64 = arith.constant dense<0.000000e+00> : vector<16x128xf32>
    %120 = tpu.matmul %117, %119, %cst_64 {dimension_numbers = #tpu.dot_dimension_numbers<[1], [0], [0], [1], [0, 0, 1, 1], [], []>} : vector<16x128xbf16>, vector<128x128xbf16>, vector<16x128xf32> -> vector<16x128xf32>
    %121 = arith.addf %114, %120 : vector<16x128xf32>
    %122 = vector.extract_strided_slice %85 {offsets = [0, 0, 0, 0, 0], sizes = [1, 4, 1, 4, 128], strides = [1, 1, 1, 1, 1]} : vector<1x6x2x6x128xbf16> to vector<1x4x1x4x128xbf16>
    %123 = vector.shape_cast %122 : vector<1x4x1x4x128xbf16> to vector<1x4x4x128xbf16>
    %124 = vector.shape_cast %123 : vector<1x4x4x128xbf16> to vector<16x128xbf16>
    %c5 = arith.constant 5 : index
    %c0_65 = arith.constant 0 : index
    %c0_66 = arith.constant 0 : index
    %125 = vector.load %arg4[%c5, %c0_65, %c0_66] : memref<25x128x128xbf16, #tpu.memory_space<vmem>>, vector<1x128x128xbf16>
    %126 = vector.shape_cast %125 : vector<1x128x128xbf16> to vector<128x128xbf16>
    %cst_67 = arith.constant dense<0.000000e+00> : vector<16x128xf32>
    %127 = tpu.matmul %124, %126, %cst_67 {dimension_numbers = #tpu.dot_dimension_numbers<[1], [0], [0], [1], [0, 0, 1, 1], [], []>} : vector<16x128xbf16>, vector<128x128xbf16>, vector<16x128xf32> -> vector<16x128xf32>
    %128 = arith.addf %121, %127 : vector<16x128xf32>
    %129 = vector.extract_strided_slice %85 {offsets = [0, 0, 1, 0, 0], sizes = [1, 4, 1, 4, 128], strides = [1, 1, 1, 1, 1]} : vector<1x6x2x6x128xbf16> to vector<1x4x1x4x128xbf16>
    %130 = vector.shape_cast %129 : vector<1x4x1x4x128xbf16> to vector<1x4x4x128xbf16>
    %131 = vector.shape_cast %130 : vector<1x4x4x128xbf16> to vector<16x128xbf16>
    %c6 = arith.constant 6 : index
    %c0_68 = arith.constant 0 : index
    %c0_69 = arith.constant 0 : index
    %132 = vector.load %arg4[%c6, %c0_68, %c0_69] : memref<25x128x128xbf16, #tpu.memory_space<vmem>>, vector<1x128x128xbf16>
    %133 = vector.shape_cast %132 : vector<1x128x128xbf16> to vector<128x128xbf16>
    %cst_70 = arith.constant dense<0.000000e+00> : vector<16x128xf32>
    %134 = tpu.matmul %131, %133, %cst_70 {dimension_numbers = #tpu.dot_dimension_numbers<[1], [0], [0], [1], [0, 0, 1, 1], [], []>} : vector<16x128xbf16>, vector<128x128xbf16>, vector<16x128xf32> -> vector<16x128xf32>
    %135 = arith.addf %128, %134 : vector<16x128xf32>
    %136 = vector.extract_strided_slice %85 {offsets = [0, 0, 0, 1, 0], sizes = [1, 4, 1, 4, 128], strides = [1, 1, 1, 1, 1]} : vector<1x6x2x6x128xbf16> to vector<1x4x1x4x128xbf16>
    %137 = vector.shape_cast %136 : vector<1x4x1x4x128xbf16> to vector<1x4x4x128xbf16>
    %138 = vector.shape_cast %137 : vector<1x4x4x128xbf16> to vector<16x128xbf16>
    %c7 = arith.constant 7 : index
    %c0_71 = arith.constant 0 : index
    %c0_72 = arith.constant 0 : index
    %139 = vector.load %arg4[%c7, %c0_71, %c0_72] : memref<25x128x128xbf16, #tpu.memory_space<vmem>>, vector<1x128x128xbf16>
    %140 = vector.shape_cast %139 : vector<1x128x128xbf16> to vector<128x128xbf16>
    %cst_73 = arith.constant dense<0.000000e+00> : vector<16x128xf32>
    %141 = tpu.matmul %138, %140, %cst_73 {dimension_numbers = #tpu.dot_dimension_numbers<[1], [0], [0], [1], [0, 0, 1, 1], [], []>} : vector<16x128xbf16>, vector<128x128xbf16>, vector<16x128xf32> -> vector<16x128xf32>
    %142 = arith.addf %135, %141 : vector<16x128xf32>
    %143 = vector.extract_strided_slice %85 {offsets = [0, 0, 1, 1, 0], sizes = [1, 4, 1, 4, 128], strides = [1, 1, 1, 1, 1]} : vector<1x6x2x6x128xbf16> to vector<1x4x1x4x128xbf16>
    %144 = vector.shape_cast %143 : vector<1x4x1x4x128xbf16> to vector<1x4x4x128xbf16>
    %145 = vector.shape_cast %144 : vector<1x4x4x128xbf16> to vector<16x128xbf16>
    %c8 = arith.constant 8 : index
    %c0_74 = arith.constant 0 : index
    %c0_75 = arith.constant 0 : index
    %146 = vector.load %arg4[%c8, %c0_74, %c0_75] : memref<25x128x128xbf16, #tpu.memory_space<vmem>>, vector<1x128x128xbf16>
    %147 = vector.shape_cast %146 : vector<1x128x128xbf16> to vector<128x128xbf16>
    %cst_76 = arith.constant dense<0.000000e+00> : vector<16x128xf32>
    %148 = tpu.matmul %145, %147, %cst_76 {dimension_numbers = #tpu.dot_dimension_numbers<[1], [0], [0], [1], [0, 0, 1, 1], [], []>} : vector<16x128xbf16>, vector<128x128xbf16>, vector<16x128xf32> -> vector<16x128xf32>
    %149 = arith.addf %142, %148 : vector<16x128xf32>
    %150 = vector.extract_strided_slice %85 {offsets = [0, 0, 0, 2, 0], sizes = [1, 4, 1, 4, 128], strides = [1, 1, 1, 1, 1]} : vector<1x6x2x6x128xbf16> to vector<1x4x1x4x128xbf16>
    %151 = vector.shape_cast %150 : vector<1x4x1x4x128xbf16> to vector<1x4x4x128xbf16>
    %152 = vector.shape_cast %151 : vector<1x4x4x128xbf16> to vector<16x128xbf16>
    %c9 = arith.constant 9 : index
    %c0_77 = arith.constant 0 : index
    %c0_78 = arith.constant 0 : index
    %153 = vector.load %arg4[%c9, %c0_77, %c0_78] : memref<25x128x128xbf16, #tpu.memory_space<vmem>>, vector<1x128x128xbf16>
    %154 = vector.shape_cast %153 : vector<1x128x128xbf16> to vector<128x128xbf16>
    %cst_79 = arith.constant dense<0.000000e+00> : vector<16x128xf32>
    %155 = tpu.matmul %152, %154, %cst_79 {dimension_numbers = #tpu.dot_dimension_numbers<[1], [0], [0], [1], [0, 0, 1, 1], [], []>} : vector<16x128xbf16>, vector<128x128xbf16>, vector<16x128xf32> -> vector<16x128xf32>
    %156 = arith.addf %149, %155 : vector<16x128xf32>
    %157 = vector.extract_strided_slice %43 {offsets = [0, 1, 0, 0, 0], sizes = [1, 4, 1, 4, 128], strides = [1, 1, 1, 1, 1]} : vector<1x6x2x6x128xbf16> to vector<1x4x1x4x128xbf16>
    %158 = vector.shape_cast %157 : vector<1x4x1x4x128xbf16> to vector<1x4x4x128xbf16>
    %159 = vector.shape_cast %158 : vector<1x4x4x128xbf16> to vector<16x128xbf16>
    %c10 = arith.constant 10 : index
    %c0_80 = arith.constant 0 : index
    %c0_81 = arith.constant 0 : index
    %160 = vector.load %arg4[%c10, %c0_80, %c0_81] : memref<25x128x128xbf16, #tpu.memory_space<vmem>>, vector<1x128x128xbf16>
    %161 = vector.shape_cast %160 : vector<1x128x128xbf16> to vector<128x128xbf16>
    %cst_82 = arith.constant dense<0.000000e+00> : vector<16x128xf32>
    %162 = tpu.matmul %159, %161, %cst_82 {dimension_numbers = #tpu.dot_dimension_numbers<[1], [0], [0], [1], [0, 0, 1, 1], [], []>} : vector<16x128xbf16>, vector<128x128xbf16>, vector<16x128xf32> -> vector<16x128xf32>
    %163 = arith.addf %156, %162 : vector<16x128xf32>
    %164 = vector.extract_strided_slice %43 {offsets = [0, 1, 1, 0, 0], sizes = [1, 4, 1, 4, 128], strides = [1, 1, 1, 1, 1]} : vector<1x6x2x6x128xbf16> to vector<1x4x1x4x128xbf16>
    %165 = vector.shape_cast %164 : vector<1x4x1x4x128xbf16> to vector<1x4x4x128xbf16>
    %166 = vector.shape_cast %165 : vector<1x4x4x128xbf16> to vector<16x128xbf16>
    %c11 = arith.constant 11 : index
    %c0_83 = arith.constant 0 : index
    %c0_84 = arith.constant 0 : index
    %167 = vector.load %arg4[%c11, %c0_83, %c0_84] : memref<25x128x128xbf16, #tpu.memory_space<vmem>>, vector<1x128x128xbf16>
    %168 = vector.shape_cast %167 : vector<1x128x128xbf16> to vector<128x128xbf16>
    %cst_85 = arith.constant dense<0.000000e+00> : vector<16x128xf32>
    %169 = tpu.matmul %166, %168, %cst_85 {dimension_numbers = #tpu.dot_dimension_numbers<[1], [0], [0], [1], [0, 0, 1, 1], [], []>} : vector<16x128xbf16>, vector<128x128xbf16>, vector<16x128xf32> -> vector<16x128xf32>
    %170 = arith.addf %163, %169 : vector<16x128xf32>
    %171 = vector.extract_strided_slice %43 {offsets = [0, 1, 0, 1, 0], sizes = [1, 4, 1, 4, 128], strides = [1, 1, 1, 1, 1]} : vector<1x6x2x6x128xbf16> to vector<1x4x1x4x128xbf16>
    %172 = vector.shape_cast %171 : vector<1x4x1x4x128xbf16> to vector<1x4x4x128xbf16>
    %173 = vector.shape_cast %172 : vector<1x4x4x128xbf16> to vector<16x128xbf16>
    %c12 = arith.constant 12 : index
    %c0_86 = arith.constant 0 : index
    %c0_87 = arith.constant 0 : index
    %174 = vector.load %arg4[%c12, %c0_86, %c0_87] : memref<25x128x128xbf16, #tpu.memory_space<vmem>>, vector<1x128x128xbf16>
    %175 = vector.shape_cast %174 : vector<1x128x128xbf16> to vector<128x128xbf16>
    %cst_88 = arith.constant dense<0.000000e+00> : vector<16x128xf32>
    %176 = tpu.matmul %173, %175, %cst_88 {dimension_numbers = #tpu.dot_dimension_numbers<[1], [0], [0], [1], [0, 0, 1, 1], [], []>} : vector<16x128xbf16>, vector<128x128xbf16>, vector<16x128xf32> -> vector<16x128xf32>
    %177 = arith.addf %170, %176 : vector<16x128xf32>
    %178 = vector.extract_strided_slice %43 {offsets = [0, 1, 1, 1, 0], sizes = [1, 4, 1, 4, 128], strides = [1, 1, 1, 1, 1]} : vector<1x6x2x6x128xbf16> to vector<1x4x1x4x128xbf16>
    %179 = vector.shape_cast %178 : vector<1x4x1x4x128xbf16> to vector<1x4x4x128xbf16>
    %180 = vector.shape_cast %179 : vector<1x4x4x128xbf16> to vector<16x128xbf16>
    %c13 = arith.constant 13 : index
    %c0_89 = arith.constant 0 : index
    %c0_90 = arith.constant 0 : index
    %181 = vector.load %arg4[%c13, %c0_89, %c0_90] : memref<25x128x128xbf16, #tpu.memory_space<vmem>>, vector<1x128x128xbf16>
    %182 = vector.shape_cast %181 : vector<1x128x128xbf16> to vector<128x128xbf16>
    %cst_91 = arith.constant dense<0.000000e+00> : vector<16x128xf32>
    %183 = tpu.matmul %180, %182, %cst_91 {dimension_numbers = #tpu.dot_dimension_numbers<[1], [0], [0], [1], [0, 0, 1, 1], [], []>} : vector<16x128xbf16>, vector<128x128xbf16>, vector<16x128xf32> -> vector<16x128xf32>
    %184 = arith.addf %177, %183 : vector<16x128xf32>
    %185 = vector.extract_strided_slice %43 {offsets = [0, 1, 0, 2, 0], sizes = [1, 4, 1, 4, 128], strides = [1, 1, 1, 1, 1]} : vector<1x6x2x6x128xbf16> to vector<1x4x1x4x128xbf16>
    %186 = vector.shape_cast %185 : vector<1x4x1x4x128xbf16> to vector<1x4x4x128xbf16>
    %187 = vector.shape_cast %186 : vector<1x4x4x128xbf16> to vector<16x128xbf16>
    %c14 = arith.constant 14 : index
    %c0_92 = arith.constant 0 : index
    %c0_93 = arith.constant 0 : index
    %188 = vector.load %arg4[%c14, %c0_92, %c0_93] : memref<25x128x128xbf16, #tpu.memory_space<vmem>>, vector<1x128x128xbf16>
    %189 = vector.shape_cast %188 : vector<1x128x128xbf16> to vector<128x128xbf16>
    %cst_94 = arith.constant dense<0.000000e+00> : vector<16x128xf32>
    %190 = tpu.matmul %187, %189, %cst_94 {dimension_numbers = #tpu.dot_dimension_numbers<[1], [0], [0], [1], [0, 0, 1, 1], [], []>} : vector<16x128xbf16>, vector<128x128xbf16>, vector<16x128xf32> -> vector<16x128xf32>
    %191 = arith.addf %184, %190 : vector<16x128xf32>
    %192 = vector.extract_strided_slice %85 {offsets = [0, 1, 0, 0, 0], sizes = [1, 4, 1, 4, 128], strides = [1, 1, 1, 1, 1]} : vector<1x6x2x6x128xbf16> to vector<1x4x1x4x128xbf16>
    %193 = vector.shape_cast %192 : vector<1x4x1x4x128xbf16> to vector<1x4x4x128xbf16>
    %194 = vector.shape_cast %193 : vector<1x4x4x128xbf16> to vector<16x128xbf16>
    %c15 = arith.constant 15 : index
    %c0_95 = arith.constant 0 : index
    %c0_96 = arith.constant 0 : index
    %195 = vector.load %arg4[%c15, %c0_95, %c0_96] : memref<25x128x128xbf16, #tpu.memory_space<vmem>>, vector<1x128x128xbf16>
    %196 = vector.shape_cast %195 : vector<1x128x128xbf16> to vector<128x128xbf16>
    %cst_97 = arith.constant dense<0.000000e+00> : vector<16x128xf32>
    %197 = tpu.matmul %194, %196, %cst_97 {dimension_numbers = #tpu.dot_dimension_numbers<[1], [0], [0], [1], [0, 0, 1, 1], [], []>} : vector<16x128xbf16>, vector<128x128xbf16>, vector<16x128xf32> -> vector<16x128xf32>
    %198 = arith.addf %191, %197 : vector<16x128xf32>
    %199 = vector.extract_strided_slice %85 {offsets = [0, 1, 1, 0, 0], sizes = [1, 4, 1, 4, 128], strides = [1, 1, 1, 1, 1]} : vector<1x6x2x6x128xbf16> to vector<1x4x1x4x128xbf16>
    %200 = vector.shape_cast %199 : vector<1x4x1x4x128xbf16> to vector<1x4x4x128xbf16>
    %201 = vector.shape_cast %200 : vector<1x4x4x128xbf16> to vector<16x128xbf16>
    %c16 = arith.constant 16 : index
    %c0_98 = arith.constant 0 : index
    %c0_99 = arith.constant 0 : index
    %202 = vector.load %arg4[%c16, %c0_98, %c0_99] : memref<25x128x128xbf16, #tpu.memory_space<vmem>>, vector<1x128x128xbf16>
    %203 = vector.shape_cast %202 : vector<1x128x128xbf16> to vector<128x128xbf16>
    %cst_100 = arith.constant dense<0.000000e+00> : vector<16x128xf32>
    %204 = tpu.matmul %201, %203, %cst_100 {dimension_numbers = #tpu.dot_dimension_numbers<[1], [0], [0], [1], [0, 0, 1, 1], [], []>} : vector<16x128xbf16>, vector<128x128xbf16>, vector<16x128xf32> -> vector<16x128xf32>
    %205 = arith.addf %198, %204 : vector<16x128xf32>
    %206 = vector.extract_strided_slice %85 {offsets = [0, 1, 0, 1, 0], sizes = [1, 4, 1, 4, 128], strides = [1, 1, 1, 1, 1]} : vector<1x6x2x6x128xbf16> to vector<1x4x1x4x128xbf16>
    %207 = vector.shape_cast %206 : vector<1x4x1x4x128xbf16> to vector<1x4x4x128xbf16>
    %208 = vector.shape_cast %207 : vector<1x4x4x128xbf16> to vector<16x128xbf16>
    %c17 = arith.constant 17 : index
    %c0_101 = arith.constant 0 : index
    %c0_102 = arith.constant 0 : index
    %209 = vector.load %arg4[%c17, %c0_101, %c0_102] : memref<25x128x128xbf16, #tpu.memory_space<vmem>>, vector<1x128x128xbf16>
    %210 = vector.shape_cast %209 : vector<1x128x128xbf16> to vector<128x128xbf16>
    %cst_103 = arith.constant dense<0.000000e+00> : vector<16x128xf32>
    %211 = tpu.matmul %208, %210, %cst_103 {dimension_numbers = #tpu.dot_dimension_numbers<[1], [0], [0], [1], [0, 0, 1, 1], [], []>} : vector<16x128xbf16>, vector<128x128xbf16>, vector<16x128xf32> -> vector<16x128xf32>
    %212 = arith.addf %205, %211 : vector<16x128xf32>
    %213 = vector.extract_strided_slice %85 {offsets = [0, 1, 1, 1, 0], sizes = [1, 4, 1, 4, 128], strides = [1, 1, 1, 1, 1]} : vector<1x6x2x6x128xbf16> to vector<1x4x1x4x128xbf16>
    %214 = vector.shape_cast %213 : vector<1x4x1x4x128xbf16> to vector<1x4x4x128xbf16>
    %215 = vector.shape_cast %214 : vector<1x4x4x128xbf16> to vector<16x128xbf16>
    %c18 = arith.constant 18 : index
    %c0_104 = arith.constant 0 : index
    %c0_105 = arith.constant 0 : index
    %216 = vector.load %arg4[%c18, %c0_104, %c0_105] : memref<25x128x128xbf16, #tpu.memory_space<vmem>>, vector<1x128x128xbf16>
    %217 = vector.shape_cast %216 : vector<1x128x128xbf16> to vector<128x128xbf16>
    %cst_106 = arith.constant dense<0.000000e+00> : vector<16x128xf32>
    %218 = tpu.matmul %215, %217, %cst_106 {dimension_numbers = #tpu.dot_dimension_numbers<[1], [0], [0], [1], [0, 0, 1, 1], [], []>} : vector<16x128xbf16>, vector<128x128xbf16>, vector<16x128xf32> -> vector<16x128xf32>
    %219 = arith.addf %212, %218 : vector<16x128xf32>
    %220 = vector.extract_strided_slice %85 {offsets = [0, 1, 0, 2, 0], sizes = [1, 4, 1, 4, 128], strides = [1, 1, 1, 1, 1]} : vector<1x6x2x6x128xbf16> to vector<1x4x1x4x128xbf16>
    %221 = vector.shape_cast %220 : vector<1x4x1x4x128xbf16> to vector<1x4x4x128xbf16>
    %222 = vector.shape_cast %221 : vector<1x4x4x128xbf16> to vector<16x128xbf16>
    %c19 = arith.constant 19 : index
    %c0_107 = arith.constant 0 : index
    %c0_108 = arith.constant 0 : index
    %223 = vector.load %arg4[%c19, %c0_107, %c0_108] : memref<25x128x128xbf16, #tpu.memory_space<vmem>>, vector<1x128x128xbf16>
    %224 = vector.shape_cast %223 : vector<1x128x128xbf16> to vector<128x128xbf16>
    %cst_109 = arith.constant dense<0.000000e+00> : vector<16x128xf32>
    %225 = tpu.matmul %222, %224, %cst_109 {dimension_numbers = #tpu.dot_dimension_numbers<[1], [0], [0], [1], [0, 0, 1, 1], [], []>} : vector<16x128xbf16>, vector<128x128xbf16>, vector<16x128xf32> -> vector<16x128xf32>
    %226 = arith.addf %219, %225 : vector<16x128xf32>
    %227 = vector.extract_strided_slice %43 {offsets = [0, 2, 0, 0, 0], sizes = [1, 4, 1, 4, 128], strides = [1, 1, 1, 1, 1]} : vector<1x6x2x6x128xbf16> to vector<1x4x1x4x128xbf16>
    %228 = vector.shape_cast %227 : vector<1x4x1x4x128xbf16> to vector<1x4x4x128xbf16>
    %229 = vector.shape_cast %228 : vector<1x4x4x128xbf16> to vector<16x128xbf16>
    %c20 = arith.constant 20 : index
    %c0_110 = arith.constant 0 : index
    %c0_111 = arith.constant 0 : index
    %230 = vector.load %arg4[%c20, %c0_110, %c0_111] : memref<25x128x128xbf16, #tpu.memory_space<vmem>>, vector<1x128x128xbf16>
    %231 = vector.shape_cast %230 : vector<1x128x128xbf16> to vector<128x128xbf16>
    %cst_112 = arith.constant dense<0.000000e+00> : vector<16x128xf32>
    %232 = tpu.matmul %229, %231, %cst_112 {dimension_numbers = #tpu.dot_dimension_numbers<[1], [0], [0], [1], [0, 0, 1, 1], [], []>} : vector<16x128xbf16>, vector<128x128xbf16>, vector<16x128xf32> -> vector<16x128xf32>
    %233 = arith.addf %226, %232 : vector<16x128xf32>
    %234 = vector.extract_strided_slice %43 {offsets = [0, 2, 1, 0, 0], sizes = [1, 4, 1, 4, 128], strides = [1, 1, 1, 1, 1]} : vector<1x6x2x6x128xbf16> to vector<1x4x1x4x128xbf16>
    %235 = vector.shape_cast %234 : vector<1x4x1x4x128xbf16> to vector<1x4x4x128xbf16>
    %236 = vector.shape_cast %235 : vector<1x4x4x128xbf16> to vector<16x128xbf16>
    %c21 = arith.constant 21 : index
    %c0_113 = arith.constant 0 : index
    %c0_114 = arith.constant 0 : index
    %237 = vector.load %arg4[%c21, %c0_113, %c0_114] : memref<25x128x128xbf16, #tpu.memory_space<vmem>>, vector<1x128x128xbf16>
    %238 = vector.shape_cast %237 : vector<1x128x128xbf16> to vector<128x128xbf16>
    %cst_115 = arith.constant dense<0.000000e+00> : vector<16x128xf32>
    %239 = tpu.matmul %236, %238, %cst_115 {dimension_numbers = #tpu.dot_dimension_numbers<[1], [0], [0], [1], [0, 0, 1, 1], [], []>} : vector<16x128xbf16>, vector<128x128xbf16>, vector<16x128xf32> -> vector<16x128xf32>
    %240 = arith.addf %233, %239 : vector<16x128xf32>
    %241 = vector.extract_strided_slice %43 {offsets = [0, 2, 0, 1, 0], sizes = [1, 4, 1, 4, 128], strides = [1, 1, 1, 1, 1]} : vector<1x6x2x6x128xbf16> to vector<1x4x1x4x128xbf16>
    %242 = vector.shape_cast %241 : vector<1x4x1x4x128xbf16> to vector<1x4x4x128xbf16>
    %243 = vector.shape_cast %242 : vector<1x4x4x128xbf16> to vector<16x128xbf16>
    %c22 = arith.constant 22 : index
    %c0_116 = arith.constant 0 : index
    %c0_117 = arith.constant 0 : index
    %244 = vector.load %arg4[%c22, %c0_116, %c0_117] : memref<25x128x128xbf16, #tpu.memory_space<vmem>>, vector<1x128x128xbf16>
    %245 = vector.shape_cast %244 : vector<1x128x128xbf16> to vector<128x128xbf16>
    %cst_118 = arith.constant dense<0.000000e+00> : vector<16x128xf32>
    %246 = tpu.matmul %243, %245, %cst_118 {dimension_numbers = #tpu.dot_dimension_numbers<[1], [0], [0], [1], [0, 0, 1, 1], [], []>} : vector<16x128xbf16>, vector<128x128xbf16>, vector<16x128xf32> -> vector<16x128xf32>
    %247 = arith.addf %240, %246 : vector<16x128xf32>
    %248 = vector.extract_strided_slice %43 {offsets = [0, 2, 1, 1, 0], sizes = [1, 4, 1, 4, 128], strides = [1, 1, 1, 1, 1]} : vector<1x6x2x6x128xbf16> to vector<1x4x1x4x128xbf16>
    %249 = vector.shape_cast %248 : vector<1x4x1x4x128xbf16> to vector<1x4x4x128xbf16>
    %250 = vector.shape_cast %249 : vector<1x4x4x128xbf16> to vector<16x128xbf16>
    %c23 = arith.constant 23 : index
    %c0_119 = arith.constant 0 : index
    %c0_120 = arith.constant 0 : index
    %251 = vector.load %arg4[%c23, %c0_119, %c0_120] : memref<25x128x128xbf16, #tpu.memory_space<vmem>>, vector<1x128x128xbf16>
    %252 = vector.shape_cast %251 : vector<1x128x128xbf16> to vector<128x128xbf16>
    %cst_121 = arith.constant dense<0.000000e+00> : vector<16x128xf32>
    %253 = tpu.matmul %250, %252, %cst_121 {dimension_numbers = #tpu.dot_dimension_numbers<[1], [0], [0], [1], [0, 0, 1, 1], [], []>} : vector<16x128xbf16>, vector<128x128xbf16>, vector<16x128xf32> -> vector<16x128xf32>
    %254 = arith.addf %247, %253 : vector<16x128xf32>
    %255 = vector.extract_strided_slice %43 {offsets = [0, 2, 0, 2, 0], sizes = [1, 4, 1, 4, 128], strides = [1, 1, 1, 1, 1]} : vector<1x6x2x6x128xbf16> to vector<1x4x1x4x128xbf16>
    %256 = vector.shape_cast %255 : vector<1x4x1x4x128xbf16> to vector<1x4x4x128xbf16>
    %257 = vector.shape_cast %256 : vector<1x4x4x128xbf16> to vector<16x128xbf16>
    %c24 = arith.constant 24 : index
    %c0_122 = arith.constant 0 : index
    %c0_123 = arith.constant 0 : index
    %258 = vector.load %arg4[%c24, %c0_122, %c0_123] : memref<25x128x128xbf16, #tpu.memory_space<vmem>>, vector<1x128x128xbf16>
    %259 = vector.shape_cast %258 : vector<1x128x128xbf16> to vector<128x128xbf16>
    %cst_124 = arith.constant dense<0.000000e+00> : vector<16x128xf32>
    %260 = tpu.matmul %257, %259, %cst_124 {dimension_numbers = #tpu.dot_dimension_numbers<[1], [0], [0], [1], [0, 0, 1, 1], [], []>} : vector<16x128xbf16>, vector<128x128xbf16>, vector<16x128xf32> -> vector<16x128xf32>
    %261 = arith.addf %254, %260 : vector<16x128xf32>
    %c0_125 = arith.constant 0 : index
    %c0_126 = arith.constant 0 : index
    %262 = vector.load %arg5[%c0_125, %c0_126] : memref<1x128xf32, #tpu.memory_space<vmem>>, vector<1x128xf32>
    %263 = vector.broadcast %262 : vector<1x128xf32> to vector<16x128xf32>
    %264 = arith.addf %261, %263 : vector<16x128xf32>
    %cst_127 = arith.constant 0.000000e+00 : f32
    %265 = vector.broadcast %cst_127 : f32 to vector<16x128xf32>
    %266 = arith.maximumf %264, %265 : vector<16x128xf32>
    %267 = arith.truncf %266 : vector<16x128xf32> to vector<16x128xbf16>
    %268 = vector.shape_cast %267 : vector<16x128xbf16> to vector<1x2048xbf16>
    %c0_128 = arith.constant 0 : index
    %c0_129 = arith.constant 0 : index
    %269 = vector.load %arg6[%c0_128, %c0_129] : memref<2048x128xbf16, #tpu.memory_space<vmem>>, vector<2048x128xbf16>
    %cst_130 = arith.constant dense<0.000000e+00> : vector<1x128xf32>
    %270 = tpu.matmul %268, %269, %cst_130 {dimension_numbers = #tpu.dot_dimension_numbers<[1], [0], [0], [1], [0, 0, 1, 1], [], []>} : vector<1x2048xbf16>, vector<2048x128xbf16>, vector<1x128xf32> -> vector<1x128xf32>
    %c0_131 = arith.constant 0 : index
    %c0_132 = arith.constant 0 : index
    %271 = vector.load %arg7[%c0_131, %c0_132] : memref<1x128xf32, #tpu.memory_space<vmem>>, vector<1x128xf32>
    %272 = arith.addf %270, %271 : vector<1x128xf32>
    %cst_133 = arith.constant 0.000000e+00 : f32
    %273 = vector.broadcast %cst_133 : f32 to vector<1x128xf32>
    %274 = arith.maximumf %272, %273 : vector<1x128xf32>
    %275 = arith.truncf %274 : vector<1x128xf32> to vector<1x128xbf16>
    %c0_134 = arith.constant 0 : index
    %c0_135 = arith.constant 0 : index
    %276 = vector.load %arg8[%c0_134, %c0_135] : memref<128x128xbf16, #tpu.memory_space<vmem>>, vector<128x128xbf16>
    %cst_136 = arith.constant dense<0.000000e+00> : vector<1x128xf32>
    %277 = tpu.matmul %275, %276, %cst_136 {dimension_numbers = #tpu.dot_dimension_numbers<[1], [0], [0], [1], [0, 0, 1, 1], [], []>} : vector<1x128xbf16>, vector<128x128xbf16>, vector<1x128xf32> -> vector<1x128xf32>
    %c0_137 = arith.constant 0 : index
    %c0_138 = arith.constant 0 : index
    %278 = vector.load %arg9[%c0_137, %c0_138] : memref<1x128xf32, #tpu.memory_space<vmem>>, vector<1x128xf32>
    %279 = arith.addf %277, %278 : vector<1x128xf32>
    %280 = tpu.iota {dimensions = array<i32: 1>} : vector<1x128xi32>
    %c10_i32 = arith.constant 10 : i32
    %281 = vector.broadcast %c10_i32 : i32 to vector<1x128xi32>
    %282 = arith.cmpi slt, %280, %281 : vector<1x128xi32>
    %cst_139 = arith.constant -1.000000e+30 : f32
    %283 = vector.broadcast %cst_139 : f32 to vector<1x128xf32>
    %284 = arith.select %282, %279, %283 : vector<1x128xi1>, vector<1x128xf32>
    %cst_140 = arith.constant dense<0xFF800000> : vector<1xf32>
    %285 = vector.multi_reduction <maximumf>, %284, %cst_140 [1] : vector<1x128xf32> to vector<1xf32>
    %286 = vector.shape_cast %285 : vector<1xf32> to vector<1x1xf32>
    %287 = vector.broadcast %286 : vector<1x1xf32> to vector<1x128xf32>
    %288 = arith.subf %284, %287 : vector<1x128xf32>
    %289 = math.exp %288 : vector<1x128xf32>
    %cst_141 = arith.constant dense<0.000000e+00> : vector<1xf32>
    %290 = vector.multi_reduction <add>, %289, %cst_141 [1] : vector<1x128xf32> to vector<1xf32>
    %291 = vector.shape_cast %290 : vector<1xf32> to vector<1x1xf32>
    %292 = math.log %291 : vector<1x1xf32>
    %293 = arith.addf %286, %292 : vector<1x1xf32>
    %294 = vector.broadcast %293 : vector<1x1xf32> to vector<1x128xf32>
    %295 = arith.subf %284, %294 : vector<1x128xf32>
    %296 = vector.shape_cast %295 : vector<1x128xf32> to vector<1x1x128xf32>
    %c0_142 = arith.constant 0 : index
    %c0_143 = arith.constant 0 : index
    %c0_144 = arith.constant 0 : index
    %297 = vector.load %arg10[%c0_142, %c0_143, %c0_144] : memref<1x1x128xf32, #tpu.memory_space<vmem>>, vector<1x1x128xf32>
    tpu.vector_store %arg10[%c0_142, %c0_143, %c0_144], %296 {strides = array<i32>} : memref<1x1x128xf32, #tpu.memory_space<vmem>>, vector<1x1x128xf32>,
    return
  }
  func.func @transform_0(%arg0: i32) -> (i32, i32, i32, i32) {
    %c0_i32 = arith.constant 0 : i32
    %c0_i32_0 = arith.constant 0 : i32
    %c0_i32_1 = arith.constant 0 : i32
    %c0_i32_2 = arith.constant 0 : i32
    return %arg0, %c0_i32, %c0_i32_0, %c0_i32_1 : i32, i32, i32, i32
  }
  func.func @transform_1(%arg0: i32) -> (i32, i32, i32) {
    %c0_i32 = arith.constant 0 : i32
    %c0_i32_0 = arith.constant 0 : i32
    %c0_i32_1 = arith.constant 0 : i32
    %c0_i32_2 = arith.constant 0 : i32
    return %c0_i32, %c0_i32_0, %c0_i32_1 : i32, i32, i32
  }
  func.func @transform_2(%arg0: i32) -> (i32, i32) {
    %c0_i32 = arith.constant 0 : i32
    %c0_i32_0 = arith.constant 0 : i32
    %c0_i32_1 = arith.constant 0 : i32
    return %c0_i32, %c0_i32_0 : i32, i32
  }
  func.func @transform_3(%arg0: i32) -> (i32, i32, i32) {
    %c0_i32 = arith.constant 0 : i32
    %c0_i32_0 = arith.constant 0 : i32
    %c0_i32_1 = arith.constant 0 : i32
    %c0_i32_2 = arith.constant 0 : i32
    return %c0_i32, %c0_i32_0, %c0_i32_1 : i32, i32, i32
  }
  func.func @transform_4(%arg0: i32) -> (i32, i32) {
    %c0_i32 = arith.constant 0 : i32
    %c0_i32_0 = arith.constant 0 : i32
    %c0_i32_1 = arith.constant 0 : i32
    return %c0_i32, %c0_i32_0 : i32, i32
  }
  func.func @transform_5(%arg0: i32) -> (i32, i32) {
    %c0_i32 = arith.constant 0 : i32
    %c0_i32_0 = arith.constant 0 : i32
    %c0_i32_1 = arith.constant 0 : i32
    return %c0_i32, %c0_i32_0 : i32, i32
  }
  func.func @transform_6(%arg0: i32) -> (i32, i32) {
    %c0_i32 = arith.constant 0 : i32
    %c0_i32_0 = arith.constant 0 : i32
    %c0_i32_1 = arith.constant 0 : i32
    return %c0_i32, %c0_i32_0 : i32, i32
  }
  func.func @transform_7(%arg0: i32) -> (i32, i32) {
    %c0_i32 = arith.constant 0 : i32
    %c0_i32_0 = arith.constant 0 : i32
    %c0_i32_1 = arith.constant 0 : i32
    return %c0_i32, %c0_i32_0 : i32, i32
  }
  func.func @transform_8(%arg0: i32) -> (i32, i32) {
    %c0_i32 = arith.constant 0 : i32
    %c0_i32_0 = arith.constant 0 : i32
    %c0_i32_1 = arith.constant 0 : i32
    return %c0_i32, %c0_i32_0 : i32, i32
  }
  func.func @transform_9(%arg0: i32) -> (i32, i32, i32) {
    %c0_i32 = arith.constant 0 : i32
    %c0_i32_0 = arith.constant 0 : i32
    %c0_i32_1 = arith.constant 0 : i32
    return %arg0, %c0_i32, %c0_i32_0 : i32, i32, i32
  }
}

</mosaic_0001>

<bundles_post_ra>
// kernel: cnn_forward.1
= control target key start
LH: loop header
LB: loop body
LE: loop exit
PB: predicated region body
PF: predicated region fallthrough
CT: control target
= control target key end

     0   :  { %14 = vsyncpa [#allocation3], 0  ;;  %s14004_s0 = inlined_call_operand.vmem [shape: bf16[2,4,7,32], index: 0, kind: input, shape index: {}]   ;;  %s14005_s1 = inlined_call_operand.hbm [shape: bf16[5,32,1536], index: 1, kind: input, shape index: {}]   ;;  %s14006_s2 = inlined_call_operand.vmem [shape: f32[1,1536], index: 2, kind: input, shape index: {}]   ;;  %s14007_s3 = inlined_call_operand.hbm [shape: bf16[25,128,128], index: 3, kind: input, shape index: {}]   ;;  %s14008_s4 = inlined_call_operand.vmem [shape: f32[1,128], index: 4, kind: input, shape index: {}]   ;;  %s14009_s5 = inlined_call_operand.hbm [shape: bf16[2048,128], index: 5, kind: input, shape index: {}]   ;;  %s14010_s6 = inlined_call_operand.vmem [shape: f32[1,128], index: 6, kind: input, shape index: {}]   ;;  %s14011_s7 = inlined_call_operand.vmem [shape: bf16[128,128], index: 7, kind: input, shape index: {}]   ;;  %s14012_s8 = inlined_call_operand.vmem [shape: f32[1,128], index: 8, kind: input, shape index: {}]   ;;  %s14013_s9 = inlined_call_operand.hbm [shape: f32[2,1,128], index: 9, kind: output, shape index: {}]  }
   0x1   :  { %15 = vsyncpa [#allocation6], 0 }
   0x2   :  { %16 = vsyncpa [#allocation4], 0 }
   0x3   :  { %18 = vsyncpa [#allocation4 + $0x1], 0  ;;  %s11955_s30 = smov 0   ;;  %s11957_s10 = smov 0  }
   0x4   :  { %s11959_s11 = smov 0   ;;  %s11961_s12 = smov 0  }
   0x5 LB: > { %s11976_s13 = sadd.s32 4294967295, %s11891_s12   ;;  %s9543_s14 = sadd.s32 4294967294, %s11891_s12   ;;  %s11891_s12 = sphi %s11961_s12, %s14232_s12   ;;  %s11887_s11 = sphi %s11959_s11, %s14231_s11   ;;  %s11883_s10 = sphi %s11957_s10, %s14230_s10   ;;  %s11879_s30 = sphi %s11955_s30, %s14229_s30  }
   0x6   : > { %s11980_s15 = sadd.s32 1, %s11891_s12   ;;  %s225_s16 = sadd.s32 1, %s11887_s11 }
   0x7   : > { %s222_s17 = ssub.s32 %s11891_s12, %s11980_s15  ;;  %p235_p0 = scmp.ne.s32.totalorder %s11887_s11, %s11883_s10 }
   0x8   : > { %p223_p1 = scmp.eq.s32.totalorder %s222_s17, 0  ;;  %p236_p2 = scmp.eq.s32.totalorder %s11976_s13, 1 }
   0x9   : > { %p241_p3 = scmp.ne.s32.totalorder %s11883_s10, %s11879_s30  ;;  %p242_p4 = scmp.eq.s32.totalorder %s9543_s14, 1 }
   0xa   : > { %s11991_s18 = scalar_select %p223_p1, %s11887_s11, %s225_s16  }
   0xb   : > { %p11993_p5 = por %p236_p2, %p235_p0  ;;  %p11997_p6 = por %p242_p4, %p241_p3 }
   0xc   : > { %14079 = sst [smem:[#allocation12_spill]] %s11991_s18  ;;  %p9544_p7 = scmp.ge.s32.totalorder %s11891_s12, 1 }
   0xd   : > { %p249_p8 = scmp.lt.s32.totalorder %s11891_s12, 3  ;;  %p11050_p9 = scmp.eq.s32.totalorder %s11976_s13, 0 }
   0xe   : > { %s11893_s22 = smov [#allocation5]   ;;  %s11894_s25 = smov [#allocation2]  }
   0xf   : > { %p12004_p10 = pnand %p9544_p7, %p249_p8  ;;  %s277_s23 = sshll.u32 %s11893_s22, 4  ;;  %s278_s23 = int_to_ptr.vmem [resolvable:$true] %s277_s23 }
  0x10   : > { %s261_s26 = sshll.u32 %s11894_s25, 4  ;;  %s11756_s27 = scalar_lea.vmem %s278_s23, 25600  ;;  %s262_s26 = int_to_ptr.vmem [resolvable:$true] %s261_s26 }
  0x11   : > { %p11036_p11 = pneg %p12004_p10  ;;  %p11757_p0 = scmp.ne.s32.totalorder %s278_s23, %s11756_s27 }
  0x12   : > { %p11764_p3 = scmp.lt.s32.totalorder %s278_s23, %s278_s23  ;;  %p11765_p4 = scmp.lt.s32.totalorder %s11756_s27, %s11756_s27 }
  0x13   : > { %p12012_p12 = pnand %p11050_p9, %p11036_p11 }
  0x14   : > { %p11766_p7 = por %p11765_p4, %p11764_p3 }
  0x15   : > { %p11747_p13 = pneg %p12012_p12 }
  0x17   : > { %p11759_p1 = pnand %p11757_p0, %p11747_p13 }
  0x19   : > { %p11760_p2 = pneg %p11759_p1 }
  0x1b   : > { %p11767_p8 = pnand %p11766_p7, %p11760_p2 }
  0x1d   : > { %11770 = shalt.err (!%p11767_p8)
}
  0x1e   : > { %s11895_s28 = smov 64   ;;  %s11896_s29 = smov 4  }
  0x1f   : > { %11042 = dma.hbm_to_vmem [thread:$0]  (!%p12012_p12), %s14007_s3, 25600, %s278_s23, [#allocation6], %s11895_s28, %s11895_s28, %s11896_s29  }
  0x20   : > { %s11782_s17 = scalar_lea.vmem %s262_s26, 15360  ;;  %p11790_p2 = scmp.lt.s32.totalorder %s262_s26, %s262_s26 }
  0x21   : > { %p11783_p11 = scmp.ne.s32.totalorder %s262_s26, %s11782_s17  ;;  %p11791_p3 = scmp.lt.s32.totalorder %s11782_s17, %s11782_s17 }
  0x23   : > { %p11785_p0 = pnand %p11783_p11, %p11747_p13  ;;  %p11792_p4 = por %p11791_p3, %p11790_p2 }
  0x25   : > { %p11786_p1 = pneg %p11785_p0 }
  0x27   : > { %p11793_p7 = pnand %p11792_p4, %p11786_p1 }
  0x29   : > { %11796 = shalt.err (!%p11793_p7)
}
  0x2a   : > { %s11897_s22 = smov 768   ;;  %s11898_s25 = smov 48  }
  0x2b   : > { %11039 = dma.hbm_to_vmem [thread:$0]  (!%p12012_p12), %s14005_s1, 15360, %s262_s26, [#allocation3], %s11897_s22, %s11897_s22, %s11898_s25  }
  0x2c   : > { %s11899_s23 = smov [#allocation7]  }
  0x2d   : > { %s293_s14 = sshll.u32 %s11899_s23, 4  ;;  %s294_s14 = int_to_ptr.vmem [resolvable:$true] %s293_s14 }
  0x2e   : > { %s11808_s16 = scalar_lea.vmem %s294_s14, 16384  ;;  %p11816_p1 = scmp.lt.s32.totalorder %s294_s14, %s294_s14 }
  0x2f   : > { %p11809_p8 = scmp.ne.s32.totalorder %s294_s14, %s11808_s16  ;;  %p11817_p2 = scmp.lt.s32.totalorder %s11808_s16, %s11808_s16 }
  0x31   : > { %p11811_p11 = pnand %p11809_p8, %p11747_p13  ;;  %p11818_p3 = por %p11817_p2, %p11816_p1 }
  0x33   : > { %p11812_p0 = pneg %p11811_p11 }
  0x35   : > { %p11819_p4 = pnand %p11818_p3, %p11812_p0 }
  0x37   : > { %11822 = shalt.err (!%p11819_p4)
}
  0x38   : > { %11045 = dma.hbm_to_vmem [thread:$0]  (!%p12012_p12), %s14009_s5, 16384, %s294_s14, [#allocation6], %s11895_s28, %s11895_s28, %s11896_s29  }
  0x39   : > { %326 = sbr.rel (%p12004_p10) target bundleno = 1872 (0x750), region = 56 }
  0x3e   : > { %11866 = dma.done.wait (%p11050_p9), [#allocation3], 15360  }
  0x3f   : > { %11868 = vsyncadd (%p11050_p9), [#allocation3], 4294951936 }
  0x40   : > { %11870 = dma.done.wait (%p11050_p9), [#allocation6], 41984  }
  0x41   : > { %11872 = vsyncadd (%p11050_p9), [#allocation6], 4294925312  ;;  %p369_p13 = scmp.lt.s32.totalorder %s11976_s13, 1  ;;  %v11900_v0 = vmov 0   ;;  %v11100_v1 = vld [vmem:[#allocation2 + $0x124] ss:$48 sps:$4 sm:$0xff]  }
  0x42   : > { %586 = vmatprep.mubr.bf16.mxu0 %v11900_v0  ;;  %627 = vmatprep.mubr.bf16.mxu1 %v11900_v0  ;;  %v11102_v2 = vld [vmem:[#allocation2 + $0x12c] ss:$48 sps:$4 sm:$0xff]   ;;  %v11104_v3 = vld [vmem:[#allocation2 + $0x120] ss:$48 sps:$4 sm:$0xff]   ;;  %v11105_v4 = vld [vmem:[#allocation2 + $0x128] ss:$48 sps:$4 sm:$0xff]  }
  0x43   : > { %s370_s21 = scalar_select %p369_p13, %s11976_s13, 1  ;;  %566 = vmatprep.subr.bf16.mxu0 %v11100_v1  ;;  %607 = vmatprep.subr.bf16.mxu1 %v11102_v2  ;;  %v11106_v5 = vld [vmem:[#allocation2 + $0xc4] ss:$48 sps:$4 sm:$0xff]   ;;  %v11108_v6 = vld [vmem:[#allocation2 + $0xcc] ss:$48 sps:$4 sm:$0xff]   ;;  %vm550_vm0 = vcmask 261120  }
  0x44   : > { %567 = vmatpush1.bf16.msra.mxu0 %v11104_v3  ;;  %608 = vmatpush1.bf16.msra.mxu1 %v11105_v4  ;;  %v11110_v7 = vld [vmem:[#allocation2 + $0xc0] ss:$48 sps:$4 sm:$0xff]   ;;  %v11111_v8 = vld [vmem:[#allocation2 + $0xc8] ss:$48 sps:$4 sm:$0xff]   ;;  %v11114_v11 = vld [vmem:[#allocation2 + $0x134] ss:$48 sps:$4 sm:$0xff]  }
  0x45   : > { %s10091_s24 = sshll.u32 %s370_s21, 4  ;;  %568 = vmatprep.subr.bf16.mxu0 %v11106_v5  ;;  %609 = vmatprep.subr.bf16.mxu1 %v11108_v6  ;;  %v11112_v10 = vld [vmem:[#allocation2 + $0x130] ss:$48 sps:$4 sm:$0xff]   ;;  %v11115_v12 = vld [vmem:[#allocation2 + $0x138] ss:$48 sps:$4 sm:$0xff]   ;;  %vm11902_vm1 = vmmov 0  }
  0x46   : > { %s12065_s17 = scalar_lea.vmem %s14004_s0, %s10091_s24  ;;  %v11117_v13 = vld [vmem:[#allocation2 + $0x13c] ss:$48 sps:$4 sm:$0xff]   ;;  %v11120_v14 = vld [vmem:[#allocation2 + $0xd4] ss:$48 sps:$4 sm:$0xff]   ;;  %v11118_v16 = vld [vmem:[#allocation2 + $0xd0] ss:$48 sps:$4 sm:$0xff]  }
  0x47   : > { %v376_v9 = vld [vmem:[%s12065_s17 + $0x4] sm:$0xf]  ;;  %v11123_v15 = vld [vmem:[#allocation2 + $0xdc] ss:$48 sps:$4 sm:$0xff]   ;;  %v11121_v17 = vld [vmem:[#allocation2 + $0xd8] ss:$48 sps:$4 sm:$0xff]  }
  0x48   : > { %569 = vmatpush1.bf16.msra.mxu0 %v11110_v7  ;;  %610 = vmatpush1.bf16.msra.mxu1 %v11111_v8  ;;  %v11126_v18 = vld [vmem:[#allocation2 + $0x144] ss:$48 sps:$4 sm:$0xff]   ;;  %v11129_v19 = vld [vmem:[#allocation2 + $0x14c] ss:$48 sps:$4 sm:$0xff]   ;;  %v11124_v20 = vld [vmem:[#allocation2 + $0x140] ss:$48 sps:$4 sm:$0xff]  }
  0x49   : > { %648 = vmatprep.subr.bf16.mxu0 %v11114_v11  ;;  %689 = vmatprep.subr.bf16.mxu1 %v11117_v13  ;;  %v11127_v21 = vld [vmem:[#allocation2 + $0x148] ss:$48 sps:$4 sm:$0xff]   ;;  %v11132_v22 = vld [vmem:[#allocation2 + $0xe4] ss:$48 sps:$4 sm:$0xff]   ;;  %v11135_v23 = vld [vmem:[#allocation2 + $0xec] ss:$48 sps:$4 sm:$0xff]  }
  0x4a   : > { %v11130_v24 = vld [vmem:[#allocation2 + $0xe0] ss:$48 sps:$4 sm:$0xff]   ;;  %v11133_v25 = vld [vmem:[#allocation2 + $0xe8] ss:$48 sps:$4 sm:$0xff]   ;;  %v11138_v26 = vld [vmem:[#allocation2 + $0x64] ss:$48 sps:$4 sm:$0xff]  }
  0x4b   : > { %9579 = vmatmul.mubr.msk.bf16.vlgmr.msra.gmra.mxu0 %vm550_vm0, %v376_v9  ;;  %9580 = vmatmul.mubr.msk.bf16.vlgmr.msra.gmra.mxu1 %vm550_vm0, %v376_v9  ;;  %v11141_v27 = vld [vmem:[#allocation2 + $0x6c] ss:$48 sps:$4 sm:$0xff]   ;;  %v11136_v28 = vld [vmem:[#allocation2 + $0x60] ss:$48 sps:$4 sm:$0xff]   ;;  %v11139_v29 = vld [vmem:[#allocation2 + $0x68] ss:$48 sps:$4 sm:$0xff]  }
  0x4c   : > { %649 = vmatpush1.bf16.msra.mxu0 %v11112_v10  ;;  %690 = vmatpush1.bf16.msra.mxu1 %v11115_v12  ;;  %v11144_v30 = vld [vmem:[#allocation2 + $0x4] ss:$48 sps:$4 sm:$0xff]   ;;  %v11147_v31 = vld [vmem:[#allocation2 + $0xc] ss:$48 sps:$4 sm:$0xff]   ;;  %v11142_v32 = vld [vmem:[#allocation2] ss:$48 sps:$4 sm:$0xff]  }
  0x4d   : > { %650 = vmatprep.subr.bf16.mxu0 %v11120_v14  ;;  %691 = vmatprep.subr.bf16.mxu1 %v11123_v15  ;;  %v11145_v33 = vld [vmem:[#allocation2 + $0x8] ss:$48 sps:$4 sm:$0xff]   ;;  %v11151_v34 = vld [vmem:[#allocation2 + $0x74] ss:$48 sps:$4 sm:$0xff]   ;;  %v11154_v35 = vld [vmem:[#allocation2 + $0x7c] ss:$48 sps:$4 sm:$0xff]  }
  0x4e   : > { %668 = vmatprep.mubr.bf16.mxu0 %v11900_v0  ;;  %709 = vmatprep.mubr.bf16.mxu1 %v11900_v0  ;;  %v12081_v36 = vld [vmem:[%s12065_s17] sm:$0xf]  ;;  %v11152_v38 = vld [vmem:[#allocation2 + $0x78] ss:$48 sps:$4 sm:$0xff]   ;;  %v11157_v39 = vld [vmem:[#allocation2 + $0x14] ss:$48 sps:$4 sm:$0xff]  }
  0x4f   : > { %v11149_v37 = vld [vmem:[#allocation2 + $0x70] ss:$48 sps:$4 sm:$0xff]   ;;  %v11160_v40 = vld [vmem:[#allocation2 + $0x1c] ss:$48 sps:$4 sm:$0xff]   ;;  %v11158_v42 = vld [vmem:[#allocation2 + $0x18] ss:$48 sps:$4 sm:$0xff]  }
  0x50   : > { %651 = vmatpush1.bf16.msra.mxu0 %v11118_v16  ;;  %692 = vmatpush1.bf16.msra.mxu1 %v11121_v17  ;;  %v11155_v41 = vld [vmem:[#allocation2 + $0x10] ss:$48 sps:$4 sm:$0xff]   ;;  %v11163_v43 = vld [vmem:[#allocation2 + $0x84] ss:$48 sps:$4 sm:$0xff]   ;;  %v11166_v44 = vld [vmem:[#allocation2 + $0x8c] ss:$48 sps:$4 sm:$0xff]   ;;  %v12118_v17 = vcombine.low %v12081_v36, %v12081_v36 }
  0x51   : > { %730 = vmatprep.subr.bf16.mxu0 %v11126_v18  ;;  %771 = vmatprep.subr.bf16.mxu1 %v11129_v19  ;;  %v11161_v45 = vld [vmem:[#allocation2 + $0x80] ss:$48 sps:$4 sm:$0xff]   ;;  %v11164_v46 = vld [vmem:[#allocation2 + $0x88] ss:$48 sps:$4 sm:$0xff]   ;;  %v11169_v47 = vld [vmem:[#allocation2 + $0x24] ss:$48 sps:$4 sm:$0xff]  }
  0x52   : > { %v11172_v48 = vld [vmem:[#allocation2 + $0x2c] ss:$48 sps:$4 sm:$0xff]   ;;  %v11167_v49 = vld [vmem:[#allocation2 + $0x20] ss:$48 sps:$4 sm:$0xff]   ;;  %v11170_v50 = vld [vmem:[#allocation2 + $0x28] ss:$48 sps:$4 sm:$0xff]  }
  0x53   : > { %9581 = vmatmul.mubr.msk.bf16.vlgmr.msra.gmra.mxu0 %vm550_vm0, %v376_v9  ;;  %9582 = vmatmul.mubr.msk.bf16.vlgmr.msra.gmra.mxu1 %vm550_vm0, %v376_v9  ;;  %v11175_v51 = vld [vmem:[#allocation2 + $0x1e4] ss:$48 sps:$4 sm:$0xff]   ;;  %v11178_v52 = vld [vmem:[#allocation2 + $0x1ec] ss:$48 sps:$4 sm:$0xff]   ;;  %v11173_v53 = vld [vmem:[#allocation2 + $0x1e0] ss:$48 sps:$4 sm:$0xff]  }
  0x54   : > { %731 = vmatpush1.bf16.msra.mxu0 %v11124_v20  ;;  %772 = vmatpush1.bf16.msra.mxu1 %v11127_v21  ;;  %v11176_v54 = vld [vmem:[#allocation2 + $0x1e8] ss:$48 sps:$4 sm:$0xff]   ;;  %v11181_v55 = vld [vmem:[#allocation2 + $0x184] ss:$48 sps:$4 sm:$0xff]   ;;  %v11184_v56 = vld [vmem:[#allocation2 + $0x18c] ss:$48 sps:$4 sm:$0xff]  }
  0x55   : > { %732 = vmatprep.subr.bf16.mxu0 %v11132_v22  ;;  %773 = vmatprep.subr.bf16.mxu1 %v11135_v23  ;;  %v11179_v57 = vld [vmem:[#allocation2 + $0x180] ss:$48 sps:$4 sm:$0xff]   ;;  %v11182_v58 = vld [vmem:[#allocation2 + $0x188] ss:$48 sps:$4 sm:$0xff]   ;;  %v11187_v59 = vld [vmem:[#allocation2 + $0x1f4] ss:$48 sps:$4 sm:$0xff]  }
  0x56   : > { %750 = vmatprep.mubr.bf16.mxu0 %v11900_v0  ;;  %791 = vmatprep.mubr.bf16.mxu1 %v11900_v0  ;;  %v11190_v60 = vld [vmem:[#allocation2 + $0x1fc] ss:$48 sps:$4 sm:$0xff]   ;;  %v12100_v61 = vld [vmem:[%s12065_s17 + $0x8] sm:$0xf]  ;;  %v11185_v62 = vld [vmem:[#allocation2 + $0x1f0] ss:$48 sps:$4 sm:$0xff]  }
  0x57   : > { %v11188_v63 = vld [vmem:[#allocation2 + $0x1f8] ss:$48 sps:$4 sm:$0xff]   ;;  %v11193_v1 = vld [vmem:[#allocation2 + $0x194] ss:$48 sps:$4 sm:$0xff]   ;;  %v11196_v2 = vld [vmem:[#allocation2 + $0x19c] ss:$48 sps:$4 sm:$0xff]  }
  0x58   : > { %733 = vmatpush1.bf16.msra.mxu0 %v11130_v24  ;;  %774 = vmatpush1.bf16.msra.mxu1 %v11133_v25  ;;  %v11191_v3 = vld [vmem:[#allocation2 + $0x190] ss:$48 sps:$4 sm:$0xff]   ;;  %v11194_v4 = vld [vmem:[#allocation2 + $0x198] ss:$48 sps:$4 sm:$0xff]   ;;  %v11199_v5 = vld [vmem:[#allocation2 + $0x204] ss:$48 sps:$4 sm:$0xff]  }
  0x59   : > { %935 = vmatprep.subr.bf16.mxu0 %v11138_v26  ;;  %976 = vmatprep.subr.bf16.mxu1 %v11141_v27  ;;  %v11202_v6 = vld [vmem:[#allocation2 + $0x20c] ss:$48 sps:$4 sm:$0xff]   ;;  %v11197_v7 = vld [vmem:[#allocation2 + $0x200] ss:$48 sps:$4 sm:$0xff]   ;;  %v11200_v8 = vld [vmem:[#allocation2 + $0x208] ss:$48 sps:$4 sm:$0xff]  }
  0x5a   : > { %v11208_v10 = vld [vmem:[#allocation2 + $0x1ac] ss:$48 sps:$4 sm:$0xff]   ;;  %v11203_v11 = vld [vmem:[#allocation2 + $0x1a0] ss:$48 sps:$4 sm:$0xff]   ;;  %v11206_v12 = vld [vmem:[#allocation2 + $0x1a8] ss:$48 sps:$4 sm:$0xff]  }
  0x5b   : > { %9583 = vmatmul.mubr.msk.bf16.vlgmr.msra.gmra.mxu0 %vm550_vm0, %v376_v9  ;;  %9584 = vmatmul.mubr.msk.bf16.vlgmr.msra.gmra.mxu1 %vm550_vm0, %v376_v9  ;;  %v11205_v9 = vld [vmem:[#allocation2 + $0x1a4] ss:$48 sps:$4 sm:$0xff]   ;;  %v11214_v14 = vld [vmem:[#allocation2 + $0x2ac] ss:$48 sps:$4 sm:$0xff]   ;;  %v11209_v15 = vld [vmem:[#allocation2 + $0x2a0] ss:$48 sps:$4 sm:$0xff]  }
  0x5c   : > { %936 = vmatpush1.bf16.msra.mxu0 %v11136_v28  ;;  %977 = vmatpush1.bf16.msra.mxu1 %v11139_v29  ;;  %v11211_v13 = vld [vmem:[#allocation2 + $0x2a4] ss:$48 sps:$4 sm:$0xff]   ;;  %v11212_v16 = vld [vmem:[#allocation2 + $0x2a8] ss:$48 sps:$4 sm:$0xff]   ;;  %v11220_v19 = vld [vmem:[#allocation2 + $0x24c] ss:$48 sps:$4 sm:$0xff]  }
  0x5d   : > { %937 = vmatprep.subr.bf16.mxu0 %v11144_v30  ;;  %978 = vmatprep.subr.bf16.mxu1 %v11147_v31  ;;  %v11217_v18 = vld [vmem:[#allocation2 + $0x244] ss:$48 sps:$4 sm:$0xff]   ;;  %v11215_v20 = vld [vmem:[#allocation2 + $0x240] ss:$48 sps:$4 sm:$0xff]   ;;  %v11218_v21 = vld [vmem:[#allocation2 + $0x248] ss:$48 sps:$4 sm:$0xff]  }
  0x5e   : > { %955 = vmatprep.mubr.bf16.mxu0 %v11900_v0  ;;  %996 = vmatprep.mubr.bf16.mxu1 %v11900_v0  ;;  %v2012_v22 = vshll.u32 %v12118_v17, 16  ;;  %v11223_v23 = vld [vmem:[#allocation2 + $0x2b4] ss:$48 sps:$4 sm:$0xff]   ;;  %v11226_v24 = vld [vmem:[#allocation2 + $0x2bc] ss:$48 sps:$4 sm:$0xff]   ;;  %v2010_v28 = vshrl.u32 %v12118_v17, 16 }
  0x5f   : > { %v12126_v25 = vld [vmem:[%s12065_s17 + $0xc] sm:$0xf]  ;;  %v11221_v26 = vld [vmem:[#allocation2 + $0x2b0] ss:$48 sps:$4 sm:$0xff]   ;;  %v11224_v27 = vld [vmem:[#allocation2 + $0x2b8] ss:$48 sps:$4 sm:$0xff]  }
  0x60   : > { %938 = vmatpush1.bf16.msra.mxu0 %v11142_v32  ;;  %979 = vmatpush1.bf16.msra.mxu1 %v11145_v33  ;;  %v2014_v29 = vrot.slane %v2012_v22, 1  ;;  %v11229_v30 = vld [vmem:[#allocation2 + $0x254] ss:$48 sps:$4 sm:$0xff]   ;;  %v11232_v31 = vld [vmem:[#allocation2 + $0x25c] ss:$48 sps:$4 sm:$0xff]   ;;  %vm4897_vm15 = vcmask 1040384  }
  0x61   : > { %1017 = vmatprep.subr.bf16.mxu0 %v11151_v34  ;;  %1058 = vmatprep.subr.bf16.mxu1 %v11154_v35  ;;  %v11227_v32 = vld [vmem:[#allocation2 + $0x250] ss:$48 sps:$4 sm:$0xff]   ;;  %v11230_v33 = vld [vmem:[#allocation2 + $0x258] ss:$48 sps:$4 sm:$0xff]   ;;  %v11235_v34 = vld [vmem:[#allocation2 + $0x2c4] ss:$48 sps:$4 sm:$0xff]  }
  0x62   : > { %v11238_v35 = vld [vmem:[#allocation2 + $0x2cc] ss:$48 sps:$4 sm:$0xff]   ;;  %v11635_v17 = vld [vmem:[#allocation2 + $0xd4] ss:$48 sps:$4 sm:$0xff]   ;;  %vm2495_vm2 = vsmask.f32 256 }
  0x63   : > { %9609 = vmatmul.mubr.msk.bf16.vlgmr.msra.gmra.mxu0 %vm550_vm0, %v12081_v36  ;;  %9610 = vmatmul.mubr.msk.bf16.vlgmr.msra.gmra.mxu1 %vm550_vm0, %v12081_v36  ;;  %v11640_v22 = vld [vmem:[#allocation2 + $0x14c] ss:$48 sps:$4 sm:$0xff]   ;;  %vm2500_vm3 = vsmask.f32 770  ;;  %vm2503_vm4 = vsmask.f32 1284 }
  0x64   : > { %1018 = vmatpush1.bf16.msra.mxu0 %v11149_v37  ;;  %1059 = vmatpush1.bf16.msra.mxu1 %v11152_v38  ;;  %v11236_v37 = vld [vmem:[#allocation2 + $0x2c8] ss:$48 sps:$4 sm:$0xff]   ;;  %v11241_v38 = vld [vmem:[#allocation2 + $0x264] ss:$48 sps:$4 sm:$0xff]   ;;  %vm2509_vm5 = vsmask.f32 1798 }
  0x65   : > { %1019 = vmatprep.subr.bf16.mxu0 %v11157_v39  ;;  %1060 = vmatprep.subr.bf16.mxu1 %v11160_v40  ;;  %v11244_v39 = vld [vmem:[#allocation2 + $0x26c] ss:$48 sps:$4 sm:$0xff]   ;;  %v11239_v40 = vld [vmem:[#allocation2 + $0x260] ss:$48 sps:$4 sm:$0xff]   ;;  %vm2512_vm6 = vsmask.f32 2312 }
  0x66   : > { %1037 = vmatprep.mubr.bf16.mxu0 %v11900_v0  ;;  %1078 = vmatprep.mubr.bf16.mxu1 %v11900_v0  ;;  %vm2518_vm7 = vsmask.f32 2826  ;;  %vm4494_vm8 = vsmask.f32 1280  ;;  %vm4495_vm9 = vsmask.f32 3336 }
  0x67   : > { %vm4497_vm10 = vsmask.f32 5392  ;;  %vm4499_vm11 = vsmask.f32 7448  ;;  %vm12787_vm12 = vmor %vm4494_vm8, %vm4495_vm9  ;;  %vm4900_vm8 = vcmask 1044484   ;;  %vm4902_vm9 = vcmask 1046534  }
  0x68   : > { %1020 = vmatpush1.bf16.msra.mxu0 %v11155_v41  ;;  %1061 = vmatpush1.bf16.msra.mxu1 %v11158_v42  ;;  %v11242_v41 = vld [vmem:[#allocation2 + $0x268] ss:$48 sps:$4 sm:$0xff]   ;;  %v11247_v42 = vld [vmem:[#allocation2 + $0x364] ss:$48 sps:$4 sm:$0xff]   ;;  %vm12804_vm13 = vmor %vm12787_vm12, %vm4497_vm10  ;;  %s367_s22 = sand.u32 1, %s11883_s10   ;;  %s10088_s25 = sshll.u32 %s11976_s13, 4 }
  0x69   : > { %1099 = vmatprep.subr.bf16.mxu0 %v11163_v43  ;;  %1140 = vmatprep.subr.bf16.mxu1 %v11166_v44  ;;  %v11250_v43 = vld [vmem:[#allocation2 + $0x36c] ss:$48 sps:$4 sm:$0xff]   ;;  %v11245_v44 = vld [vmem:[#allocation2 + $0x360] ss:$48 sps:$4 sm:$0xff]   ;;  %vm12821_vm14 = vmor %vm12804_vm13, %vm4499_vm11  ;;  %s368_s27 = scalar_lea.vmem [#allocation8], %s367_s22  ;;  %s9455_s18 = scalar_lea.hbm %s14013_s9, %s10088_s25 }
  0x6a   : > { %s9457_s23 = sshll.u32 %s368_s27, 4  ;;  %s9445_s26 = scalar_lea.sflag [#allocation4], %s367_s22  ;;  %s9458_s23 = int_to_ptr.vmem [resolvable:$true] %s9457_s23 }
  0x6b   : > { %9611 = vmatmul.mubr.msk.bf16.vlgmr.msra.gmra.mxu0 %vm550_vm0, %v12081_v36  ;;  %9612 = vmatmul.mubr.msk.bf16.vlgmr.msra.gmra.mxu1 %vm550_vm0, %v12081_v36  ;;  %s11823_s21 = scalar_lea.vmem %s9458_s23, 16  ;;  %s11904_s24 = smov [#allocation8]  }
  0x6c   : > { %1100 = vmatpush1.bf16.msra.mxu0 %v11161_v45  ;;  %1141 = vmatpush1.bf16.msra.mxu1 %v11164_v46  ;;  %v11248_v45 = vld [vmem:[#allocation2 + $0x368] ss:$48 sps:$4 sm:$0xff]   ;;  %v11253_v46 = vld [vmem:[#allocation2 + $0x304] ss:$48 sps:$4 sm:$0xff]   ;;  %p11824_p9 = scmp.ne.s32.totalorder %s9458_s23, %s11823_s21  ;;  %s11827_s28 = sshll.u32 %s11904_s24, 4  ;;  %s11828_s28 = int_to_ptr.vmem [resolvable:$false] %s11827_s28 }
  0x6d   : > { %1101 = vmatprep.subr.bf16.mxu0 %v11169_v47  ;;  %1142 = vmatprep.subr.bf16.mxu1 %v11172_v48  ;;  %v11256_v47 = vld [vmem:[#allocation2 + $0x30c] ss:$48 sps:$4 sm:$0xff]   ;;  %v11251_v48 = vld [vmem:[#allocation2 + $0x300] ss:$48 sps:$4 sm:$0xff]   ;;  %s11829_s13 = scalar_lea.vmem %s11828_s28, 32  ;;  %p11830_p7 = scmp.lt.s32.totalorder %s9458_s23, %s11828_s28 }
  0x6e   : > { %1119 = vmatprep.mubr.bf16.mxu0 %v11900_v0  ;;  %1160 = vmatprep.mubr.bf16.mxu1 %v11900_v0  ;;  %p11825_p10 = pnand %p11824_p9, %p11993_p5  ;;  %p11831_p8 = scmp.lt.s32.totalorder %s11829_s13, %s11823_s21 }
  0x70   : > { %1102 = vmatpush1.bf16.msra.mxu0 %v11167_v49  ;;  %1143 = vmatpush1.bf16.msra.mxu1 %v11170_v50  ;;  %v11254_v49 = vld [vmem:[#allocation2 + $0x308] ss:$48 sps:$4 sm:$0xff]   ;;  %v11259_v50 = vld [vmem:[#allocation2 + $0x374] ss:$48 sps:$4 sm:$0xff]   ;;  %p11826_p12 = pneg %p11825_p10  ;;  %p11832_p11 = por %p11831_p8, %p11830_p7 }
  0x71   : > { %1329 = vmatprep.subr.bf16.mxu0 %v11175_v51  ;;  %1370 = vmatprep.subr.bf16.mxu1 %v11178_v52  ;;  %v11262_v51 = vld [vmem:[#allocation2 + $0x37c] ss:$48 sps:$4 sm:$0xff]   ;;  %v11257_v52 = vld [vmem:[#allocation2 + $0x370] ss:$48 sps:$4 sm:$0xff]  }
  0x72   : > { %p11833_p0 = pnand %p11832_p11, %p11826_p12 }
  0x73   : > { %9613 = vmatmul.mubr.msk.bf16.vlgmr.msra.gmra.mxu0 %vm550_vm0, %v12081_v36  ;;  %9614 = vmatmul.mubr.msk.bf16.vlgmr.msra.gmra.mxu1 %vm550_vm0, %v12081_v36  ;;  %v11233_v36 = vld [vmem:[#allocation2 + $0x2c0] ss:$48 sps:$4 sm:$0xff]  }
  0x74   : > { %1330 = vmatpush1.bf16.msra.mxu0 %v11173_v53  ;;  %1371 = vmatpush1.bf16.msra.mxu1 %v11176_v54  ;;  %v11260_v53 = vld [vmem:[#allocation2 + $0x378] ss:$48 sps:$4 sm:$0xff]   ;;  %v12149_v54 = vor.u32 %v2014_v29, %v2010_v28  ;;  %v11645_v28 = vld [vmem:[#allocation2 + $0xe0] ss:$48 sps:$4 sm:$0xff]  }
  0x75   : > { %1331 = vmatprep.subr.bf16.mxu0 %v11181_v55  ;;  %1372 = vmatprep.subr.bf16.mxu1 %v11184_v56  ;;  %v11265_v55 = vld [vmem:[#allocation2 + $0x314] ss:$48 sps:$4 sm:$0xff]   ;;  %v11268_v56 = vld [vmem:[#allocation2 + $0x31c] ss:$48 sps:$4 sm:$0xff]   ;;  %v11646_v29 = vld [vmem:[#allocation2 + $0xe8] ss:$48 sps:$4 sm:$0xff]  }
  0x76   : > { %1349 = vmatprep.mubr.bf16.mxu0 %v11900_v0  ;;  %1390 = vmatprep.mubr.bf16.mxu1 %v11900_v0 }
  0x78   : > { %1332 = vmatpush1.bf16.msra.mxu0 %v11179_v57  ;;  %1373 = vmatpush1.bf16.msra.mxu1 %v11182_v58  ;;  %v11263_v57 = vld [vmem:[#allocation2 + $0x310] ss:$48 sps:$4 sm:$0xff]   ;;  %v11266_v58 = vld [vmem:[#allocation2 + $0x318] ss:$48 sps:$4 sm:$0xff]  }
  0x79   : > { %1411 = vmatprep.subr.bf16.mxu0 %v11187_v59  ;;  %1452 = vmatprep.subr.bf16.mxu1 %v11190_v60  ;;  %v11271_v59 = vld [vmem:[#allocation2 + $0x384] ss:$48 sps:$4 sm:$0xff]   ;;  %v11274_v60 = vld [vmem:[#allocation2 + $0x38c] ss:$48 sps:$4 sm:$0xff]  }
  0x7b   : > { %9639 = vmatmul.mubr.msk.bf16.vlgmr.msra.gmra.mxu0 %vm550_vm0, %v12100_v61  ;;  %9640 = vmatmul.mubr.msk.bf16.vlgmr.msra.gmra.mxu1 %vm550_vm0, %v12100_v61 }
  0x7c   : > { %1412 = vmatpush1.bf16.msra.mxu0 %v11185_v62  ;;  %1453 = vmatpush1.bf16.msra.mxu1 %v11188_v63  ;;  %v11269_v62 = vld [vmem:[#allocation2 + $0x380] ss:$48 sps:$4 sm:$0xff]   ;;  %v11272_v63 = vld [vmem:[#allocation2 + $0x388] ss:$48 sps:$4 sm:$0xff]  }
  0x7d   : > { %1413 = vmatprep.subr.bf16.mxu0 %v11193_v1  ;;  %1454 = vmatprep.subr.bf16.mxu1 %v11196_v2  ;;  %v11277_v1 = vld [vmem:[#allocation2 + $0x324] ss:$48 sps:$4 sm:$0xff]   ;;  %v11280_v2 = vld [vmem:[#allocation2 + $0x32c] ss:$48 sps:$4 sm:$0xff]  }
  0x7e   : > { %1431 = vmatprep.mubr.bf16.mxu0 %v11900_v0  ;;  %1472 = vmatprep.mubr.bf16.mxu1 %v11900_v0 }
  0x80   : > { %1414 = vmatpush1.bf16.msra.mxu0 %v11191_v3  ;;  %1455 = vmatpush1.bf16.msra.mxu1 %v11194_v4  ;;  %v11275_v3 = vld [vmem:[#allocation2 + $0x320] ss:$48 sps:$4 sm:$0xff]   ;;  %v11278_v4 = vld [vmem:[#allocation2 + $0x328] ss:$48 sps:$4 sm:$0xff]  }
  0x81   : > { %1493 = vmatprep.subr.bf16.mxu0 %v11199_v5  ;;  %1534 = vmatprep.subr.bf16.mxu1 %v11202_v6  ;;  %v11623_v5 = vld [vmem:[#allocation2 + $0x124] ss:$48 sps:$4 sm:$0xff]   ;;  %v11624_v6 = vld [vmem:[#allocation2 + $0x12c] ss:$48 sps:$4 sm:$0xff]  }
  0x83   : > { %9641 = vmatmul.mubr.msk.bf16.vlgmr.msra.gmra.mxu0 %vm550_vm0, %v12100_v61  ;;  %9642 = vmatmul.mubr.msk.bf16.vlgmr.msra.gmra.mxu1 %vm550_vm0, %v12100_v61 }
  0x84   : > { %1494 = vmatpush1.bf16.msra.mxu0 %v11197_v7  ;;  %1535 = vmatpush1.bf16.msra.mxu1 %v11200_v8  ;;  %v11625_v7 = vld [vmem:[#allocation2 + $0x120] ss:$48 sps:$4 sm:$0xff]   ;;  %v11626_v8 = vld [vmem:[#allocation2 + $0x128] ss:$48 sps:$4 sm:$0xff]  }
  0x85   : > { %1495 = vmatprep.subr.bf16.mxu0 %v11205_v9  ;;  %1536 = vmatprep.subr.bf16.mxu1 %v11208_v10  ;;  %v11627_v9 = vld [vmem:[#allocation2 + $0xc4] ss:$48 sps:$4 sm:$0xff]   ;;  %v11628_v10 = vld [vmem:[#allocation2 + $0xcc] ss:$48 sps:$4 sm:$0xff]  }
  0x86   : > { %1513 = vmatprep.mubr.bf16.mxu0 %v11900_v0  ;;  %1554 = vmatprep.mubr.bf16.mxu1 %v11900_v0 }
  0x88   : > { %1496 = vmatpush1.bf16.msra.mxu0 %v11203_v11  ;;  %1537 = vmatpush1.bf16.msra.mxu1 %v11206_v12  ;;  %v11629_v11 = vld [vmem:[#allocation2 + $0xc0] ss:$48 sps:$4 sm:$0xff]   ;;  %v11630_v12 = vld [vmem:[#allocation2 + $0xc8] ss:$48 sps:$4 sm:$0xff]  }
  0x89   : > { %1735 = vmatprep.subr.bf16.mxu0 %v11211_v13  ;;  %1776 = vmatprep.subr.bf16.mxu1 %v11214_v14  ;;  %v11631_v13 = vld [vmem:[#allocation2 + $0x134] ss:$48 sps:$4 sm:$0xff]   ;;  %v11632_v14 = vld [vmem:[#allocation2 + $0x13c] ss:$48 sps:$4 sm:$0xff]  }
  0x8b   : > { %9643 = vmatmul.mubr.msk.bf16.vlgmr.msra.gmra.mxu0 %vm550_vm0, %v12100_v61  ;;  %9644 = vmatmul.mubr.msk.bf16.vlgmr.msra.gmra.mxu1 %vm550_vm0, %v12100_v61 }
  0x8c   : > { %1736 = vmatpush1.bf16.msra.mxu0 %v11209_v15  ;;  %1777 = vmatpush1.bf16.msra.mxu1 %v11212_v16  ;;  %v11633_v15 = vld [vmem:[#allocation2 + $0x130] ss:$48 sps:$4 sm:$0xff]   ;;  %v11634_v16 = vld [vmem:[#allocation2 + $0x138] ss:$48 sps:$4 sm:$0xff]  }
  0x8d   : > { %1737 = vmatprep.subr.bf16.mxu0 %v11217_v18  ;;  %1778 = vmatprep.subr.bf16.mxu1 %v11220_v19  ;;  %v11636_v18 = vld [vmem:[#allocation2 + $0xdc] ss:$48 sps:$4 sm:$0xff]   ;;  %v11637_v19 = vld [vmem:[#allocation2 + $0xd0] ss:$48 sps:$4 sm:$0xff]  }
  0x8e   : > { %1755 = vmatprep.mubr.bf16.mxu0 %v11900_v0  ;;  %1796 = vmatprep.mubr.bf16.mxu1 %v11900_v0 }
  0x90   : > { %1738 = vmatpush1.bf16.msra.mxu0 %v11215_v20  ;;  %1779 = vmatpush1.bf16.msra.mxu1 %v11218_v21  ;;  %v11638_v20 = vld [vmem:[#allocation2 + $0xd8] ss:$48 sps:$4 sm:$0xff]   ;;  %v11639_v21 = vld [vmem:[#allocation2 + $0x144] ss:$48 sps:$4 sm:$0xff]  }
  0x91   : > { %1817 = vmatprep.subr.bf16.mxu0 %v11223_v23  ;;  %1858 = vmatprep.subr.bf16.mxu1 %v11226_v24  ;;  %v11641_v23 = vld [vmem:[#allocation2 + $0x140] ss:$48 sps:$4 sm:$0xff]   ;;  %v11642_v24 = vld [vmem:[#allocation2 + $0x148] ss:$48 sps:$4 sm:$0xff]  }
  0x93   : > { %9669 = vmatmul.mubr.msk.bf16.vlgmr.msra.gmra.mxu0 %vm550_vm0, %v12126_v25  ;;  %9670 = vmatmul.mubr.msk.bf16.vlgmr.msra.gmra.mxu1 %vm550_vm0, %v12126_v25 }
  0x94   : > { %1818 = vmatpush1.bf16.msra.mxu0 %v11221_v26  ;;  %1859 = vmatpush1.bf16.msra.mxu1 %v11224_v27  ;;  %v11643_v26 = vld [vmem:[#allocation2 + $0xe4] ss:$48 sps:$4 sm:$0xff]   ;;  %v11644_v27 = vld [vmem:[#allocation2 + $0xec] ss:$48 sps:$4 sm:$0xff]  }
  0x95   : > { %1819 = vmatprep.subr.bf16.mxu0 %v11229_v30  ;;  %1860 = vmatprep.subr.bf16.mxu1 %v11232_v31  ;;  %v11647_v30 = vld [vmem:[#allocation2 + $0x64] ss:$48 sps:$4 sm:$0xff]   ;;  %v11648_v31 = vld [vmem:[#allocation2 + $0x6c] ss:$48 sps:$4 sm:$0xff]  }
  0x96   : > { %1837 = vmatprep.mubr.bf16.mxu0 %v11900_v0  ;;  %1878 = vmatprep.mubr.bf16.mxu1 %v11900_v0 }
  0x98   : > { %1820 = vmatpush1.bf16.msra.mxu0 %v11227_v32  ;;  %1861 = vmatpush1.bf16.msra.mxu1 %v11230_v33  ;;  %v11649_v32 = vld [vmem:[#allocation2 + $0x60] ss:$48 sps:$4 sm:$0xff]   ;;  %v11650_v33 = vld [vmem:[#allocation2 + $0x68] ss:$48 sps:$4 sm:$0xff]  }
  0x99   : > { %1899 = vmatprep.subr.bf16.mxu0 %v11235_v34  ;;  %1940 = vmatprep.subr.bf16.mxu1 %v11238_v35  ;;  %v11651_v34 = vld [vmem:[#allocation2 + $0x4] ss:$48 sps:$4 sm:$0xff]   ;;  %v11652_v35 = vld [vmem:[#allocation2 + $0xc] ss:$48 sps:$4 sm:$0xff]  }
  0x9b   : > { %9671 = vmatmul.mubr.msk.bf16.vlgmr.msra.gmra.mxu0 %vm550_vm0, %v12126_v25  ;;  %9672 = vmatmul.mubr.msk.bf16.vlgmr.msra.gmra.mxu1 %vm550_vm0, %v12126_v25 }
  0x9c   : > { %1900 = vmatpush1.bf16.msra.mxu0 %v11233_v36  ;;  %1941 = vmatpush1.bf16.msra.mxu1 %v11236_v37  ;;  %v11653_v36 = vld [vmem:[#allocation2] ss:$48 sps:$4 sm:$0xff]   ;;  %v11654_v37 = vld [vmem:[#allocation2 + $0x8] ss:$48 sps:$4 sm:$0xff]  }
  0x9d   : > { %1901 = vmatprep.subr.bf16.mxu0 %v11241_v38  ;;  %1942 = vmatprep.subr.bf16.mxu1 %v11244_v39  ;;  %v11655_v38 = vld [vmem:[#allocation2 + $0x74] ss:$48 sps:$4 sm:$0xff]   ;;  %v11656_v39 = vld [vmem:[#allocation2 + $0x7c] ss:$48 sps:$4 sm:$0xff]  }
  0x9e   : > { %1919 = vmatprep.mubr.bf16.mxu0 %v11900_v0  ;;  %1960 = vmatprep.mubr.bf16.mxu1 %v11900_v0 }
  0xa0   : > { %1902 = vmatpush1.bf16.msra.mxu0 %v11239_v40  ;;  %1943 = vmatpush1.bf16.msra.mxu1 %v11242_v41  ;;  %v11658_v40 = vld [vmem:[#allocation2 + $0x78] ss:$48 sps:$4 sm:$0xff]   ;;  %v11659_v41 = vld [vmem:[#allocation2 + $0x14] ss:$48 sps:$4 sm:$0xff]  }
  0xa1   : > { %2151 = vmatprep.subr.bf16.mxu0 %v11247_v42  ;;  %2192 = vmatprep.subr.bf16.mxu1 %v11250_v43  ;;  %v11660_v42 = vld [vmem:[#allocation2 + $0x1c] ss:$48 sps:$4 sm:$0xff]   ;;  %v11661_v43 = vld [vmem:[#allocation2 + $0x10] ss:$48 sps:$4 sm:$0xff]  }
  0xa3   : > { %9673 = vmatmul.mubr.msk.bf16.vlgmr.msra.gmra.mxu0 %vm550_vm0, %v12126_v25  ;;  %9674 = vmatmul.mubr.msk.bf16.vlgmr.msra.gmra.mxu1 %vm550_vm0, %v12126_v25 }
  0xa4   : > { %2152 = vmatpush1.bf16.msra.mxu0 %v11245_v44  ;;  %2193 = vmatpush1.bf16.msra.mxu1 %v11248_v45  ;;  %v11662_v44 = vld [vmem:[#allocation2 + $0x18] ss:$48 sps:$4 sm:$0xff]   ;;  %v11663_v45 = vld [vmem:[#allocation2 + $0x84] ss:$48 sps:$4 sm:$0xff]  }
  0xa5   : > { %2153 = vmatprep.subr.bf16.mxu0 %v11253_v46  ;;  %2194 = vmatprep.subr.bf16.mxu1 %v11256_v47  ;;  %v12194_v46 = vld [vmem:[%s12065_s17 + $0x8] sm:$0xf]  ;;  %v11666_v47 = vld [vmem:[#allocation2 + $0x80] ss:$48 sps:$4 sm:$0xff]  }
  0xa6   : > { %2171 = vmatprep.mubr.bf16.mxu0 %v11900_v0  ;;  %2212 = vmatprep.mubr.bf16.mxu1 %v11900_v0 }
  0xa8   : > { %2154 = vmatpush1.bf16.msra.mxu0 %v11251_v48  ;;  %2195 = vmatpush1.bf16.msra.mxu1 %v11254_v49  ;;  %v11667_v48 = vld [vmem:[#allocation2 + $0x88] ss:$48 sps:$4 sm:$0xff]   ;;  %v11668_v49 = vld [vmem:[#allocation2 + $0x24] ss:$48 sps:$4 sm:$0xff]  }
  0xa9   : > { %2233 = vmatprep.subr.bf16.mxu0 %v11259_v50  ;;  %2274 = vmatprep.subr.bf16.mxu1 %v11262_v51  ;;  %v11669_v50 = vld [vmem:[#allocation2 + $0x2c] ss:$48 sps:$4 sm:$0xff]   ;;  %v11670_v51 = vld [vmem:[#allocation2 + $0x20] ss:$48 sps:$4 sm:$0xff]  }
  0xab   : > { %9700 = vmatmul.mubr.msk.bf16.vlgmr.msra.gmra.mxu0 %vm550_vm0, %v12149_v54  ;;  %9701 = vmatmul.mubr.msk.bf16.vlgmr.msra.gmra.mxu1 %vm550_vm0, %v12149_v54 }
  0xac   : > { %2234 = vmatpush1.bf16.msra.mxu0 %v11257_v52  ;;  %2275 = vmatpush1.bf16.msra.mxu1 %v11260_v53  ;;  %v11671_v52 = vld [vmem:[#allocation2 + $0x28] ss:$48 sps:$4 sm:$0xff]   ;;  %v11672_v53 = vld [vmem:[#allocation2 + $0x1e4] ss:$48 sps:$4 sm:$0xff]  }
  0xad   : > { %2235 = vmatprep.subr.bf16.mxu0 %v11265_v55  ;;  %2276 = vmatprep.subr.bf16.mxu1 %v11268_v56  ;;  %v11673_v55 = vld [vmem:[#allocation2 + $0x1ec] ss:$48 sps:$4 sm:$0xff]   ;;  %v11674_v56 = vld [vmem:[#allocation2 + $0x1e0] ss:$48 sps:$4 sm:$0xff]  }
  0xae   : > { %2253 = vmatprep.mubr.bf16.mxu0 %v11900_v0  ;;  %2294 = vmatprep.mubr.bf16.mxu1 %v11900_v0 }
  0xb0   : > { %2236 = vmatpush1.bf16.msra.mxu0 %v11263_v57  ;;  %2277 = vmatpush1.bf16.msra.mxu1 %v11266_v58  ;;  %v11675_v57 = vld [vmem:[#allocation2 + $0x1e8] ss:$48 sps:$4 sm:$0xff]   ;;  %v11676_v58 = vld [vmem:[#allocation2 + $0x184] ss:$48 sps:$4 sm:$0xff]  }
  0xb1   : > { %2315 = vmatprep.subr.bf16.mxu0 %v11271_v59  ;;  %2356 = vmatprep.subr.bf16.mxu1 %v11274_v60  ;;  %v11677_v59 = vld [vmem:[#allocation2 + $0x18c] ss:$48 sps:$4 sm:$0xff]   ;;  %v11678_v60 = vld [vmem:[#allocation2 + $0x180] ss:$48 sps:$4 sm:$0xff]  }
  0xb3   : > { %9702 = vmatmul.mubr.msk.bf16.vlgmr.msra.gmra.mxu0 %vm550_vm0, %v12149_v54  ;;  %9703 = vmatmul.mubr.msk.bf16.vlgmr.msra.gmra.mxu1 %vm550_vm0, %v12149_v54 }
  0xb4   : > { %2316 = vmatpush1.bf16.msra.mxu0 %v11269_v62  ;;  %2357 = vmatpush1.bf16.msra.mxu1 %v11272_v63  ;;  %v11679_v62 = vld [vmem:[#allocation2 + $0x188] ss:$48 sps:$4 sm:$0xff]   ;;  %v11680_v63 = vld [vmem:[#allocation2 + $0x1f4] ss:$48 sps:$4 sm:$0xff]  }
  0xb5   : > { %2317 = vmatprep.subr.bf16.mxu0 %v11277_v1  ;;  %2358 = vmatprep.subr.bf16.mxu1 %v11280_v2  ;;  %v11681_v1 = vld [vmem:[#allocation2 + $0x1fc] ss:$48 sps:$4 sm:$0xff]   ;;  %v11682_v2 = vld [vmem:[#allocation2 + $0x1f0] ss:$48 sps:$4 sm:$0xff]  }
  0xb6   : > { %2335 = vmatprep.mubr.bf16.mxu0 %v11900_v0  ;;  %2376 = vmatprep.mubr.bf16.mxu1 %v11900_v0 }
  0xb8   : > { %2318 = vmatpush1.bf16.msra.mxu0 %v11275_v3  ;;  %2359 = vmatpush1.bf16.msra.mxu1 %v11278_v4  ;;  %v11683_v3 = vld [vmem:[#allocation2 + $0x1f8] ss:$48 sps:$4 sm:$0xff]   ;;  %v11684_v4 = vld [vmem:[#allocation2 + $0x194] ss:$48 sps:$4 sm:$0xff]  }
  0xb9   : > { %2717 = vmatprep.subr.bf16.mxu0 %v11623_v5  ;;  %2758 = vmatprep.subr.bf16.mxu1 %v11624_v6  ;;  %v11685_v5 = vld [vmem:[#allocation2 + $0x19c] ss:$48 sps:$4 sm:$0xff]   ;;  %v11686_v6 = vld [vmem:[#allocation2 + $0x190] ss:$48 sps:$4 sm:$0xff]  }
  0xbb   : > { %9704 = vmatmul.mubr.msk.bf16.vlgmr.msra.gmra.mxu0 %vm550_vm0, %v12149_v54  ;;  %9705 = vmatmul.mubr.msk.bf16.vlgmr.msra.gmra.mxu1 %vm550_vm0, %v12149_v54 }
  0xbc   : > { %2718 = vmatpush1.bf16.msra.mxu0 %v11625_v7  ;;  %2759 = vmatpush1.bf16.msra.mxu1 %v11626_v8  ;;  %v11687_v7 = vld [vmem:[#allocation2 + $0x198] ss:$48 sps:$4 sm:$0xff]   ;;  %v11688_v8 = vld [vmem:[#allocation2 + $0x204] ss:$48 sps:$4 sm:$0xff]  }
  0xbd   : > { %2719 = vmatprep.subr.bf16.mxu0 %v11627_v9  ;;  %2760 = vmatprep.subr.bf16.mxu1 %v11628_v10  ;;  %v11689_v9 = vld [vmem:[#allocation2 + $0x20c] ss:$48 sps:$4 sm:$0xff]   ;;  %v11690_v10 = vld [vmem:[%s12065_s17 + $0x4] sm:$0xf] }
  0xbe   : > { %2737 = vmatprep.mubr.bf16.mxu0 %v11900_v0  ;;  %2778 = vmatprep.mubr.bf16.mxu1 %v11900_v0 }
  0xc0   : > { %2720 = vmatpush1.bf16.msra.mxu0 %v11629_v11  ;;  %2761 = vmatpush1.bf16.msra.mxu1 %v11630_v12  ;;  %v9724_v11 = vcombine.low %v11690_v10, %v11690_v10  ;;  %v11691_v12 = vld [vmem:[#allocation2 + $0x200] ss:$48 sps:$4 sm:$0xff]  }
  0xc1   : > { %2799 = vmatprep.subr.bf16.mxu0 %v11631_v13  ;;  %2840 = vmatprep.subr.bf16.mxu1 %v11632_v14  ;;  %v11692_v13 = vld [vmem:[#allocation2 + $0x208] ss:$48 sps:$4 sm:$0xff]   ;;  %v11693_v14 = vld [vmem:[#allocation2 + $0x1a4] ss:$48 sps:$4 sm:$0xff]  }
  0xc3   : > { %9706 = vmatmul.mubr.msk.bf16.vlgmr.msra.gmra.mxu0 %vm550_vm0, %v12126_v25  ;;  %9707 = vmatmul.mubr.msk.bf16.vlgmr.msra.gmra.mxu1 %vm550_vm0, %v12126_v25 }
  0xc4   : > { %2800 = vmatpush1.bf16.msra.mxu0 %v11633_v15  ;;  %2841 = vmatpush1.bf16.msra.mxu1 %v11634_v16  ;;  %v11694_v15 = vld [vmem:[#allocation2 + $0x1ac] ss:$48 sps:$4 sm:$0xff]   ;;  %v3461_v16 = vshll.u32 %v9724_v11, 16 }
  0xc5   : > { %2801 = vmatprep.subr.bf16.mxu0 %v11635_v17  ;;  %2842 = vmatprep.subr.bf16.mxu1 %v11636_v18  ;;  %v11695_v17 = vld [vmem:[#allocation2 + $0x1a0] ss:$48 sps:$4 sm:$0xff]   ;;  %v11696_v18 = vld [vmem:[#allocation2 + $0x1a8] ss:$48 sps:$4 sm:$0xff]  }
  0xc6   : > { %2819 = vmatprep.mubr.bf16.mxu0 %v11900_v0  ;;  %2860 = vmatprep.mubr.bf16.mxu1 %v11900_v0 }
  0xc8   : > { %2802 = vmatpush1.bf16.msra.mxu0 %v11637_v19  ;;  %2843 = vmatpush1.bf16.msra.mxu1 %v11638_v20  ;;  %v11697_v19 = vld [vmem:[#allocation2 + $0x2a4] ss:$48 sps:$4 sm:$0xff]   ;;  %v11698_v20 = vld [vmem:[#allocation2 + $0x2ac] ss:$48 sps:$4 sm:$0xff]  }
  0xc9   : > { %2881 = vmatprep.subr.bf16.mxu0 %v11639_v21  ;;  %2922 = vmatprep.subr.bf16.mxu1 %v11640_v22  ;;  %v3459_v21 = vshrl.u32 %v9724_v11, 16  ;;  %v3463_v22 = vrot.slane %v3461_v16, 1  ;;  %v11725_v11 = vld [vmem:[#allocation2 + $0x304] ss:$48 sps:$4 sm:$0xff]   ;;  %v11727_v16 = vld [vmem:[#allocation2 + $0x300] ss:$48 sps:$4 sm:$0xff]  }
  0xcb   : > { %9708 = vmatmul.mubr.msk.bf16.vlgmr.msra.gmra.mxu0 %vm550_vm0, %v12126_v25  ;;  %9709 = vmatmul.mubr.msk.bf16.vlgmr.msra.gmra.mxu1 %vm550_vm0, %v12126_v25 }
  0xcc   : > { %2882 = vmatpush1.bf16.msra.mxu0 %v11641_v23  ;;  %2923 = vmatpush1.bf16.msra.mxu1 %v11642_v24  ;;  %v11699_v23 = vld [vmem:[#allocation2 + $0x2a0] ss:$48 sps:$4 sm:$0xff]   ;;  %v11700_v24 = vld [vmem:[#allocation2 + $0x2a8] ss:$48 sps:$4 sm:$0xff]  }
  0xcd   : > { %2883 = vmatprep.subr.bf16.mxu0 %v11643_v26  ;;  %2924 = vmatprep.subr.bf16.mxu1 %v11644_v27  ;;  %v11701_v26 = vld [vmem:[#allocation2 + $0x244] ss:$48 sps:$4 sm:$0xff]   ;;  %v11702_v27 = vld [vmem:[#allocation2 + $0x24c] ss:$48 sps:$4 sm:$0xff]  }
  0xce   : > { %2901 = vmatprep.mubr.bf16.mxu0 %v11900_v0  ;;  %2942 = vmatprep.mubr.bf16.mxu1 %v11900_v0 }
  0xd0   : > { %2884 = vmatpush1.bf16.msra.mxu0 %v11645_v28  ;;  %2925 = vmatpush1.bf16.msra.mxu1 %v11646_v29  ;;  %v12227_v28 = vor.u32 %v3463_v22, %v3459_v21  ;;  %v11703_v29 = vld [vmem:[#allocation2 + $0x240] ss:$48 sps:$4 sm:$0xff]   ;;  %v11730_v21 = vld [vmem:[#allocation2 + $0x37c] ss:$48 sps:$4 sm:$0xff]  }
  0xd1   : > { %2963 = vmatprep.subr.bf16.mxu0 %v11647_v30  ;;  %3004 = vmatprep.subr.bf16.mxu1 %v11648_v31  ;;  %v11704_v30 = vld [vmem:[#allocation2 + $0x248] ss:$48 sps:$4 sm:$0xff]   ;;  %v11705_v31 = vld [vmem:[#allocation2 + $0x2b4] ss:$48 sps:$4 sm:$0xff]  }
  0xd3   : > { %9710 = vmatmul.mubr.msk.bf16.vlgmr.msra.gmra.mxu0 %vm550_vm0, %v12126_v25  ;;  %9711 = vmatmul.mubr.msk.bf16.vlgmr.msra.gmra.mxu1 %vm550_vm0, %v12126_v25  ;;  %v11657_v25 = vld [vmem:[#allocation2 + $0x70] ss:$48 sps:$4 sm:$0xff]  }
  0xd4   : > { %2964 = vmatpush1.bf16.msra.mxu0 %v11649_v32  ;;  %3005 = vmatpush1.bf16.msra.mxu1 %v11650_v33 }
  0xd5   : > { %2965 = vmatprep.subr.bf16.mxu0 %v11651_v34  ;;  %3006 = vmatprep.subr.bf16.mxu1 %v11652_v35  ;;  %v11707_v34 = vld [vmem:[#allocation2 + $0x2b0] ss:$48 sps:$4 sm:$0xff]   ;;  %v11708_v35 = vld [vmem:[#allocation2 + $0x2b8] ss:$48 sps:$4 sm:$0xff]  }
  0xd6   : > { %2983 = vmatprep.mubr.bf16.mxu0 %v11900_v0  ;;  %3024 = vmatprep.mubr.bf16.mxu1 %v11900_v0 }
  0xd8   : > { %2966 = vmatpush1.bf16.msra.mxu0 %v11653_v36  ;;  %3007 = vmatpush1.bf16.msra.mxu1 %v11654_v37 }
  0xd9   : > { %3045 = vmatprep.subr.bf16.mxu0 %v11655_v38  ;;  %3086 = vmatprep.subr.bf16.mxu1 %v11656_v39  ;;  %v11709_v38 = vld [vmem:[#allocation2 + $0x254] ss:$48 sps:$4 sm:$0xff]   ;;  %v11710_v39 = vld [vmem:[#allocation2 + $0x25c] ss:$48 sps:$4 sm:$0xff]  }
  0xdb   : > { %9712 = vmatmul.mubr.msk.bf16.vlgmr.msra.gmra.mxu0 %vm550_vm0, %v12100_v61  ;;  %9713 = vmatmul.mubr.msk.bf16.vlgmr.msra.gmra.mxu1 %vm550_vm0, %v12100_v61  ;;  %v11664_v61 = vld [vmem:[#allocation2 + $0x8c] ss:$48 sps:$4 sm:$0xff]  }
  0xdc   : > { %3046 = vmatpush1.bf16.msra.mxu0 %v11657_v25  ;;  %3087 = vmatpush1.bf16.msra.mxu1 %v11658_v40 }
  0xdd   : > { %3047 = vmatprep.subr.bf16.mxu0 %v11659_v41  ;;  %3088 = vmatprep.subr.bf16.mxu1 %v11660_v42  ;;  %v11711_v41 = vld [vmem:[#allocation2 + $0x250] ss:$48 sps:$4 sm:$0xff]   ;;  %v11712_v42 = vld [vmem:[#allocation2 + $0x258] ss:$48 sps:$4 sm:$0xff]  }
  0xde   : > { %3065 = vmatprep.mubr.bf16.mxu0 %v11900_v0  ;;  %3106 = vmatprep.mubr.bf16.mxu1 %v11900_v0 }
  0xe0   : > { %3048 = vmatpush1.bf16.msra.mxu0 %v11661_v43  ;;  %3089 = vmatpush1.bf16.msra.mxu1 %v11662_v44 }
  0xe1   : > { %3127 = vmatprep.subr.bf16.mxu0 %v11663_v45  ;;  %3168 = vmatprep.subr.bf16.mxu1 %v11664_v61  ;;  %v11713_v45 = vld [vmem:[#allocation2 + $0x2c4] ss:$48 sps:$4 sm:$0xff]   ;;  %v11714_v61 = vld [vmem:[#allocation2 + $0x2cc] ss:$48 sps:$4 sm:$0xff]  }
  0xe3   : > { %9714 = vmatmul.mubr.msk.bf16.vlgmr.msra.gmra.mxu0 %vm550_vm0, %v12194_v46  ;;  %9715 = vmatmul.mubr.msk.bf16.vlgmr.msra.gmra.mxu1 %vm550_vm0, %v12194_v46 }
  0xe4   : > { %3128 = vmatpush1.bf16.msra.mxu0 %v11666_v47  ;;  %3169 = vmatpush1.bf16.msra.mxu1 %v11667_v48  ;;  %v9731_v47 = vcombine.low %v12194_v46, %v12194_v46 }
  0xe5   : > { %3129 = vmatprep.subr.bf16.mxu0 %v11668_v49  ;;  %3170 = vmatprep.subr.bf16.mxu1 %v11669_v50  ;;  %v11715_v50 = vld [vmem:[#allocation2 + $0x2c0] ss:$48 sps:$4 sm:$0xff]  }
  0xe6   : > { %3147 = vmatprep.mubr.bf16.mxu0 %v11900_v0  ;;  %3188 = vmatprep.mubr.bf16.mxu1 %v11900_v0 }
  0xe8   : > { %3130 = vmatpush1.bf16.msra.mxu0 %v11670_v51  ;;  %3171 = vmatpush1.bf16.msra.mxu1 %v11671_v52  ;;  %v11716_v51 = vld [vmem:[#allocation2 + $0x2c8] ss:$48 sps:$4 sm:$0xff]  }
  0xe9   : > { %3209 = vmatprep.subr.bf16.mxu0 %v11672_v53  ;;  %3250 = vmatprep.subr.bf16.mxu1 %v11673_v55  ;;  %v11717_v55 = vld [vmem:[#allocation2 + $0x264] ss:$48 sps:$4 sm:$0xff]  }
  0xeb   : > { %9716 = vmatmul.mubr.msk.bf16.vlgmr.msra.gmra.mxu0 %vm550_vm0, %v12194_v46  ;;  %9717 = vmatmul.mubr.msk.bf16.vlgmr.msra.gmra.mxu1 %vm550_vm0, %v12194_v46  ;;  %v11718_v46 = vld [vmem:[#allocation2 + $0x26c] ss:$48 sps:$4 sm:$0xff]  }
  0xec   : > { %3210 = vmatpush1.bf16.msra.mxu0 %v11674_v56  ;;  %3251 = vmatpush1.bf16.msra.mxu1 %v11675_v57  ;;  %v3732_v56 = vshll.u32 %v9731_v47, 16 }
  0xed   : > { %3211 = vmatprep.subr.bf16.mxu0 %v11676_v58  ;;  %3252 = vmatprep.subr.bf16.mxu1 %v11677_v59  ;;  %v11719_v59 = vld [vmem:[#allocation2 + $0x260] ss:$48 sps:$4 sm:$0xff]  }
  0xee   : > { %3229 = vmatprep.mubr.bf16.mxu0 %v11900_v0  ;;  %3270 = vmatprep.mubr.bf16.mxu1 %v11900_v0 }
  0xf0   : > { %3212 = vmatpush1.bf16.msra.mxu0 %v11678_v60  ;;  %3253 = vmatpush1.bf16.msra.mxu1 %v11679_v62  ;;  %v11720_v60 = vld [vmem:[#allocation2 + $0x268] ss:$48 sps:$4 sm:$0xff]  }
  0xf1   : > { %3291 = vmatprep.subr.bf16.mxu0 %v11680_v63  ;;  %3332 = vmatprep.subr.bf16.mxu1 %v11681_v1  ;;  %v11721_v1 = vld [vmem:[#allocation2 + $0x364] ss:$48 sps:$4 sm:$0xff]  }
  0xf3   : > { %9718 = vmatmul.mubr.msk.bf16.vlgmr.msra.gmra.mxu0 %vm550_vm0, %v12149_v54  ;;  %9719 = vmatmul.mubr.msk.bf16.vlgmr.msra.gmra.mxu1 %vm550_vm0, %v12149_v54 }
  0xf4   : > { %3292 = vmatpush1.bf16.msra.mxu0 %v11682_v2  ;;  %3333 = vmatpush1.bf16.msra.mxu1 %v11683_v3  ;;  %v11722_v2 = vld [vmem:[#allocation2 + $0x36c] ss:$48 sps:$4 sm:$0xff]   ;;  %v3730_v3 = vshrl.u32 %v9731_v47, 16 }
  0xf5   : > { %3293 = vmatprep.subr.bf16.mxu0 %v11684_v4  ;;  %3334 = vmatprep.subr.bf16.mxu1 %v11685_v5  ;;  %v3734_v4 = vrot.slane %v3732_v56, 1 }
  0xf6   : > { %3311 = vmatprep.mubr.bf16.mxu0 %v11900_v0  ;;  %3352 = vmatprep.mubr.bf16.mxu1 %v11900_v0 }
  0xf8   : > { %3294 = vmatpush1.bf16.msra.mxu0 %v11686_v6  ;;  %3335 = vmatpush1.bf16.msra.mxu1 %v11687_v7  ;;  %v11723_v7 = vld [vmem:[#allocation2 + $0x360] ss:$48 sps:$4 sm:$0xff]  }
  0xf9   : > { %3373 = vmatprep.subr.bf16.mxu0 %v11688_v8  ;;  %3414 = vmatprep.subr.bf16.mxu1 %v11689_v9  ;;  %v11724_v8 = vld [vmem:[#allocation2 + $0x368] ss:$48 sps:$4 sm:$0xff]  }
  0xfb   : > { %9720 = vmatmul.mubr.msk.bf16.vlgmr.msra.gmra.mxu0 %vm550_vm0, %v12149_v54  ;;  %9721 = vmatmul.mubr.msk.bf16.vlgmr.msra.gmra.mxu1 %vm550_vm0, %v12149_v54 }
  0xfc   : > { %3374 = vmatpush1.bf16.msra.mxu0 %v11691_v12  ;;  %3415 = vmatpush1.bf16.msra.mxu1 %v11692_v13  ;;  %v11726_v12 = vld [vmem:[#allocation2 + $0x30c] ss:$48 sps:$4 sm:$0xff]  }
  0xfd   : > { %3375 = vmatprep.subr.bf16.mxu0 %v11693_v14  ;;  %3416 = vmatprep.subr.bf16.mxu1 %v11694_v15  ;;  %v12273_v15 = vor.u32 %v3734_v4, %v3730_v3  ;;  %v11288_v4 = vld [vmem:[#allocation5 + $0x70] sm:$0xff]  }
  0xfe   : > { %3393 = vmatprep.mubr.bf16.mxu0 %v11900_v0  ;;  %3434 = vmatprep.mubr.bf16.mxu1 %v11900_v0 }
 0x100   : > { %3376 = vmatpush1.bf16.msra.mxu0 %v11695_v17  ;;  %3417 = vmatpush1.bf16.msra.mxu1 %v11696_v18  ;;  %v11728_v17 = vld [vmem:[#allocation2 + $0x308] ss:$48 sps:$4 sm:$0xff]  }
 0x101   : > { %3480 = vmatprep.subr.bf16.mxu0 %v11697_v19  ;;  %3521 = vmatprep.subr.bf16.mxu1 %v11698_v20  ;;  %v11729_v20 = vld [vmem:[#allocation2 + $0x374] ss:$48 sps:$4 sm:$0xff]  }
 0x103   : > { %9722 = vmatmul.mubr.msk.bf16.vlgmr.msra.gmra.mxu0 %vm550_vm0, %v12149_v54  ;;  %9723 = vmatmul.mubr.msk.bf16.vlgmr.msra.gmra.mxu1 %vm550_vm0, %v12149_v54  ;;  %v11706_v54 = vld [vmem:[#allocation2 + $0x2bc] ss:$48 sps:$4 sm:$0xff]  }
 0x104   : > { %3481 = vmatpush1.bf16.msra.mxu0 %v11699_v23  ;;  %3522 = vmatpush1.bf16.msra.mxu1 %v11700_v24 }
 0x105   : > { %3482 = vmatprep.subr.bf16.mxu0 %v11701_v26  ;;  %3523 = vmatprep.subr.bf16.mxu1 %v11702_v27  ;;  %v11731_v27 = vld [vmem:[#allocation2 + $0x370] ss:$48 sps:$4 sm:$0xff]  }
 0x106   : > { %3500 = vmatprep.mubr.bf16.mxu0 %v11900_v0  ;;  %3541 = vmatprep.mubr.bf16.mxu1 %v11900_v0 }
 0x108   : > { %3483 = vmatpush1.bf16.msra.mxu0 %v11703_v29  ;;  %3524 = vmatpush1.bf16.msra.mxu1 %v11704_v30 }
 0x109   : > { %3562 = vmatprep.subr.bf16.mxu0 %v11705_v31  ;;  %3603 = vmatprep.subr.bf16.mxu1 %v11706_v54  ;;  %v11733_v31 = vld [vmem:[#allocation2 + $0x314] ss:$48 sps:$4 sm:$0xff]   ;;  %v11734_v54 = vld [vmem:[#allocation2 + $0x31c] ss:$48 sps:$4 sm:$0xff]  }
 0x10b   : > { %v12229_v32 = vpop.f32.mrf.mxu0  ;;  %v12231_v33 = vpop.f32.mrf.mxu1  ;;  %9725 = vmatmul.mubr.msk.bf16.vlgmr.msra.gmra.mxu0 %vm550_vm0, %v12227_v28  ;;  %9726 = vmatmul.mubr.msk.bf16.vlgmr.msra.gmra.mxu1 %vm550_vm0, %v12227_v28 }
 0x10c   : > { %3563 = vmatpush1.bf16.msra.mxu0 %v11707_v34  ;;  %3604 = vmatpush1.bf16.msra.mxu1 %v11708_v35 }
 0x10d   : > { %v12237_v36 = vpop.f32.mrf.mxu0  ;;  %v12239_v37 = vpop.f32.mrf.mxu1  ;;  %3564 = vmatprep.subr.bf16.mxu0 %v11709_v38  ;;  %3605 = vmatprep.subr.bf16.mxu1 %v11710_v39  ;;  %v11735_v38 = vld [vmem:[#allocation2 + $0x310] ss:$48 sps:$4 sm:$0xff]   ;;  %v11736_v39 = vld [vmem:[#allocation2 + $0x318] ss:$48 sps:$4 sm:$0xff]  }
 0x10e   : > { %3582 = vmatprep.mubr.bf16.mxu0 %v11900_v0  ;;  %3623 = vmatprep.mubr.bf16.mxu1 %v11900_v0 }
 0x10f   : > { %v592_v25 = vpop.f32.mrf.mxu0  ;;  %v633_v40 = vpop.f32.mrf.mxu1 }
 0x110   : > { %3565 = vmatpush1.bf16.msra.mxu0 %v11711_v41  ;;  %3606 = vmatpush1.bf16.msra.mxu1 %v11712_v42  ;;  %v11737_v41 = vld [vmem:[#allocation2 + $0x384] ss:$48 sps:$4 sm:$0xff]   ;;  %v11738_v42 = vld [vmem:[#allocation2 + $0x38c] ss:$48 sps:$4 sm:$0xff]  }
 0x111   : > { %v593_v43 = vpop.f32.mrf.mxu0  ;;  %v634_v44 = vpop.f32.mrf.mxu1  ;;  %3644 = vmatprep.subr.bf16.mxu0 %v11713_v45  ;;  %3685 = vmatprep.subr.bf16.mxu1 %v11714_v61  ;;  %v11739_v45 = vld [vmem:[#allocation2 + $0x380] ss:$48 sps:$4 sm:$0xff]   ;;  %v11740_v61 = vld [vmem:[#allocation2 + $0x388] ss:$48 sps:$4 sm:$0xff]  }
 0x113   : > { %v12245_v48 = vpop.f32.mrf.mxu0  ;;  %v12247_v49 = vpop.f32.mrf.mxu1  ;;  %9727 = vmatmul.mubr.msk.bf16.vlgmr.msra.gmra.mxu0 %vm550_vm0, %v12227_v28  ;;  %9728 = vmatmul.mubr.msk.bf16.vlgmr.msra.gmra.mxu1 %vm550_vm0, %v12227_v28 }
 0x114   : > { %3645 = vmatpush1.bf16.msra.mxu0 %v11715_v50  ;;  %3686 = vmatpush1.bf16.msra.mxu1 %v11716_v51  ;;  %v11741_v51 = vld [vmem:[#allocation2 + $0x324] ss:$48 sps:$4 sm:$0xff]  }
 0x115   : > { %v12253_v52 = vpop.f32.mrf.mxu0  ;;  %v12255_v53 = vpop.f32.mrf.mxu1  ;;  %3646 = vmatprep.subr.bf16.mxu0 %v11717_v55  ;;  %3687 = vmatprep.subr.bf16.mxu1 %v11718_v46  ;;  %v11742_v55 = vld [vmem:[#allocation2 + $0x32c] ss:$48 sps:$4 sm:$0xff]  }
 0x116   : > { %3664 = vmatprep.mubr.bf16.mxu0 %v11900_v0  ;;  %3705 = vmatprep.mubr.bf16.mxu1 %v11900_v0 }
 0x117   : > { %v674_v57 = vpop.f32.mrf.mxu0  ;;  %v715_v58 = vpop.f32.mrf.mxu1 }
 0x118   : > { %3647 = vmatpush1.bf16.msra.mxu0 %v11719_v59  ;;  %3688 = vmatpush1.bf16.msra.mxu1 %v11720_v60  ;;  %v11743_v58 = vld [vmem:[#allocation2 + $0x320] ss:$48 sps:$4 sm:$0xff]   ;;  %v11744_v59 = vld [vmem:[#allocation2 + $0x328] ss:$48 sps:$4 sm:$0xff]  }
 0x119   : > { %v675_v62 = vpop.f32.mrf.mxu0  ;;  %v716_v63 = vpop.f32.mrf.mxu1  ;;  %3751 = vmatprep.subr.bf16.mxu0 %v11721_v1  ;;  %3792 = vmatprep.subr.bf16.mxu1 %v11722_v2  ;;  %v11286_v60 = vld [vmem:[#allocation5 + $0x78] sm:$0xff]   ;;  %v14015_v1 = vmov 0.0  }
 0x11b   : > { %v12259_v5 = vpop.f32.mrf.mxu0  ;;  %v12261_v6 = vpop.f32.mrf.mxu1  ;;  %9729 = vmatmul.mubr.msk.bf16.vlgmr.msra.gmra.mxu0 %vm550_vm0, %v12227_v28  ;;  %9730 = vmatmul.mubr.msk.bf16.vlgmr.msra.gmra.mxu1 %vm550_vm0, %v12227_v28  ;;  %v11732_v28 = vld [vmem:[#allocation2 + $0x378] ss:$48 sps:$4 sm:$0xff]  }
 0x11c   : > { %3752 = vmatpush1.bf16.msra.mxu0 %v11723_v7  ;;  %3793 = vmatpush1.bf16.msra.mxu1 %v11724_v8 }
 0x11d   : > { %v12267_v9 = vpop.f32.mrf.mxu0  ;;  %v12269_v10 = vpop.f32.mrf.mxu1  ;;  %3753 = vmatprep.subr.bf16.mxu0 %v11725_v11  ;;  %3794 = vmatprep.subr.bf16.mxu1 %v11726_v12 }
 0x11e   : > { %3771 = vmatprep.mubr.bf16.mxu0 %v11900_v0  ;;  %3812 = vmatprep.mubr.bf16.mxu1 %v11900_v0 }
 0x11f   : > { %v756_v13 = vpop.f32.mrf.mxu0  ;;  %v797_v14 = vpop.f32.mrf.mxu1 }
 0x120   : > { %3754 = vmatpush1.bf16.msra.mxu0 %v11727_v16  ;;  %3795 = vmatpush1.bf16.msra.mxu1 %v11728_v17  ;;  %v11290_v14 = vld [vmem:[#allocation5 + $0x68] sm:$0xff]  }
 0x121   : > { %v757_v18 = vpop.f32.mrf.mxu0  ;;  %v798_v19 = vpop.f32.mrf.mxu1  ;;  %3833 = vmatprep.subr.bf16.mxu0 %v11729_v20  ;;  %3874 = vmatprep.subr.bf16.mxu1 %v11730_v21  ;;  %v11292_v20 = vld [vmem:[#allocation5 + $0x60] sm:$0xff]  }
 0x122   : > { %v11287_v19 = vld [vmem:[#allocation5 + $0x20] sm:$0xff]  }
 0x123   : > { %v957_v22 = vpop.f32.mrf.mxu0  ;;  %v998_v23 = vpop.f32.mrf.mxu1  ;;  %9732 = vmatmul.mubr.msk.bf16.vlgmr.msra.gmra.mxu0 %vm550_vm0, %v12273_v15  ;;  %9733 = vmatmul.mubr.msk.bf16.vlgmr.msra.gmra.mxu1 %vm550_vm0, %v12273_v15 }
 0x124   : > { %v12280_v24 = vadd.f32 %v957_v22, %v12229_v32  ;;  %v12283_v26 = vadd.f32 %v998_v23, %v12231_v33  ;;  %3834 = vmatpush1.bf16.msra.mxu0 %v11731_v27  ;;  %3875 = vmatpush1.bf16.msra.mxu1 %v11732_v28 }
 0x125   : > { %v959_v29 = vpop.f32.mrf.mxu0  ;;  %v1000_v30 = vpop.f32.mrf.mxu1  ;;  %3835 = vmatprep.subr.bf16.mxu0 %v11733_v31  ;;  %3876 = vmatprep.subr.bf16.mxu1 %v11734_v54  ;;  %v11291_v54 = vld [vmem:[#allocation5 + $0x10] sm:$0xff]  }
 0x126   : > { %v12286_v34 = vadd.f32 %v959_v29, %v12237_v36  ;;  %v12289_v35 = vadd.f32 %v1000_v30, %v12239_v37  ;;  %3853 = vmatprep.mubr.bf16.mxu0 %v11900_v0  ;;  %3894 = vmatprep.mubr.bf16.mxu1 %v11900_v0  ;;  %v11294_v29 = vld [vmem:[#allocation5 + $0x58] sm:$0xff]  }
 0x127   : > { %v961_v32 = vpop.f32.mrf.mxu0  ;;  %v1002_v33 = vpop.f32.mrf.mxu1 }
 0x128   : > { %3836 = vmatpush1.bf16.msra.mxu0 %v11735_v38  ;;  %3877 = vmatpush1.bf16.msra.mxu1 %v11736_v39  ;;  %v11296_v32 = vld [vmem:[#allocation5 + $0x50] sm:$0xff]  }
 0x129   : > { %v962_v25 = vpop.f32.mrf.mxu0  ;;  %v1003_v40 = vpop.f32.mrf.mxu1  ;;  %3915 = vmatprep.subr.bf16.mxu0 %v11737_v41  ;;  %3956 = vmatprep.subr.bf16.mxu1 %v11738_v42  ;;  %v11293_v42 = vld [vmem:[#allocation5 + $0x8] sm:$0xff]  }
 0x12b   : > { %v1039_v36 = vpop.f32.mrf.mxu0  ;;  %v1080_v43 = vpop.f32.mrf.mxu1  ;;  %9734 = vmatmul.mubr.msk.bf16.vlgmr.msra.gmra.mxu0 %vm550_vm0, %v12273_v15  ;;  %9735 = vmatmul.mubr.msk.bf16.vlgmr.msra.gmra.mxu1 %vm550_vm0, %v12273_v15 }
 0x12c   : > { %v12298_v37 = vadd.f32 %v1039_v36, %v12245_v48  ;;  %v12301_v44 = vadd.f32 %v1080_v43, %v12247_v49  ;;  %3916 = vmatpush1.bf16.msra.mxu0 %v11739_v45  ;;  %3957 = vmatpush1.bf16.msra.mxu1 %v11740_v61  ;;  %v11283_v48 = vld [vmem:[#allocation5 + $0x38] sm:$0xff]   ;;  %v11298_v36 = vld [vmem:[#allocation5 + $0x48] sm:$0xff]   ;;  %v11295_v61 = vld [vmem:[#allocation5] sm:$0xff]  }
 0x12d   : > { %v1041_v47 = vpop.f32.mrf.mxu0  ;;  %v1082_v50 = vpop.f32.mrf.mxu1  ;;  %3917 = vmatprep.subr.bf16.mxu0 %v11741_v51  ;;  %3958 = vmatprep.subr.bf16.mxu1 %v11742_v55 }
 0x12e   : > { %v12304_v46 = vadd.f32 %v1041_v47, %v12253_v52  ;;  %v12307_v56 = vadd.f32 %v1082_v50, %v12255_v53  ;;  %3935 = vmatprep.mubr.bf16.mxu0 %v11900_v0  ;;  %3976 = vmatprep.mubr.bf16.mxu1 %v11900_v0  ;;  %v11284_v52 = vld [vmem:[#allocation5 + $0x30] sm:$0xff]   ;;  %v11300_v47 = vld [vmem:[#allocation5 + $0x40] sm:$0xff]  }
 0x12f   : > { %v1043_v49 = vpop.f32.mrf.mxu0  ;;  %v1084_v57 = vpop.f32.mrf.mxu1 }
 0x130   : > { %3918 = vmatpush1.bf16.msra.mxu0 %v11743_v58  ;;  %3959 = vmatpush1.bf16.msra.mxu1 %v11744_v59 }
 0x131   : > { %v1044_v62 = vpop.f32.mrf.mxu0  ;;  %v1085_v63 = vpop.f32.mrf.mxu1  ;;  %10522 = vmatprep.subr.bf16.mxu1 %v14015_v1  ;;  %10502 = vmatprep.subr.bf16.mxu0 %v14015_v1 }
 0x132   : > { %v14014_v63 = vlaneseq }
 0x133   : > { %v1121_v53 = vpop.f32.mrf.mxu0  ;;  %v1162_v2 = vpop.f32.mrf.mxu1  ;;  %9736 = vmatmul.mubr.msk.bf16.vlgmr.msra.gmra.mxu0 %vm550_vm0, %v12273_v15  ;;  %9737 = vmatmul.mubr.msk.bf16.vlgmr.msra.gmra.mxu1 %vm550_vm0, %v12273_v15  ;;  %vm4898_vm0 = vcmask 1042434  }
 0x134   : > { %v12318_v0 = vadd.f32 %v1121_v53, %v12259_v5  ;;  %v12321_v3 = vadd.f32 %v1162_v2, %v12261_v6  ;;  %10523 = vmatpush3.bf16.msra.mxu1 %v11283_v48  ;;  %10503 = vmatpush3.bf16.msra.mxu0 %v11286_v60  ;;  %v11285_v5 = vld [vmem:[#allocation5 + $0x28] sm:$0xff]   ;;  %vm12901_vm10 = vmor %vm4897_vm15, %vm4898_vm0 }
 0x135   : > { %v1123_v7 = vpop.f32.mrf.mxu0  ;;  %v1164_v8 = vpop.f32.mrf.mxu1  ;;  %10524 = vmatprep.subr.bf16.mxu1 %v14015_v1  ;;  %10504 = vmatprep.subr.bf16.mxu0 %v14015_v1  ;;  %vm12934_vm11 = vmor %vm12901_vm10, %vm4900_vm8 }
 0x136   : > { %v12326_v11 = vadd.f32 %v1123_v7, %v12267_v9  ;;  %v12329_v12 = vadd.f32 %v1164_v8, %v12269_v10  ;;  %10538 = vmatprep.mubr.msk.bf16.mxu1 %vm11902_vm1, %v14015_v1  ;;  %10518 = vmatprep.mubr.msk.bf16.mxu0 %vm11902_vm1, %v14015_v1  ;;  %vm12960_vm12 = vmor %vm12934_vm11, %vm4902_vm9 }
 0x137   : > { %v1125_v6 = vpop.f32.mrf.mxu0  ;;  %v1166_v13 = vpop.f32.mrf.mxu1 }
 0x138   : > { %10525 = vmatpush3.bf16.msra.mxu1 %v11284_v52  ;;  %10505 = vmatpush3.bf16.msra.mxu0 %v11288_v4 }
 0x139   : > { %v1126_v15 = vpop.f32.mrf.mxu0  ;;  %v1167_v16 = vpop.f32.mrf.mxu1  ;;  %10526 = vmatprep.subr.bf16.mxu1 %v14015_v1  ;;  %10506 = vmatprep.subr.bf16.mxu0 %v14015_v1 }
 0x13b   : > { %v1351_v9 = vpop.f32.mrf.mxu0  ;;  %v1392_v10 = vpop.f32.mrf.mxu1 }
 0x13c   : > { %v12338_v17 = vadd.f32 %v1351_v9, %v12280_v24  ;;  %v12341_v18 = vadd.f32 %v1392_v10, %v12283_v26  ;;  %10527 = vmatpush3.bf16.msra.mxu1 %v11285_v5  ;;  %10507 = vmatpush3.bf16.msra.mxu0 %v11290_v14  ;;  %v11289_v24 = vld [vmem:[#allocation5 + $0x18] sm:$0xff]  }
 0x13d   : > { %v1353_v21 = vpop.f32.mrf.mxu0  ;;  %v1394_v22 = vpop.f32.mrf.mxu1  ;;  %10528 = vmatprep.subr.bf16.mxu1 %v14015_v1  ;;  %10508 = vmatprep.subr.bf16.mxu0 %v14015_v1 }
 0x13e   : > { %v12346_v23 = vadd.f32 %v1353_v21, %v12286_v34  ;;  %v12349_v27 = vadd.f32 %v1394_v22, %v12289_v35 }
 0x13f   : > { %v1355_v28 = vpop.f32.mrf.mxu0  ;;  %v1396_v26 = vpop.f32.mrf.mxu1 }
 0x140   : > { %10529 = vmatpush3.bf16.msra.mxu1 %v11287_v19  ;;  %10509 = vmatpush3.bf16.msra.mxu0 %v11292_v20 }
 0x141   : > { %v1356_v30 = vpop.f32.mrf.mxu0  ;;  %v1397_v31 = vpop.f32.mrf.mxu1  ;;  %10530 = vmatprep.subr.bf16.mxu1 %v14015_v1  ;;  %10510 = vmatprep.subr.bf16.mxu0 %v14015_v1 }
 0x143   : > { %v1433_v33 = vpop.f32.mrf.mxu0  ;;  %v1474_v34 = vpop.f32.mrf.mxu1 }
 0x144   : > { %v12354_v38 = vadd.f32 %v1433_v33, %v12298_v37  ;;  %v12357_v35 = vadd.f32 %v1474_v34, %v12301_v44  ;;  %10531 = vmatpush3.bf16.msra.mxu1 %v11289_v24  ;;  %10511 = vmatpush3.bf16.msra.mxu0 %v11294_v29  ;;  %v379_v29 = vld [vmem:[%s14006_s2] sm:$0xff]  ;;  %v11903_v33 = vmov 1983009808  }
 0x145   : > { %v1435_v39 = vpop.f32.mrf.mxu0  ;;  %v1476_v25 = vpop.f32.mrf.mxu1  ;;  %10532 = vmatprep.subr.bf16.mxu1 %v14015_v1  ;;  %10512 = vmatprep.subr.bf16.mxu0 %v14015_v1  ;;  %v4247_v34 = vunpack.c.l.s4 %v11903_v33 }
 0x146   : > { %v12362_v40 = vadd.f32 %v1435_v39, %v12304_v46  ;;  %v12365_v41 = vadd.f32 %v1476_v25, %v12307_v56 }
 0x147   : > { %v1437_v43 = vpop.f32.mrf.mxu0  ;;  %v1478_v37 = vpop.f32.mrf.mxu1 }
 0x148   : > { %10533 = vmatpush3.bf16.msra.mxu1 %v11291_v54  ;;  %10513 = vmatpush3.bf16.msra.mxu0 %v11296_v32 }
 0x149   : > { %v1438_v44 = vpop.f32.mrf.mxu0  ;;  %v1479_v45 = vpop.f32.mrf.mxu1  ;;  %10534 = vmatprep.subr.bf16.mxu1 %v14015_v1  ;;  %10514 = vmatprep.subr.bf16.mxu0 %v14015_v1 }
 0x14b   : > { %v1515_v50 = vpop.f32.mrf.mxu0  ;;  %v1556_v51 = vpop.f32.mrf.mxu1 }
 0x14c   : > { %v12370_v55 = vadd.f32 %v1515_v50, %v12318_v0  ;;  %v12373_v46 = vadd.f32 %v1556_v51, %v12321_v3  ;;  %10535 = vmatpush3.bf16.msra.mxu1 %v11293_v42  ;;  %10515 = vmatpush3.bf16.msra.mxu0 %v11298_v36  ;;  %v2400_v3 = vshrl.u32 %v14014_v63, 7 }
 0x14d   : > { %v1517_v56 = vpop.f32.mrf.mxu0  ;;  %v1558_v48 = vpop.f32.mrf.mxu1  ;;  %10536 = vmatprep.subr.bf16.mxu1 %v14015_v1  ;;  %10516 = vmatprep.subr.bf16.mxu0 %v14015_v1 }
 0x14e   : > { %v12378_v49 = vadd.f32 %v1517_v56, %v12326_v11  ;;  %v12381_v57 = vadd.f32 %v1558_v48, %v12329_v12  ;;  %v12386_v12 = vsub.s32 0, %v2400_v3  ;;  %v12388_v5 = vsub.s32 2, %v2400_v3 }
 0x14f   : > { %v1519_v58 = vpop.f32.mrf.mxu0  ;;  %v1560_v59 = vpop.f32.mrf.mxu1  ;;  %v12396_v16 = vsub.s32 1, %v2400_v3  ;;  %v12398_v9 = vsub.s32 3, %v2400_v3  ;;  %v12409_v30 = vsub.s32 4, %v2400_v3  ;;  %v12411_v31 = vsub.s32 6, %v2400_v3 }
 0x150   : > { %10537 = vmatpush3.bf16.msra.mxu1 %v11295_v61  ;;  %10517 = vmatpush3.bf16.msra.mxu0 %v11300_v47  ;;  %14084 = vst [vmem:[#allocation13_spill] sm:$0xff] %v12386_v12  ;;  %14085 = vst [vmem:[#allocation14_spill] sm:$0xff] %v12388_v5  ;;  %v12413_v42 = vsub.s32 5, %v2400_v3  ;;  %v12415_v36 = vsub.s32 7, %v2400_v3  ;;  %v12420_v44 = vrot.slane %v379_v29, %v12386_v12  ;;  %v4248_v47 = vunpack.c.0.s8 %v4247_v34 }
 0x151   : > { %v1520_v60 = vpop.f32.mrf.mxu0  ;;  %v1561_v62 = vpop.f32.mrf.mxu1  ;;  %10562 = vmatprep.subr.bf16.mxu1 %v14015_v1  ;;  %10542 = vmatprep.subr.bf16.mxu0 %v14015_v1  ;;  %14086 = vst [vmem:[#allocation15_spill] sm:$0xff] %v12396_v16  ;;  %14087 = vst [vmem:[#allocation16_spill] sm:$0xff] %v12398_v9  ;;  %v12423_v45 = vrot.slane %v379_v29, %v12388_v5  ;;  %v12426_v51 = vrot.slane %v379_v29, %v12396_v16 }
 0x152   : > { %14088 = vst [vmem:[#allocation17_spill] sm:$0xff] %v12409_v30  ;;  %14089 = vst [vmem:[#allocation18_spill] sm:$0xff] %v12411_v31  ;;  %v12429_v56 = vrot.slane %v379_v29, %v12398_v9 }
 0x153   : > { %v1757_v52 = vpop.f32.mrf.mxu0  ;;  %v1798_v53 = vpop.f32.mrf.mxu1  ;;  %14090 = vst [vmem:[#allocation19_spill] sm:$0xff] %v12413_v42  ;;  %14091 = vst [vmem:[#allocation20_spill] sm:$0xff] %v12415_v36 }
 0x154   : > { %v1969_v43 = vadd.f32 %v1757_v52, %v12338_v17  ;;  %v1971_v37 = vadd.f32 %v1798_v53, %v12341_v18  ;;  %14092 = vst [vmem:[#allocation21_spill] sm:$0xff] %v12420_v44  ;;  %14093 = vst [vmem:[#allocation22_spill] sm:$0xff] %v12423_v45 }
 0x155   : > { %v1759_v2 = vpop.f32.mrf.mxu0  ;;  %v1800_v0 = vpop.f32.mrf.mxu1  ;;  %14094 = vst [vmem:[#allocation23_spill] sm:$0xff] %v12426_v51  ;;  %14095 = vst [vmem:[#allocation24_spill] sm:$0xff] %v12429_v56 }
 0x156   : > { %v1970_v48 = vadd.f32 %v1759_v2, %v12346_v23  ;;  %v1972_v17 = vadd.f32 %v1800_v0, %v12349_v27  ;;  %v12438_v23 = vrot.slane %v379_v29, %v12409_v30 }
 0x157   : > { %v1761_v4 = vpop.f32.mrf.mxu0  ;;  %v1802_v7 = vpop.f32.mrf.mxu1 }
 0x158   : > { %v12435_v7 = vsub.s32 %v4248_v47, %v2400_v3  ;;  %14096 = vst [vmem:[#allocation25_spill] sm:$0xff] %v12438_v23  ;;  %v12446_v3 = vrot.slane %v379_v29, %v12411_v31 }
 0x159   : > { %v1762_v8 = vpop.f32.mrf.mxu0  ;;  %v1803_v11 = vpop.f32.mrf.mxu1 }
 0x15a   : > { %14097 = vst [vmem:[#allocation26_spill] sm:$0xff] %v12446_v3 }
 0x15b   : > { %v1839_v6 = vpop.f32.mrf.mxu0  ;;  %v12390_v13 = vpop.f32.mrf.mxu1 }
 0x15d   : > { %v12392_v14 = vpop.f32.mrf.mxu0  ;;  %v12394_v15 = vpop.f32.mrf.mxu1 }
 0x15f   : > { %v1843_v10 = vpop.f32.mrf.mxu0  ;;  %v1884_v19 = vpop.f32.mrf.mxu1 }
 0x160   : > { %v12443_v19 = vadd.f32 %v1839_v6, %v12354_v38  ;;  %v12458_v38 = vadd.f32 %v12390_v13, %v12357_v35  ;;  %v12462_v6 = vadd.f32 %v12392_v14, %v12362_v40 }
 0x161   : > { %v1844_v20 = vpop.f32.mrf.mxu0  ;;  %v1885_v21 = vpop.f32.mrf.mxu1 }
 0x163   : > { %v1921_v22 = vpop.f32.mrf.mxu0  ;;  %v12400_v24 = vpop.f32.mrf.mxu1 }
 0x165   : > { %v12402_v28 = vpop.f32.mrf.mxu0  ;;  %v12404_v26 = vpop.f32.mrf.mxu1 }
 0x167   : > { %v1925_v54 = vpop.f32.mrf.mxu0  ;;  %v1966_v32 = vpop.f32.mrf.mxu1 }
 0x168   : > { %v12449_v54 = vrot.slane %v379_v29, %v12413_v42  ;;  %v12452_v32 = vrot.slane %v379_v29, %v12415_v36  ;;  %v12469_v29 = vadd.f32 %v1921_v22, %v12370_v55 }
 0x169   : > { %v1926_v39 = vpop.f32.mrf.mxu0  ;;  %v1967_v25 = vpop.f32.mrf.mxu1 }
 0x16a   : > { %14098 = vst [vmem:[#allocation27_spill] sm:$0xff] %v12449_v54  ;;  %14099 = vst [vmem:[#allocation28_spill] sm:$0xff] %v12452_v32 }
 0x16b   : > { %v2173_v61 = vpop.f32.mrf.mxu0  ;;  %v2214_v50 = vpop.f32.mrf.mxu1 }
 0x16c   : > { %v2385_v18 = vadd.f32 %v2173_v61, %v1969_v43  ;;  %v2387_v58 = vadd.f32 %v2214_v50, %v1971_v37  ;;  %v12466_v43 = vadd.f32 %v12394_v15, %v12365_v41 }
 0x16d   : > { %v2175_v59 = vpop.f32.mrf.mxu0  ;;  %v2216_v60 = vpop.f32.mrf.mxu1 }
 0x16e   : > { %v2459_v62 = vadd.f32 %v12420_v44, %v2385_v18  ;;  %v2461_v52 = vadd.f32 %v12423_v45, %v2387_v58  ;;  %v2386_v53 = vadd.f32 %v2175_v59, %v1970_v48  ;;  %v2388_v4 = vadd.f32 %v2216_v60, %v1972_v17 }
 0x16f   : > { %v2177_v8 = vpop.f32.mrf.mxu0  ;;  %v2218_v11 = vpop.f32.mrf.mxu1 }
 0x170   : > { %v2471_v27 = vmax.f32 %v2459_v62, 0.0  ;;  %v2473_v2 = vmax.f32 %v2461_v52, 0.0  ;;  %v2460_v0 = vadd.f32 %v12426_v51, %v2386_v53  ;;  %v2462_v10 = vadd.f32 %v12429_v56, %v2388_v4 }
 0x171   : > { %v2178_v20 = vpop.f32.mrf.mxu0  ;;  %v2219_v21 = vpop.f32.mrf.mxu1 }
 0x172   : > { %v2483_v33 = vpack.c.bf16 %v2471_v27, %v2471_v27  ;;  %v12454_v34 = vpack.c.bf16 %v2473_v2, %v2473_v2  ;;  %v2472_v39 = vmax.f32 %v2460_v0, 0.0  ;;  %v2474_v25 = vmax.f32 %v2462_v10, 0.0 }
 0x173   : > { %v2255_v37 = vpop.f32.mrf.mxu0  ;;  %v2296_v61 = vpop.f32.mrf.mxu1 }
 0x174   : > { %v2496_v47 = vsel %vm2495_vm2, %v2483_v33, 0  ;;  %v2540_v50 = vshrl.u32 %v2483_v33, 16  ;;  %v2569_v48 = vrot.slane %v2483_v33, 1  ;;  %v2637_v17 = vrot.slane %v2483_v33, 2 }
 0x175   : > { %v2502_v35 = vrot.slane %v12454_v34, 7  ;;  %v2613_v13 = vshrl.u32 %v12454_v34, 16  ;;  %v2644_v40 = vrot.slane %v12454_v34, 1  ;;  %v2484_v14 = vpack.c.bf16 %v2472_v39, %v2472_v39  ;;  %v2257_v18 = vpop.f32.mrf.mxu0  ;;  %v2298_v41 = vpop.f32.mrf.mxu1 }
 0x176   : > { %v2542_v15 = vsel %vm2495_vm2, %v2540_v50, 0  ;;  %v2570_v55 = vsel %vm2495_vm2, %v2569_v48, 0  ;;  %v2608_v22 = vshrl.u32 %v2569_v48, 16  ;;  %v2638_v58 = vsel %vm2495_vm2, %v2637_v17, 0 }
 0x177   : > { %v2676_v59 = vshrl.u32 %v2637_v17, 16  ;;  %v2545_v60 = vshrl.u32 %v2502_v35, 16  ;;  %v2681_v62 = vshrl.u32 %v2644_v40, 16  ;;  %v2498_v52 = vshll.u32 %v2484_v14, 16  ;;  %v2259_v53 = vpop.f32.mrf.mxu0  ;;  %v2300_v4 = vpop.f32.mrf.mxu1 }
 0x178   : > { %v2610_v8 = vsel %vm2495_vm2, %v2608_v22, 0  ;;  %v2543_v11 = vsel %vm2500_vm3, %v2484_v14, %v2542_v15  ;;  %v2571_v27 = vrot.slane %v2484_v14, 1  ;;  %v2639_v2 = vrot.slane %v2484_v14, 2 }
 0x179   : > { %v2678_v0 = vsel %vm2495_vm2, %v2676_v59, 0  ;;  %v2501_v10 = vsel %vm2500_vm3, %v2498_v52, %v2496_v47  ;;  %v2547_v20 = vsel %vm2503_vm4, %v2545_v60, %v2543_v11  ;;  %v2486_v21 = vpack.c.bf16 %v2474_v25, %v2474_v25  ;;  %v2260_v33 = vpop.f32.mrf.mxu0  ;;  %v2301_v39 = vpop.f32.mrf.mxu1  ;;  %v380_v47 = vld [vmem:[%s14006_s2 + $0x8] sm:$0xf] }
 0x17a   : > { %v2504_v50 = vsel %vm2503_vm4, %v2502_v35, %v2501_v10  ;;  %v2573_v48 = vshll.u32 %v2571_v27, 16  ;;  %v2641_v17 = vshll.u32 %v2639_v2, 16  ;;  %v2679_v22 = vsel %vm2500_vm3, %v2639_v2, %v2678_v0 }
 0x17b   : > { %v2505_v53 = vrot.slane %v2486_v21, 7  ;;  %v2578_v15 = vshll.u32 %v2486_v21, 16  ;;  %v2611_v14 = vsel %vm2500_vm3, %v2571_v27, %v2610_v8  ;;  %v2646_v4 = vrot.slane %v2486_v21, 1  ;;  %v2337_v59 = vpop.f32.mrf.mxu0  ;;  %v12489_v25 = vpop.f32.mrf.mxu1 }
 0x17c   : > { %v2575_v60 = vsel %vm2500_vm3, %v2573_v48, %v2570_v55  ;;  %v2643_v35 = vsel %vm2500_vm3, %v2641_v17, %v2638_v58  ;;  %v2615_v52 = vsel %vm2503_vm4, %v2613_v13, %v2611_v14  ;;  %v2389_v11 = vadd.f32 %v2255_v37, %v12443_v19 }
 0x17d   : > { %v2507_v2 = vshll.u32 %v2505_v53, 16  ;;  %v2548_v0 = vsel %vm2509_vm5, %v2505_v53, %v2547_v20  ;;  %v2576_v8 = vsel %vm2503_vm4, %v12454_v34, %v2575_v60  ;;  %v2616_v27 = vsel %vm2509_vm5, %v2486_v21, %v2615_v52  ;;  %v2339_v10 = vpop.f32.mrf.mxu0  ;;  %v12499_v33 = vpop.f32.mrf.mxu1 }
 0x17e   : > { %v2580_v39 = vsel %vm2509_vm5, %v2578_v15, %v2576_v8  ;;  %v2648_v55 = vshll.u32 %v2646_v4, 16  ;;  %v2463_v58 = vadd.f32 %v12438_v23, %v2389_v11  ;;  %v2645_v13 = vsel %vm2503_vm4, %v2644_v40, %v2643_v35 }
 0x17f   : > { %v2510_v19 = vsel %vm2509_vm5, %v2507_v2, %v2504_v50  ;;  %v2391_v37 = vadd.f32 %v2296_v61, %v12458_v38  ;;  %v2390_v20 = vadd.f32 %v2257_v18, %v12462_v6  ;;  %v2683_v34 = vsel %vm2503_vm4, %v2681_v62, %v2679_v22  ;;  %v2341_v48 = vpop.f32.mrf.mxu0  ;;  %v2382_v21 = vpop.f32.mrf.mxu1 }
 0x180   : > { %v2475_v17 = vmax.f32 %v2463_v58, 0.0  ;;  %v2650_v53 = vsel %vm2509_vm5, %v2648_v55, %v2645_v13  ;;  %v2684_v15 = vsel %vm2509_vm5, %v2646_v4, %v2683_v34  ;;  %v12511_v14 = vrot.slane %v380_v47, %v12386_v12 }
 0x181   : > { %v2465_v40 = vadd.f32 %v12446_v3, %v2391_v37  ;;  %v2464_v50 = vadd.f32 %v12449_v54, %v2390_v20  ;;  %v2392_v38 = vadd.f32 %v2298_v41, %v12466_v43  ;;  %v2393_v6 = vadd.f32 %v2337_v59, %v12469_v29  ;;  %v2342_v61 = vpop.f32.mrf.mxu0  ;;  %v2383_v18 = vpop.f32.mrf.mxu1 }
 0x182   : > { %14100 = vst [vmem:[#allocation29_spill] sm:$0xff] %v12511_v14  ;;  %v2487_v62 = vpack.c.bf16 %v2475_v17, %v2475_v17  ;;  %v12518_v22 = vrot.slane %v380_v47, %v12388_v5  ;;  %v12521_v4 = vrot.slane %v380_v47, %v12396_v16  ;;  %v12524_v60 = vrot.slane %v380_v47, %v12398_v9 }
 0x183   : > { %v1979_v35 = vadd.f32 %v12400_v24, %v12373_v46  ;;  %v1978_v43 = vadd.f32 %v12402_v28, %v12378_v49  ;;  %v2477_v41 = vmax.f32 %v2465_v40, 0.0  ;;  %v2476_v29 = vmax.f32 %v2464_v50, 0.0  ;;  %v12530_v59 = vpop.f32.mrf.mxu0  ;;  %v12532_v52 = vpop.f32.mrf.mxu1 }
 0x184   : > { %14101 = vst [vmem:[#allocation30_spill] sm:$0xff] %v12518_v22  ;;  %14102 = vst [vmem:[#allocation31_spill] sm:$0xff] %v12521_v4  ;;  %v1980_v11 = vadd.f32 %v12404_v26, %v12381_v57  ;;  %v2511_v2 = vrot.slane %v2487_v62, 6  ;;  %v2581_v8 = vrot.slane %v2487_v62, 7  ;;  %v2651_v47 = vsel %vm2512_vm6, %v2487_v62, %v2650_v53 }
 0x185   : > { %14103 = vst [vmem:[#allocation32_spill] sm:$0xff] %v12524_v60  ;;  %v2489_v55 = vpack.c.bf16 %v2477_v41, %v2477_v41  ;;  %v2488_v58 = vpack.c.bf16 %v2476_v29, %v2476_v29  ;;  %v2466_v46 = vadd.f32 %v12452_v32, %v2392_v38  ;;  %v2467_v24 = vadd.f32 %v12511_v14, %v2393_v6  ;;  %v12539_v49 = vpop.f32.mrf.mxu0  ;;  %v12541_v28 = vpop.f32.mrf.mxu1  ;;  %v11299_v32 = vld [vmem:[#allocation5 + $0xf0] sm:$0xff]  }
 0x186   : > { %v12544_v13 = vsel %vm2512_vm6, %v2511_v2, %v2510_v19  ;;  %v2550_v37 = vshrl.u32 %v2511_v2, 16  ;;  %v2582_v57 = vsel %vm2512_vm6, %v2581_v8, %v2580_v39  ;;  %v2618_v26 = vshrl.u32 %v2581_v8, 16 }
 0x187   : > { %v2686_v20 = vshrl.u32 %v2487_v62, 16  ;;  %v2555_v34 = vshrl.u32 %v2489_v55, 16  ;;  %v2588_v48 = vrot.slane %v2489_v55, 1  ;;  %v2656_v21 = vrot.slane %v2489_v55, 2  ;;  %v2743_v17 = vpop.f32.mrf.mxu0  ;;  %v2784_v53 = vpop.f32.mrf.mxu1 }
 0x188   : > { %v2552_v40 = vsel %vm2512_vm6, %v2550_v37, %v2548_v0  ;;  %v2620_v50 = vsel %vm2512_vm6, %v2618_v26, %v2616_v27  ;;  %v2514_v38 = vrot.slane %v2488_v58, 6  ;;  %v2583_v6 = vrot.slane %v2488_v58, 7 }
 0x189   : > { %v2478_v61 = vmax.f32 %v2466_v46, 0.0  ;;  %v2479_v18 = vmax.f32 %v2467_v24, 0.0  ;;  %v2395_v19 = vadd.f32 %v12489_v25, %v1979_v35  ;;  %v2394_v41 = vadd.f32 %v2339_v10, %v1978_v43  ;;  %v2744_v29 = vpop.f32.mrf.mxu0  ;;  %v2785_v39 = vpop.f32.mrf.mxu1 }
 0x18a   : > { %v2520_v62 = vsel %vm2495_vm2, %v2489_v55, 0  ;;  %v2623_v2 = vshrl.u32 %v2588_v48, 16  ;;  %v12552_v8 = vsel %vm2518_vm7, %v2514_v38, %v2552_v40  ;;  %v2585_v17 = vshll.u32 %v2583_v6, 16 }
 0x18b   : > { %v2691_v53 = vshrl.u32 %v2656_v21, 16  ;;  %v12555_v0 = vsel %vm2518_vm7, %v2583_v6, %v2620_v50  ;;  %v2653_v27 = vshll.u32 %v2488_v58, 16  ;;  %v2688_v46 = vsel %vm2512_vm6, %v2686_v20, %v2684_v15  ;;  %v12558_v24 = vpop.f32.mrf.mxu0  ;;  %v12560_v25 = vpop.f32.mrf.mxu1 }
 0x18c   : > { %v2557_v10 = vsel %vm2495_vm2, %v2555_v34, 0  ;;  %v2589_v35 = vsel %vm2495_vm2, %v2588_v48, 0  ;;  %v12565_v43 = vsel %vm2518_vm7, %v2585_v17, %v2582_v57  ;;  %v12568_v55 = vsel %vm2518_vm7, %v2488_v58, %v2688_v46 }
 0x18d   : > { %14104 = vst [vmem:[#allocation33_spill] sm:$0xff] %v12568_v55  ;;  %v12571_v37 = vsel %vm2518_vm7, %v2653_v27, %v2651_v47  ;;  %v12575_v15 = vrot.slane %v12568_v55, %v12435_v7  ;;  %v2469_v26 = vadd.f32 %v12518_v22, %v2395_v19  ;;  %v2396_v20 = vadd.f32 %v12499_v33, %v1980_v11  ;;  %v12579_v34 = vpop.f32.mrf.mxu0  ;;  %v12581_v48 = vpop.f32.mrf.mxu1 }
 0x18e   : > { %v2657_v57 = vsel %vm2495_vm2, %v2656_v21, 0  ;;  %v2490_v40 = vpack.c.bf16 %v2478_v61, %v2478_v61  ;;  %v2491_v47 = vpack.c.bf16 %v2479_v18, %v2479_v18  ;;  %v2625_v50 = vsel %vm2495_vm2, %v2623_v2, 0 }
 0x18f   : > { %14105 = vst [vmem:[#allocation34_spill] sm:$0xff] %v12575_v15  ;;  %v2693_v6 = vsel %vm2495_vm2, %v2691_v53, 0  ;;  %v2516_v29 = vshll.u32 %v2514_v38, 16  ;;  %v12590_v19 = vrot.slane %v12552_v8, %v12435_v7  ;;  %v2825_v33 = vpop.f32.mrf.mxu0  ;;  %v2866_v11 = vpop.f32.mrf.mxu1  ;;  %v12595_v61 = vrot.slane %v12565_v43, %v12435_v7 }
 0x190   : > { %v2522_v39 = vshll.u32 %v2490_v40, 16  ;;  %v2558_v17 = vsel %vm2500_vm3, %v2490_v40, %v2557_v10  ;;  %v2590_v21 = vrot.slane %v2490_v40, 1  ;;  %v2658_v27 = vrot.slane %v2490_v40, 2 }
 0x191   : > { %v2525_v2 = vrot.slane %v2491_v47, 7  ;;  %v2628_v53 = vshrl.u32 %v2491_v47, 16  ;;  %v2826_v38 = vpop.f32.mrf.mxu0  ;;  %v2867_v46 = vpop.f32.mrf.mxu1  ;;  %v2663_v40 = vrot.slane %v2491_v47, 1  ;;  %v2481_v31 = vmax.f32 %v2469_v26, 0.0 }
 0x192   : > { %v2524_v63 = vsel %vm2500_vm3, %v2522_v39, %v2520_v62  ;;  %v2592_v58 = vshll.u32 %v2590_v21, 16  ;;  %v2660_v33 = vshll.u32 %v2658_v27, 16  ;;  %v2694_v11 = vsel %vm2500_vm3, %v2658_v27, %v2693_v6 }
 0x193   : > { %v2526_v10 = vsel %vm2503_vm4, %v2525_v2, %v2524_v63  ;;  %v2560_v1 = vshrl.u32 %v2525_v2, 16  ;;  %v12601_v30 = vpop.f32.mrf.mxu0  ;;  %v12603_v36 = vpop.f32.mrf.mxu1  ;;  %v2468_v46 = vadd.f32 %v12521_v4, %v2394_v41  ;;  %v2626_v62 = vsel %vm2500_vm3, %v2590_v21, %v2625_v50 }
 0x194   : > { %v2662_v18 = vsel %vm2500_vm3, %v2660_v33, %v2657_v57  ;;  %v2594_v38 = vsel %vm2500_vm3, %v2592_v58, %v2589_v35  ;;  %v2696_v27 = vshrl.u32 %v2663_v40, 16  ;;  %v12616_v42 = vpack.c.bf16 %v2481_v31, %v2481_v31 }
 0x195   : > { %v2562_v39 = vsel %vm2503_vm4, %v2560_v1, %v2558_v17  ;;  %v2595_v6 = vsel %vm2503_vm4, %v2491_v47, %v2594_v38  ;;  %v2664_v63 = vsel %vm2503_vm4, %v2663_v40, %v2662_v18  ;;  %v12612_v26 = vpop.f32.mrf.mxu0  ;;  %v12614_v2 = vpop.f32.mrf.mxu1  ;;  %v2480_v57 = vmax.f32 %v2468_v46, 0.0 }
 0x196   : > { %v2630_v35 = vsel %vm2503_vm4, %v2628_v53, %v2626_v62  ;;  %v2470_v41 = vadd.f32 %v12524_v60, %v2396_v20  ;;  %v12622_v58 = vrot.slane %v12555_v0, %v12435_v7  ;;  %v2698_v1 = vsel %vm2503_vm4, %v2696_v27, %v2694_v11 }
 0x197   : > { %v12627_v47 = vsel %vm2518_vm7, %v2516_v29, %v12544_v13  ;;  %v4356_v50 = vcombine.low %v12565_v43, %v12555_v0  ;;  %v2907_v31 = vpop.f32.mrf.mxu0  ;;  %v2948_v17 = vpop.f32.mrf.mxu1  ;;  %v14035_v18 = vrot.slane %v12616_v42, 6  ;;  %v2600_v20 = vrot.slane %v12616_v42, 7 }
 0x198   : > { %v2492_v53 = vpack.c.bf16 %v2480_v57, %v2480_v57  ;;  %v12636_v33 = vrot.slane %v12571_v37, %v12435_v7  ;;  %v2701_v11 = vshrl.u32 %v12616_v42, 16  ;;  %v2482_v13 = vmax.f32 %v2470_v41, 0.0 }
 0x199   : > { %v4355_v29 = vcombine.low %v12627_v47, %v12552_v8  ;;  %v2908_v40 = vpop.f32.mrf.mxu0  ;;  %v2949_v38 = vpop.f32.mrf.mxu1  ;;  %v2633_v46 = vshrl.u32 %v2600_v20, 16  ;;  %v12642_v31 = vrot.slane %v4356_v50, %v12435_v7  ;;  %v2565_v57 = vshrl.u32 %v14035_v18, 16 }
 0x19a   : > { %v2527_v62 = vrot.slane %v2492_v53, 7  ;;  %v2597_v27 = vshll.u32 %v2492_v53, 16  ;;  %v2631_v17 = vsel %vm2509_vm5, %v2492_v53, %v2630_v35  ;;  %v2665_v21 = vrot.slane %v2492_v53, 1 }
 0x19b   : > { %14106 = vst [vmem:[#allocation35_spill] sm:$0xff] %v12642_v31  ;;  %v2494_v5 = vpack.c.bf16 %v2482_v13, %v2482_v13  ;;  %v12647_v12 = vpop.f32.mrf.mxu0  ;;  %v12649_v41 = vpop.f32.mrf.mxu1  ;;  %v2635_v16 = vsel %vm2512_vm6, %v2633_v46, %v2631_v17  ;;  %v14110_v3 = vmov 0.0   ;;  %v14111_v51 = vrot.slane %v12616_v42, 6 }
 0x19c   : > { %v2529_v9 = vshll.u32 %v2527_v62, 16  ;;  %v2563_v40 = vsel %vm2509_vm5, %v2527_v62, %v2562_v39  ;;  %v2599_v38 = vsel %vm2509_vm5, %v2597_v27, %v2595_v6  ;;  %v2667_v60 = vshll.u32 %v2665_v21, 16 }
 0x19d   : > { %v2601_v50 = vsel %vm2512_vm6, %v2600_v20, %v2599_v38  ;;  %v2534_v4 = vrot.slane %v2494_v5, 6  ;;  %v2567_v18 = vsel %vm2512_vm6, %v2565_v57, %v2563_v40  ;;  %v12656_v35 = vpop.f32.mrf.mxu0  ;;  %v12658_v53 = vpop.f32.mrf.mxu1  ;;  %v2602_v22 = vrot.slane %v2494_v5, 7 }
 0x19e   : > { %v2531_v13 = vsel %vm2509_vm5, %v2529_v9, %v2526_v10  ;;  %v2699_v14 = vsel %vm2509_vm5, %v2665_v21, %v2698_v1  ;;  %v4363_v39 = vrot.slane %v4355_v29, %v12435_v7  ;;  %v2669_v6 = vsel %vm2509_vm5, %v2667_v60, %v2664_v63 }
 0x19f   : > { %v12665_v46 = vsel %vm2518_vm7, %v2534_v4, %v2567_v18  ;;  %v2672_v20 = vshll.u32 %v2494_v5, 16  ;;  %v2703_v62 = vsel %vm2512_vm6, %v2701_v11, %v2699_v14  ;;  %v2989_v27 = vpop.f32.mrf.mxu0  ;;  %v3030_v57 = vpop.f32.mrf.mxu1  ;;  %v2604_v17 = vshll.u32 %v2602_v22, 16 }
 0x1a0   : > { %v12669_v40 = vsel %vm2518_vm7, %v2602_v22, %v2635_v16  ;;  %v2670_v9 = vsel %vm2512_vm6, %v12616_v42, %v2669_v6  ;;  %v12674_v10 = vsel %vm2518_vm7, %v2494_v5, %v2703_v62  ;;  %v12681_v63 = vrot.slane %v12665_v46, %v12435_v7  ;;  %v11297_v22 = vld [vmem:[#allocation5 + $0xf8] sm:$0xff]  }
 0x1a1   : > { %14107 = vst [vmem:[#allocation36_spill] sm:$0xff] %v12674_v10  ;;  %v12677_v60 = vsel %vm2518_vm7, %v2672_v20, %v2670_v9  ;;  %v12685_v14 = vrot.slane %v12669_v40, %v12435_v7  ;;  %v12689_v16 = vrot.slane %v12674_v10, %v12435_v7  ;;  %v2990_v1 = vpop.f32.mrf.mxu0  ;;  %v3031_v21 = vpop.f32.mrf.mxu1  ;;  %v12692_v5 = vsel %vm2518_vm7, %v2604_v17, %v2601_v50 }
 0x1a2   : > { %v12696_v18 = vrot.slane %v12677_v60, %v12435_v7  ;;  %v4371_v29 = vcombine.low %v4363_v39, %v12642_v31  ;;  %v4730_v38 = vshrl.u32 %v12681_v63, 16  ;;  %v4733_v6 = vshll.u32 %v12681_v63, 16 }
 0x1a3   : > { %14108 = vst [vmem:[#allocation37_spill] sm:$0xff] %v12689_v16  ;;  %v4758_v20 = vshrl.u32 %v12685_v14, 16  ;;  %v3067_v62 = vpop.f32.mrf.mxu0  ;;  %v3108_v27 = vpop.f32.mrf.mxu1  ;;  %v12706_v50 = vcombine.high %v12590_v19, %v12590_v19  ;;  %v2536_v57 = vshll.u32 %v2534_v4, 16  ;;  %v4761_v17 = vshll.u32 %v12685_v14, 16 }
 0x1a4   : > { %14109 = vst [vmem:[#allocation38_spill] sm:$0xff] %v12696_v18  ;;  %v6287_v9 = vshrl.u32 %v12696_v18, 16  ;;  %10539 = vmatmul.mubr.bf16.vlgmr.msra.gmra.mxu1 %v4371_v29  ;;  %v12712_v39 = vrot.slane %v12627_v47, %v12435_v7  ;;  %v12716_v1 = vrot.slane %v12692_v5, %v12435_v7  ;;  %v12718_v21 = vrot.slane %v4730_v38, 6 }
 0x1a5   : > { %v6290_v4 = vshll.u32 %v12696_v18, 16  ;;  %10563 = vmatpush3.bf16.msra.mxu1 %v11297_v22  ;;  %v3069_v54 = vpop.f32.mrf.mxu0  ;;  %v3110_v29 = vpop.f32.mrf.mxu1  ;;  %10578 = vmatprep.mubr.msk.bf16.mxu1 %vm11902_vm1, %v14110_v3  ;;  %v12725_v47 = vrot.slane %v4733_v6, 7  ;;  %v12727_v23 = vrot.slane %v4758_v20, 6  ;;  %v7623_v56 = vshrl.u32 %v12689_v16, 16 }
 0x1a6   : > { %10564 = vmatprep.subr.bf16.mxu1 %v14110_v3  ;;  %v12733_v11 = vrot.slane %v4761_v17, 7  ;;  %v7626_v22 = vshll.u32 %v12689_v16, 16  ;;  %v2533_v45 = vsel %vm2512_vm6, %v14111_v51, %v2531_v13  ;;  %v4245_v6 = vcombine.low %v12692_v5, %v12669_v40 }
 0x1a7   : > { %v3071_v20 = vpop.f32.mrf.mxu0  ;;  %v3112_v44 = vpop.f32.mrf.mxu1  ;;  %v12741_v31 = vrot.slane %v6287_v9, 6  ;;  %v2538_v38 = vsel %vm2518_vm7, %v2536_v57, %v2533_v45  ;;  %v12746_v17 = vadd.f32 %v12647_v12, %v12530_v59  ;;  %v12750_v10 = vadd.f32 %v12649_v41, %v12532_v52 }
 0x1a8   : > { %v12752_v42 = vrot.slane %v6290_v4, 7  ;;  %v12754_v51 = vrot.slane %v7623_v56, 6  ;;  %v12756_v13 = vrot.slane %v7626_v22, 7  ;;  %v11301_v44 = vld [vmem:[#allocation5 + $0xe8] sm:$0xff]   ;;  %v4244_v9 = vcombine.low %v2538_v38, %v12665_v46 }
 0x1a9   : > { %14112 = vst [vmem:[#allocation39_spill] sm:$0xff] %v12741_v31  ;;  %10565 = vmatpush3.bf16.msra.mxu1 %v11299_v32  ;;  %v3072_v20 = vpop.f32.mrf.mxu0  ;;  %v3113_v45 = vpop.f32.mrf.mxu1  ;;  %v4689_v12 = vrot.slane %v2538_v38, %v12435_v7  ;;  %v12763_v59 = vadd.f32 %v12656_v35, %v12539_v49  ;;  %v12767_v56 = vadd.f32 %v12658_v53, %v12541_v28  ;;  %v11302_v28 = vld [vmem:[#allocation5 + $0xb8] sm:$0xff]  }
 0x1aa   : > { %14113 = vst [vmem:[#allocation40_spill] sm:$0xff] %v12752_v42  ;;  %14114 = vst [vmem:[#allocation41_spill] sm:$0xff] %v12754_v51  ;;  %10566 = vmatprep.subr.bf16.mxu1 %v14110_v3  ;;  %v12770_v52 = vadd.f32 %v3067_v62, %v12558_v24  ;;  %v4252_v32 = vrot.slane %v4244_v9, %v12435_v7  ;;  %v12774_v41 = vrot.slane %v4245_v6, %v12435_v7 }
 0x1ab   : > { %14115 = vst [vmem:[#allocation42_spill] sm:$0xff] %v12756_v13  ;;  %v12777_v57 = vadd.f32 %v3108_v27, %v12560_v25  ;;  %v12780_v4 = vadd.f32 %v3069_v54, %v12579_v34  ;;  %v3149_v49 = vpop.f32.mrf.mxu0  ;;  %v3190_v35 = vpop.f32.mrf.mxu1  ;;  %v4716_v38 = vshrl.u32 %v4689_v12, 16  ;;  %v4719_v22 = vshll.u32 %v4689_v12, 16  ;;  %v11303_v34 = vld [vmem:[#allocation5 + $0xe0] sm:$0xff]  }
 0x1ac   : > { %14116 = vst [vmem:[#allocation43_spill] sm:$0xff] %v12774_v41  ;;  %v12783_v53 = vadd.f32 %v3110_v29, %v12581_v48  ;;  %v4690_v62 = vcombine.high %v4689_v12, %v4689_v12  ;;  %v4260_v54 = vcombine.low %v4252_v32, %v12774_v41  ;;  %v4698_v27 = vcombine.high %v12681_v63, %v12681_v63 }
 0x1ad   : > { %10567 = vmatpush3.bf16.msra.mxu1 %v11301_v44  ;;  %v4706_v48 = vcombine.high %v12716_v1, %v12716_v1  ;;  %v3151_v29 = vpop.f32.mrf.mxu0  ;;  %v3192_v6 = vpop.f32.mrf.mxu1  ;;  %v4718_v9 = vrot.slane %v4716_v38, 6  ;;  %v4721_v20 = vrot.slane %v4719_v22, 7  ;;  %v4714_v45 = vcombine.high %v12685_v14, %v12685_v14  ;;  %v11304_v14 = vld [vmem:[#allocation5 + $0xb0] sm:$0xff]  }
 0x1ae   : > { %10568 = vmatprep.subr.bf16.mxu1 %v14110_v3  ;;  %v4725_v12 = vshll.u32 %v4690_v62, 16  ;;  %10519 = vmatmul.mubr.bf16.vlgmr.msra.gmra.mxu0 %v4260_v54  ;;  %v4736_v63 = vor.u32 %v12725_v47, %v12718_v21  ;;  %v4739_v32 = vshll.u32 %v4698_v27, 16  ;;  %v4744_v38 = vshrl.u32 %v12716_v1, 16  ;;  %v11305_v21 = vld [vmem:[#allocation5 + $0xd8] sm:$0xff]  }
 0x1af   : > { %v4747_v22 = vshll.u32 %v12716_v1, 16  ;;  %v3153_v25 = vpop.f32.mrf.mxu0  ;;  %v3194_v41 = vpop.f32.mrf.mxu1  ;;  %10543 = vmatpush3.bf16.msra.mxu0 %v11302_v28  ;;  %v4722_v62 = vor.u32 %v4721_v20, %v4718_v9  ;;  %v4753_v55 = vshll.u32 %v4706_v48, 16  ;;  %v4764_v24 = vor.u32 %v12733_v11, %v12727_v23  ;;  %10558 = vmatprep.mubr.msk.bf16.mxu0 %vm11902_vm1, %v14110_v3  ;;  %v11357_v23 = vld [vmem:[#allocation5 + $0x268] sm:$0xff]  }
 0x1b0   : > { %v4727_v54 = vrot.slane %v4725_v12, 7  ;;  %10544 = vmatprep.subr.bf16.mxu0 %v14110_v3  ;;  %v4737_v47 = vrot.slane %v4736_v63, 2  ;;  %v4741_v27 = vrot.slane %v4739_v32, 7  ;;  %v4746_v1 = vrot.slane %v4744_v38, 6 }
 0x1b1   : > { %10569 = vmatpush3.bf16.msra.mxu1 %v11303_v34  ;;  %v4749_v25 = vrot.slane %v4747_v22, 7  ;;  %v3154_v41 = vpop.f32.mrf.mxu0  ;;  %v3195_v28 = vpop.f32.mrf.mxu1  ;;  %v4723_v11 = vrot.slane %v4722_v62, 2  ;;  %v4755_v34 = vrot.slane %v4753_v55, 7  ;;  %v4765_v48 = vrot.slane %v4764_v24, 2  ;;  %v11306_v55 = vld [vmem:[#allocation5 + $0xa8] sm:$0xff]  }
 0x1b2   : > { %10570 = vmatprep.subr.bf16.mxu1 %v14110_v3  ;;  %v4767_v9 = vshll.u32 %v4714_v45, 16  ;;  %v12827_v20 = vsel %vm12821_vm14, %v4737_v47, %v4741_v27  ;;  %v12830_v63 = vadd.f32 %v3149_v49, %v12601_v30  ;;  %v12833_v44 = vadd.f32 %v3190_v35, %v12603_v36  ;;  %v11307_v30 = vld [vmem:[#allocation5 + $0xd0] sm:$0xff]  }
 0x1b3   : > { %14123 = vst [vmem:[#allocation44_spill] sm:$0xff] %v12827_v20  ;;  %v4750_v12 = vor.u32 %v4749_v25, %v4746_v1  ;;  %v12835_v32 = vpop.f32.mrf.mxu0  ;;  %v12837_v38 = vpop.f32.mrf.mxu1  ;;  %10545 = vmatpush3.bf16.msra.mxu0 %v11304_v14  ;;  %v4728_v45 = vsel %vm12821_vm14, %v4723_v11, %v4727_v54  ;;  %v12842_v62 = vadd.f32 %v3151_v29, %v12612_v26  ;;  %v4502_v54 = vshrl.u32 %v12712_v39, 16  ;;  %v11308_v11 = vld [vmem:[#allocation5 + $0xa0] sm:$0xff]  }
 0x1b4   : > { %v4769_v22 = vrot.slane %v4767_v9, 7  ;;  %v12845_v24 = vadd.f32 %v3192_v6, %v12614_v2  ;;  %10546 = vmatprep.subr.bf16.mxu0 %v14110_v3  ;;  %v4788_v49 = vcombine.low %v4728_v45, %v12827_v20  ;;  %v12851_v35 = vcombine.high %v12712_v39, %v12712_v39 }
 0x1b5   : > { %10571 = vmatpush3.bf16.msra.mxu1 %v11305_v21  ;;  %v4751_v36 = vrot.slane %v4750_v12, 2  ;;  %v12855_v14 = vcombine.high %v12595_v61, %v12595_v61  ;;  %v12857_v26 = vpop.f32.mrf.mxu0  ;;  %v12859_v29 = vpop.f32.mrf.mxu1  ;;  %v12868_v6 = vcombine.high %v12622_v58, %v12622_v58  ;;  %v4505_v21 = vshll.u32 %v12712_v39, 16 }
 0x1b6   : > { %10572 = vmatprep.subr.bf16.mxu1 %v14110_v3  ;;  %v12864_v2 = vsel %vm12821_vm14, %v4765_v48, %v4769_v22  ;;  %v12877_v27 = vrot.slane %v4788_v49, %v12435_v7  ;;  %v4511_v1 = vshll.u32 %v12851_v35, 16  ;;  %v4516_v25 = vshrl.u32 %v12590_v19, 16 }
 0x1b7   : > { %14124 = vst [vmem:[#allocation45_spill] sm:$0xff] %v12864_v2  ;;  %v12874_v47 = vsel %vm12821_vm14, %v4751_v36, %v4755_v34  ;;  %v3235_v41 = vpop.f32.mrf.mxu0  ;;  %v3276_v28 = vpop.f32.mrf.mxu1  ;;  %10547 = vmatpush3.bf16.msra.mxu0 %v11306_v55  ;;  %v4504_v9 = vrot.slane %v4502_v54, 6  ;;  %v4507_v12 = vrot.slane %v4505_v21, 7  ;;  %v4519_v45 = vshll.u32 %v12590_v19, 16  ;;  %v11309_v34 = vld [vmem:[#allocation5 + $0xc8] sm:$0xff]  }
 0x1b8   : > { %14125 = vst [vmem:[#allocation46_spill] sm:$0xff] %v12874_v47  ;;  %v4789_v48 = vcombine.low %v12874_v47, %v12864_v2  ;;  %10548 = vmatprep.subr.bf16.mxu0 %v14110_v3  ;;  %v4513_v22 = vrot.slane %v4511_v1, 7  ;;  %v4518_v36 = vrot.slane %v4516_v25, 6  ;;  %v4525_v49 = vshll.u32 %v12706_v50, 16 }
 0x1b9   : > { %10573 = vmatpush3.bf16.msra.mxu1 %v11307_v30  ;;  %v4530_v41 = vshrl.u32 %v12595_v61, 16  ;;  %v3236_v55 = vpop.f32.mrf.mxu0  ;;  %v3277_v28 = vpop.f32.mrf.mxu1  ;;  %v4508_v21 = vor.u32 %v4507_v12, %v4504_v9  ;;  %v4521_v2 = vrot.slane %v4519_v45, 7  ;;  %v4533_v30 = vshll.u32 %v12595_v61, 16  ;;  %v11311_v9 = vld [vmem:[#allocation5 + $0xc0] sm:$0xff]  }
 0x1ba   : > { %10574 = vmatprep.subr.bf16.mxu1 %v14110_v3  ;;  %v12889_v54 = vrot.slane %v4789_v48, %v12435_v7  ;;  %v4527_v20 = vrot.slane %v4525_v49, 7  ;;  %v4539_v1 = vshll.u32 %v12855_v14, 16  ;;  %v4544_v25 = vshrl.u32 %v12622_v58, 16  ;;  %v11310_v55 = vld [vmem:[#allocation5 + $0x98] sm:$0xff]  }
 0x1bb   : > { %v4532_v47 = vrot.slane %v4530_v41, 6  ;;  %v3313_v51 = vpop.f32.mrf.mxu0  ;;  %v3354_v13 = vpop.f32.mrf.mxu1  ;;  %10549 = vmatpush3.bf16.msra.mxu0 %v11308_v11  ;;  %v4509_v18 = vrot.slane %v4508_v21, 2  ;;  %v4522_v48 = vor.u32 %v4521_v2, %v4518_v36  ;;  %v4535_v42 = vrot.slane %v4533_v30, 7 }
 0x1bc   : > { %14126 = vst [vmem:[#allocation47_spill] sm:$0xff] %v12889_v54  ;;  %v4804_v28 = vcombine.low %v12877_v27, %v12889_v54  ;;  %10550 = vmatprep.subr.bf16.mxu0 %v14110_v3  ;;  %v4541_v12 = vrot.slane %v4539_v1, 7  ;;  %v4546_v45 = vrot.slane %v4544_v25, 6  ;;  %v4547_v49 = vshll.u32 %v12622_v58, 16 }
 0x1bd   : > { %10575 = vmatpush3.bf16.msra.mxu1 %v11309_v34  ;;  %v4553_v41 = vshll.u32 %v12868_v6, 16  ;;  %v3315_v31 = vpop.f32.mrf.mxu0  ;;  %v3356_v16 = vpop.f32.mrf.mxu1  ;;  %v4514_v2 = vsel %vm12821_vm14, %v4509_v18, %v4513_v22  ;;  %v4523_v27 = vrot.slane %v4522_v48, 2  ;;  %v4536_v34 = vor.u32 %v4535_v42, %v4532_v47  ;;  %v11312_v18 = vld [vmem:[#allocation5 + $0x90] sm:$0xff]  }
 0x1be   : > { %10576 = vmatprep.subr.bf16.mxu1 %v14110_v3  ;;  %v12910_v36 = vadd.f32 %v12835_v32, %v12746_v17  ;;  %v4549_v21 = vrot.slane %v4547_v49, 7  ;;  %v12914_v1 = vadd.f32 %v12837_v38, %v12750_v10  ;;  %v12918_v25 = vadd.f32 %v12857_v26, %v12763_v59  ;;  %v11324_v49 = vld [vmem:[#allocation5 + $0x170] sm:$0xff]  }
 0x1bf   : > { %v4555_v30 = vrot.slane %v4553_v41, 7  ;;  %v3317_v54 = vpop.f32.mrf.mxu0  ;;  %v3358_v15 = vpop.f32.mrf.mxu1  ;;  %10551 = vmatpush3.bf16.msra.mxu0 %v11310_v55  ;;  %v12922_v42 = vsel %vm12821_vm14, %v4523_v27, %v4527_v20  ;;  %v4537_v17 = vrot.slane %v4536_v34, 2  ;;  %v12926_v32 = vadd.f32 %v12859_v29, %v12767_v56 }
 0x1c0   : > { %v12929_v10 = vadd.f32 %v3313_v51, %v12770_v52  ;;  %10552 = vmatprep.subr.bf16.mxu0 %v14110_v3  ;;  %v4550_v15 = vor.u32 %v4549_v21, %v4546_v45  ;;  %v4574_v20 = vcombine.low %v4514_v2, %v12922_v42  ;;  %v12941_v38 = vadd.f32 %v3354_v13, %v12777_v57  ;;  %v11323_v52 = vld [vmem:[#allocation5 + $0x178] sm:$0xff]  }
 0x1c1   : > { %10577 = vmatpush3.bf16.msra.mxu1 %v11311_v9  ;;  %v3318_v56 = vpop.f32.mrf.mxu0  ;;  %v3359_v26 = vpop.f32.mrf.mxu1  ;;  %v9770_v51 = vrot.slane %v12712_v39, 9  ;;  %v12946_v29 = vsel %vm12821_vm14, %v4537_v17, %v4541_v12  ;;  %v12949_v47 = vadd.f32 %v3315_v31, %v12780_v4  ;;  %v12952_v22 = vadd.f32 %v3356_v16, %v12783_v53  ;;  %v11313_v4 = vld [vmem:[#allocation5 + $0x88] sm:$0xff]  }
 0x1c2   : > { %v4906_v54 = vrot.slane %v12851_v35, 7  ;;  %10602 = vmatprep.subr.bf16.mxu1 %v14110_v3  ;;  %v4551_v13 = vrot.slane %v4550_v15, 2  ;;  %v4582_v57 = vrot.slane %v4574_v20, %v12435_v7  ;;  %v9771_v31 = vrot.slane %v12590_v19, 9  ;;  %v11325_v15 = vld [vmem:[#allocation5 + $0x168] sm:$0xff]  }
 0x1c3   : > { %v3395_v55 = vpop.f32.mrf.mxu0  ;;  %v3436_v39 = vpop.f32.mrf.mxu1  ;;  %v4910_v16 = vrot.slane %v12706_v50, 7  ;;  %10553 = vmatpush3.bf16.msra.mxu0 %v11312_v18  ;;  %v9772_v12 = vrot.slane %v12595_v61, 9  ;;  %v9773_v45 = vrot.slane %v12622_v58, 9  ;;  %v4918_v2 = vrot.slane %v12868_v6, 7  ;;  %v11314_v6 = vld [vmem:[#allocation5 + $0x80] sm:$0xff]  }
 0x1c4   : > { %10579 = vmatmul.mubr.bf16.vlgmr.msra.gmra.mxu1 %v4804_v28  ;;  %v12967_v53 = vadd.f32 %v3395_v55, %v12830_v63  ;;  %v12970_v35 = vadd.f32 %v3436_v39, %v12833_v44  ;;  %v4907_v9 = vsel %vm12960_vm12, %v9770_v51, %v4906_v54  ;;  %10554 = vmatprep.subr.bf16.mxu0 %v14110_v3  ;;  %v4914_v44 = vrot.slane %v12855_v14, 7  ;;  %v14137_v39 = vld [vmem:[#allocation34_spill] sm:$0xff] }
 0x1c5   : > { %v12978_v19 = vsel %vm12821_vm14, %v4551_v13, %v4555_v30  ;;  %v3397_v50 = vpop.f32.mrf.mxu0  ;;  %v3438_v28 = vpop.f32.mrf.mxu1  ;;  %v12982_v63 = vsel %vm12960_vm12, %v9771_v31, %v4910_v16  ;;  %10603 = vmatpush3.bf16.msra.mxu1 %v11323_v52  ;;  %10618 = vmatprep.mubr.msk.bf16.mxu1 %vm11902_vm1, %v14110_v3  ;;  %v13012_v30 = vsel %vm12960_vm12, %v9773_v45, %v4918_v2  ;;  %v6142_v55 = vshll.u32 %v12636_v33, 16 }
 0x1c6   : > { %v4575_v61 = vcombine.low %v12946_v29, %v12978_v19  ;;  %v12989_v41 = vadd.f32 %v3397_v50, %v12842_v62  ;;  %v12992_v11 = vadd.f32 %v3438_v28, %v12845_v24  ;;  %10604 = vmatprep.subr.bf16.mxu1 %v14110_v3  ;;  %v13000_v27 = vsel %vm12960_vm12, %v9772_v12, %v4914_v44  ;;  %v14150_v12 = vld [vmem:[#allocation44_spill] sm:$0xff] }
 0x1c7   : > { %v3399_v14 = vpop.f32.mrf.mxu0  ;;  %v3440_v58 = vpop.f32.mrf.mxu1  ;;  %v4937_v34 = vcombine.low %v4907_v9, %v12982_v63  ;;  %v5894_v62 = vcombine.low %v12552_v8, %v12565_v43  ;;  %v5895_v24 = vcombine.low %v12555_v0, %v12571_v37  ;;  %10555 = vmatpush3.bf16.msra.mxu0 %v11313_v4  ;;  %v6021_v18 = vcombine.low %v12665_v46, %v12692_v5  ;;  %v11315_v9 = vld [vmem:[#allocation5 + $0x138] sm:$0xff]  }
 0x1c8   : > { %v13008_v21 = vrot.slane %v4575_v61, %v12435_v7  ;;  %v6022_v17 = vcombine.low %v12669_v40, %v12677_v60  ;;  %10556 = vmatprep.subr.bf16.mxu0 %v14110_v3  ;;  %v4938_v0 = vcombine.low %v13000_v27, %v13012_v30  ;;  %v6139_v46 = vshrl.u32 %v12636_v33, 16 }
 0x1c9   : > { %v3400_v8 = vpop.f32.mrf.mxu0  ;;  %v3441_v43 = vpop.f32.mrf.mxu1  ;;  %v13022_v59 = vrot.slane %v4937_v34, %v12435_v7  ;;  %10605 = vmatpush3.bf16.msra.mxu1 %v11324_v49  ;;  %v13025_v20 = vrot.slane %v5894_v62, %v12435_v7  ;;  %v13031_v40 = vrot.slane %v5895_v24, %v12435_v7  ;;  %v13034_v56 = vrot.slane %v6021_v18, %v12435_v7  ;;  %v11327_v49 = vld [vmem:[#allocation5 + $0x160] sm:$0xff]   ;;  %v14142_v18 = vld [vmem:[#allocation39_spill] sm:$0xff] }
 0x1ca   : > { %v4590_v5 = vcombine.low %v4582_v57, %v13008_v21  ;;  %10606 = vmatprep.subr.bf16.mxu1 %v14110_v3  ;;  %v13037_v26 = vrot.slane %v6022_v17, %v12435_v7  ;;  %v13044_v54 = vrot.slane %v4938_v0, %v12435_v7  ;;  %v6137_v13 = vcombine.high %v12636_v33, %v12636_v33  ;;  %v14140_v62 = vld [vmem:[#allocation37_spill] sm:$0xff]  ;;  %v14143_v17 = vld [vmem:[#allocation40_spill] sm:$0xff]  ;;  %v14144_v43 = vld [vmem:[#allocation38_spill] sm:$0xff] }
 0x1cb   : > { %14133 = vst [vmem:[#allocation48_spill] sm:$0xff] %v13031_v40  ;;  %14134 = vst [vmem:[#allocation49_spill] sm:$0xff] %v13034_v56  ;;  %v13039_v51 = vpop.f32.mrf.mxu0  ;;  %v13041_v52 = vpop.f32.mrf.mxu1  ;;  %v6141_v57 = vrot.slane %v6139_v46, 6  ;;  %v13051_v31 = vcombine.high %v14137_v39, %v14137_v39  ;;  %v14138_v16 = vshrl.u32 %v14137_v39, 16  ;;  %10557 = vmatpush3.bf16.msra.mxu0 %v11314_v6  ;;  %v6144_v61 = vrot.slane %v6142_v55, 7  ;;  %v14146_v46 = vld [vmem:[#allocation42_spill] sm:$0xff] }
 0x1cc   : > { %14135 = vst [vmem:[#allocation50_spill] sm:$0xff] %v13037_v26  ;;  %14136 = vst [vmem:[#allocation51_spill] sm:$0xff] %v13044_v54  ;;  %10582 = vmatprep.subr.bf16.mxu0 %v14110_v3  ;;  %v6148_v2 = vshll.u32 %v6137_v13, 16  ;;  %v6169_v14 = vcombine.low %v12922_v42, %v12946_v29  ;;  %v14139_v58 = vshll.u32 %v14137_v39, 16  ;;  %v14141_v24 = vcombine.high %v14140_v62, %v14140_v62  ;;  %v14147_v55 = vld [vmem:[#allocation41_spill] sm:$0xff]  ;;  %v11316_v26 = vld [vmem:[#allocation5 + $0x130] sm:$0xff]  }
 0x1cd   : > { %v13055_v4 = vrot.slane %v14138_v16, 6  ;;  %v13062_v28 = vpop.f32.mrf.mxu0  ;;  %v13064_v44 = vpop.f32.mrf.mxu1  ;;  %10607 = vmatpush3.bf16.msra.mxu1 %v11325_v15  ;;  %v6293_v8 = vor.u32 %v14143_v17, %v14142_v18  ;;  %v14145_v0 = vcombine.high %v14144_v43, %v14144_v43  ;;  %v14148_v42 = vor.u32 %v14146_v46, %v14147_v55 }
 0x1ce   : > { %v7488_v34 = vrot.slane %v14139_v58, 7  ;;  %v13075_v6 = vshll.u32 %v14141_v24, 16  ;;  %10608 = vmatprep.subr.bf16.mxu1 %v14110_v3  ;;  %10559 = vmatmul.mubr.bf16.vlgmr.msra.gmra.mxu0 %v4590_v5  ;;  %v6145_v50 = vor.u32 %v6144_v61, %v6141_v57  ;;  %v6150_v62 = vrot.slane %v6148_v2, 7  ;;  %v14149_v24 = vld [vmem:[#allocation46_spill] sm:$0xff]  ;;  %v11329_v57 = vld [vmem:[#allocation5 + $0x158] sm:$0xff]  }
 0x1cf   : > { %v6296_v15 = vshll.u32 %v14145_v0, 16  ;;  %v7630_v29 = vrot.slane %v14148_v42, 2  ;;  %v3506_v16 = vpop.f32.mrf.mxu0  ;;  %v3547_v58 = vpop.f32.mrf.mxu1  ;;  %v6317_v45 = vcombine.low %v14150_v12, %v14149_v24  ;;  %10583 = vmatpush3.bf16.msra.mxu0 %v11315_v9  ;;  %10598 = vmatprep.mubr.msk.bf16.mxu0 %vm11902_vm1, %v14110_v3  ;;  %v6294_v18 = vrot.slane %v6293_v8, 2  ;;  %v14152_v12 = vld [vmem:[#allocation33_spill] sm:$0xff] }
 0x1d0   : > { %v9858_v43 = vrot.slane %v12636_v33, 9  ;;  %v6428_v0 = vrot.slane %v6137_v13, 7  ;;  %10584 = vmatprep.subr.bf16.mxu0 %v14110_v3  ;;  %v6146_v61 = vrot.slane %v6145_v50, 2  ;;  %v6447_v9 = vcombine.low %v12982_v63, %v13000_v27  ;;  %v14155_v50 = vld [vmem:[#allocation36_spill] sm:$0xff]  ;;  %v14158_v42 = vld [vmem:[#allocation45_spill] sm:$0xff] }
 0x1d1   : > { %v6298_v17 = vrot.slane %v6296_v15, 7  ;;  %v3507_v5 = vpop.f32.mrf.mxu0  ;;  %v3548_v46 = vpop.f32.mrf.mxu1  ;;  %10609 = vmatpush3.bf16.msra.mxu1 %v11327_v49  ;;  %v13093_v2 = vrot.slane %v6317_v45, %v12435_v7  ;;  %v14153_v8 = vcombine.low %v12571_v37, %v14152_v12  ;;  %v14156_v45 = vcombine.low %v12677_v60, %v14155_v50  ;;  %v11317_v60 = vld [vmem:[#allocation5 + $0x128] sm:$0xff]  }
 0x1d2   : > { %10610 = vmatprep.subr.bf16.mxu1 %v14110_v3  ;;  %v6429_v13 = vsel %vm12960_vm12, %v9858_v43, %v6428_v0  ;;  %v7489_v63 = vor.u32 %v7488_v34, %v13055_v4  ;;  %v6151_v55 = vsel %vm12821_vm14, %v6146_v61, %v6150_v62  ;;  %v13124_v24 = vrot.slane %v6447_v9, %v12435_v7  ;;  %v11331_v0 = vld [vmem:[#allocation5 + $0x150] sm:$0xff]  }
 0x1d3   : > { %14151 = vst [vmem:[#allocation34_spill] sm:$0xff] %v13093_v2  ;;  %v13101_v15 = vrot.slane %v14153_v8, %v12435_v7  ;;  %v6299_v33 = vsel %vm12821_vm14, %v6294_v18, %v6298_v17  ;;  %v13112_v49 = vrot.slane %v14156_v45, %v12435_v7  ;;  %v13115_v27 = vpop.f32.mrf.mxu0  ;;  %v13117_v37 = vpop.f32.mrf.mxu1  ;;  %v6448_v58 = vcombine.low %v13012_v30, %v6429_v13  ;;  %v11322_v8 = vld [vmem:[#allocation5 + $0x100] sm:$0xff]  }
 0x1d4   : > { %v6318_v16 = vcombine.low %v14158_v42, %v6299_v33  ;;  %14159 = vst [vmem:[#allocation40_spill] sm:$0xff] %v13124_v24  ;;  %10585 = vmatpush3.bf16.msra.mxu0 %v11316_v26  ;;  %v6170_v18 = vcombine.low %v12978_v19, %v6151_v55  ;;  %v13128_v4 = vrot.slane %v6169_v14, %v12435_v7  ;;  %v7634_v43 = vrot.slane %v13075_v6, 7  ;;  %v11318_v42 = vld [vmem:[#allocation5 + $0x120] sm:$0xff]  }
 0x1d5   : > { %14154 = vst [vmem:[#allocation37_spill] sm:$0xff] %v13101_v15  ;;  %14157 = vst [vmem:[#allocation39_spill] sm:$0xff] %v13112_v49  ;;  %10586 = vmatprep.subr.bf16.mxu0 %v14110_v3  ;;  %v13134_v62 = vpop.f32.mrf.mxu0  ;;  %v13136_v30 = vpop.f32.mrf.mxu1  ;;  %10611 = vmatpush3.bf16.msra.mxu1 %v11329_v57  ;;  %v13142_v19 = vrot.slane %v6448_v58, %v12435_v7  ;;  %v9940_v46 = vrot.slane %v14137_v39, 9  ;;  %v7490_v61 = vrot.slane %v7489_v63, 2  ;;  %v7492_v57 = vshll.u32 %v13051_v31, 16  ;;  %v14172_v63 = vld [vmem:[#allocation23_spill] sm:$0xff] }
 0x1d6   : > { %14160 = vst [vmem:[#allocation38_spill] sm:$0xff] %v13128_v4  ;;  %v13139_v26 = vrot.slane %v6318_v16, %v12435_v7  ;;  %10612 = vmatprep.subr.bf16.mxu1 %v14110_v3  ;;  %v13149_v6 = vrot.slane %v6170_v18, %v12435_v7  ;;  %v7635_v45 = vsel %vm12821_vm14, %v7630_v29, %v7634_v43  ;;  %v7756_v39 = vrot.slane %v13051_v31, 7 }
 0x1d7   : > { %14163 = vst [vmem:[#allocation41_spill] sm:$0xff] %v13142_v19  ;;  %v3588_v9 = vpop.f32.mrf.mxu0  ;;  %v3629_v12 = vpop.f32.mrf.mxu1  ;;  %v7494_v16 = vrot.slane %v7492_v57, 7  ;;  %v7653_v58 = vcombine.low %v6299_v33, %v7635_v45  ;;  %v11319_v45 = vld [vmem:[#allocation5 + $0x118] sm:$0xff]  }
 0x1d8   : > { %14162 = vst [vmem:[#allocation42_spill] sm:$0xff] %v13139_v26  ;;  %14165 = vst [vmem:[#allocation46_spill] sm:$0xff] %v13149_v6  ;;  %10587 = vmatpush3.bf16.msra.mxu0 %v11317_v60  ;;  %v11333_v12 = vld [vmem:[#allocation5 + $0x148] sm:$0xff]   ;;  %v7757_v5 = vsel %vm12960_vm12, %v9940_v46, %v7756_v39 }
 0x1d9   : > { %10588 = vmatprep.subr.bf16.mxu0 %v14110_v3  ;;  %v3589_v18 = vpop.f32.mrf.mxu0  ;;  %v3630_v9 = vpop.f32.mrf.mxu1  ;;  %10613 = vmatpush3.bf16.msra.mxu1 %v11331_v0  ;;  %v7495_v31 = vsel %vm12821_vm14, %v7490_v61, %v7494_v16  ;;  %v13168_v29 = vrot.slane %v7653_v58, %v12435_v7  ;;  %v7775_v60 = vcombine.low %v6429_v13, %v7757_v5  ;;  %v11335_v61 = vld [vmem:[#allocation5 + $0x140] sm:$0xff]   ;;  %v11320_v58 = vld [vmem:[#allocation5 + $0x110] sm:$0xff]  }
 0x1da   : > { %10614 = vmatprep.subr.bf16.mxu1 %v14110_v3  ;;  %v7513_v57 = vcombine.low %v6151_v55, %v7495_v31 }
 0x1db   : > { %14166 = vst [vmem:[#allocation44_spill] sm:$0xff] %v13168_v29  ;;  %v3666_v43 = vpop.f32.mrf.mxu0  ;;  %v3707_v33 = vpop.f32.mrf.mxu1  ;;  %v13173_v9 = vrot.slane %v7775_v60, %v12435_v7 }
 0x1dc   : > { %10589 = vmatpush3.bf16.msra.mxu0 %v11318_v42  ;;  %v7520_v16 = vrot.slane %v7513_v57, %v12435_v7  ;;  %v3716_v57 = vadd.f32 %v13041_v52, %v12914_v1  ;;  %v14171_v52 = vld [vmem:[#allocation22_spill] sm:$0xff] }
 0x1dd   : > { %14168 = vst [vmem:[#allocation33_spill] sm:$0xff] %v13173_v9  ;;  %10590 = vmatprep.subr.bf16.mxu0 %v14110_v3  ;;  %v3668_v46 = vpop.f32.mrf.mxu0  ;;  %v3709_v39 = vpop.f32.mrf.mxu1  ;;  %10615 = vmatpush3.bf16.msra.mxu1 %v11333_v12  ;;  %v3714_v12 = vadd.f32 %v13039_v51, %v12910_v36 }
 0x1de   : > { %10616 = vmatprep.subr.bf16.mxu1 %v14110_v3  ;;  %v13181_v42 = vcombine.low %v13008_v21, %v7520_v16  ;;  %v11321_v21 = vld [vmem:[#allocation5 + $0x108] sm:$0xff]   ;;  %v3717_v16 = vadd.f32 %v13064_v44, %v12926_v32  ;;  %v14173_v44 = vld [vmem:[#allocation24_spill] sm:$0xff] }
 0x1df   : > { %v3670_v55 = vpop.f32.mrf.mxu0  ;;  %v3711_v5 = vpop.f32.mrf.mxu1 }
 0x1e0   : > { %14169 = vst [vmem:[#allocation36_spill] sm:$0xff] %v13181_v42  ;;  %10591 = vmatpush3.bf16.msra.mxu0 %v11319_v45  ;;  %v3715_v45 = vadd.f32 %v13062_v28, %v12918_v25 }
 0x1e1   : > { %10592 = vmatprep.subr.bf16.mxu0 %v14110_v3  ;;  %v3671_v31 = vpop.f32.mrf.mxu0  ;;  %v3712_v60 = vpop.f32.mrf.mxu1  ;;  %10617 = vmatpush3.bf16.msra.mxu1 %v11335_v61 }
 0x1e2   : > { %10642 = vmatprep.subr.bf16.mxu1 %v14110_v3  ;;  %v14170_v60 = vld [vmem:[#allocation21_spill] sm:$0xff] }
 0x1e3   : > { %v3773_v55 = vpop.f32.mrf.mxu0  ;;  %v3814_v5 = vpop.f32.mrf.mxu1 }
 0x1e4   : > { %10593 = vmatpush3.bf16.msra.mxu0 %v11320_v58  ;;  %v3985_v31 = vadd.f32 %v3773_v55, %v3714_v12  ;;  %v3987_v61 = vadd.f32 %v3814_v5, %v3716_v57  ;;  %v3718_v57 = vadd.f32 %v13115_v27, %v12929_v10  ;;  %v13203_v55 = vadd.f32 %v13117_v37, %v12941_v38 }
 0x1e5   : > { %10594 = vmatprep.subr.bf16.mxu0 %v14110_v3  ;;  %v3775_v36 = vpop.f32.mrf.mxu0  ;;  %v3816_v51 = vpop.f32.mrf.mxu1  ;;  %v13219_v38 = vadd.f32 %v3707_v33, %v12970_v35  ;;  %v13222_v27 = vadd.f32 %v3668_v46, %v12989_v41 }
 0x1e6   : > { %v3997_v1 = vadd.f32 %v3985_v31, %v14170_v60  ;;  %v3999_v13 = vadd.f32 %v3987_v61, %v14171_v52  ;;  %v3986_v18 = vadd.f32 %v3775_v36, %v3715_v45  ;;  %v3988_v17 = vadd.f32 %v3816_v51, %v3717_v16  ;;  %v11326_v16 = vld [vmem:[#allocation5 + $0x1b8] sm:$0xff]  }
 0x1e7   : > { %v3777_v58 = vpop.f32.mrf.mxu0  ;;  %v3818_v50 = vpop.f32.mrf.mxu1  ;;  %v14174_v51 = vcombine.low %v13022_v59, %v13044_v54 }
 0x1e8   : > { %10595 = vmatpush3.bf16.msra.mxu0 %v11321_v21  ;;  %v4009_v25 = vmax.f32 %v3997_v1, 0.0  ;;  %v4011_v28 = vmax.f32 %v3999_v13, 0.0  ;;  %v3998_v32 = vadd.f32 %v3986_v18, %v14172_v63  ;;  %v4000_v12 = vadd.f32 %v3988_v17, %v14173_v44 }
 0x1e9   : > { %10596 = vmatprep.subr.bf16.mxu0 %v14110_v3  ;;  %v13207_v50 = vadd.f32 %v13134_v62, %v12949_v47  ;;  %v13211_v13 = vadd.f32 %v13136_v30, %v12952_v22  ;;  %v3778_v63 = vpop.f32.mrf.mxu0  ;;  %v3819_v18 = vpop.f32.mrf.mxu1  ;;  %v13214_v17 = vadd.f32 %v3666_v43, %v12967_v53  ;;  %v13225_v47 = vadd.f32 %v3709_v39, %v12992_v11 }
 0x1ea   : > { %v4021_v5 = vpack.c.bf16 %v4009_v25, %v4009_v25  ;;  %v13216_v21 = vpack.c.bf16 %v4011_v28, %v4011_v28  ;;  %v4010_v10 = vmax.f32 %v3998_v32, 0.0  ;;  %v4012_v22 = vmax.f32 %v4000_v12, 0.0  ;;  %v11328_v18 = vld [vmem:[#allocation5 + $0x1b0] sm:$0xff]  }
 0x1eb   : > { %v3855_v37 = vpop.f32.mrf.mxu0  ;;  %v13227_v62 = vpop.f32.mrf.mxu1 }
 0x1ec   : > { %10597 = vmatpush3.bf16.msra.mxu0 %v11322_v8  ;;  %v4033_v53 = vsel %vm2495_vm2, %v4021_v5, 0  ;;  %v4072_v30 = vshrl.u32 %v4021_v5, 16  ;;  %v4101_v43 = vrot.slane %v4021_v5, 1  ;;  %v4169_v45 = vrot.slane %v4021_v5, 2 }
 0x1ed   : > { %v4038_v35 = vrot.slane %v13216_v21, 7  ;;  %v4145_v33 = vshrl.u32 %v13216_v21, 16  ;;  %v4176_v41 = vrot.slane %v13216_v21, 1  ;;  %v4022_v46 = vpack.c.bf16 %v4010_v10, %v4010_v10  ;;  %10622 = vmatprep.subr.bf16.mxu0 %v14110_v3  ;;  %v3857_v11 = vpop.f32.mrf.mxu0  ;;  %v3898_v39 = vpop.f32.mrf.mxu1 }
 0x1ee   : > { %v4074_v31 = vsel %vm2495_vm2, %v4072_v30, 0  ;;  %v4102_v8 = vsel %vm2495_vm2, %v4101_v43, 0  ;;  %v4140_v61 = vshrl.u32 %v4101_v43, 16  ;;  %v4170_v36 = vsel %vm2495_vm2, %v4169_v45, 0 }
 0x1ef   : > { %10599 = vmatmul.mubr.bf16.vlgmr.msra.gmra.mxu0 %v14174_v51  ;;  %v4077_v60 = vshrl.u32 %v4038_v35, 16  ;;  %v4035_v1 = vshll.u32 %v4022_v46, 16  ;;  %v4075_v52 = vsel %vm2500_vm3, %v4022_v46, %v4074_v31  ;;  %v4103_v58 = vrot.slane %v4022_v46, 1  ;;  %v3859_v25 = vpop.f32.mrf.mxu0  ;;  %v3900_v28 = vpop.f32.mrf.mxu1 }
 0x1f0   : > { %v4142_v32 = vsel %vm2495_vm2, %v4140_v61, 0  ;;  %v4171_v44 = vrot.slane %v4022_v46, 2  ;;  %v4024_v12 = vpack.c.bf16 %v4012_v22, %v4012_v22  ;;  %v3989_v63 = vadd.f32 %v3855_v37, %v3718_v57  ;;  %10623 = vmatpush3.bf16.msra.mxu0 %v11326_v16  ;;  %10638 = vmatprep.mubr.msk.bf16.mxu0 %vm11902_vm1, %v14110_v3 }
 0x1f1   : > { %v4037_v59 = vsel %vm2500_vm3, %v4035_v1, %v4033_v53  ;;  %v4079_v5 = vsel %vm2503_vm4, %v4077_v60, %v4075_v52  ;;  %v4105_v10 = vshll.u32 %v4103_v58, 16  ;;  %v4143_v30 = vsel %vm2500_vm3, %v4103_v58, %v4142_v32  ;;  %10624 = vmatprep.subr.bf16.mxu0 %v14110_v3  ;;  %v3860_v43 = vpop.f32.mrf.mxu0  ;;  %v3901_v45 = vpop.f32.mrf.mxu1  ;;  %v14175_v53 = vld [vmem:[#allocation25_spill] sm:$0xff] }
 0x1f2   : > { %v4173_v31 = vshll.u32 %v4171_v44, 16  ;;  %v4040_v46 = vrot.slane %v4024_v12, 7  ;;  %v4110_v22 = vshll.u32 %v4024_v12, 16  ;;  %v4147_v57 = vsel %vm2503_vm4, %v4145_v33, %v4143_v30  ;;  %v11330_v32 = vld [vmem:[#allocation5 + $0x1a8] sm:$0xff]  }
 0x1f3   : > { %v4107_v37 = vsel %vm2500_vm3, %v4105_v10, %v4102_v8  ;;  %v4148_v16 = vsel %vm2509_vm5, %v4024_v12, %v4147_v57  ;;  %v4178_v61 = vrot.slane %v4024_v12, 1  ;;  %v4001_v51 = vadd.f32 %v3989_v63, %v14175_v53  ;;  %v3937_v60 = vpop.f32.mrf.mxu0  ;;  %v3978_v1 = vpop.f32.mrf.mxu1  ;;  %v14177_v57 = vld [vmem:[#allocation27_spill] sm:$0xff]  ;;  %v14178_v53 = vld [vmem:[#allocation28_spill] sm:$0xff] }
 0x1f4   : > { %v4042_v52 = vshll.u32 %v4040_v46, 16  ;;  %v4080_v58 = vsel %vm2509_vm5, %v4040_v46, %v4079_v5  ;;  %v4039_v25 = vsel %vm2503_vm4, %v4038_v35, %v4037_v59  ;;  %v4108_v28 = vsel %vm2503_vm4, %v13216_v21, %v4107_v37  ;;  %10625 = vmatpush3.bf16.msra.mxu0 %v11328_v18  ;;  %v14176_v46 = vld [vmem:[#allocation26_spill] sm:$0xff] }
 0x1f5   : > { %v4180_v33 = vshll.u32 %v4178_v61, 16  ;;  %v4013_v44 = vmax.f32 %v4001_v51, 0.0  ;;  %v4112_v8 = vsel %vm2509_vm5, %v4110_v22, %v4108_v28  ;;  %v4175_v12 = vsel %vm2500_vm3, %v4173_v31, %v4170_v36  ;;  %10626 = vmatprep.subr.bf16.mxu0 %v14110_v3  ;;  %v3939_v63 = vpop.f32.mrf.mxu0  ;;  %v13259_v10 = vpop.f32.mrf.mxu1 }
 0x1f6   : > { %v4044_v5 = vsel %vm2509_vm5, %v4042_v52, %v4039_v25  ;;  %v4177_v35 = vsel %vm2503_vm4, %v4176_v41, %v4175_v12  ;;  %v3991_v21 = vadd.f32 %v13227_v62, %v13203_v55  ;;  %v3990_v18 = vadd.f32 %v3857_v11, %v13207_v50  ;;  %v11332_v62 = vld [vmem:[#allocation5 + $0x1a0] sm:$0xff]  }
 0x1f7   : > { %v4025_v59 = vpack.c.bf16 %v4013_v44, %v4013_v44  ;;  %v4182_v30 = vsel %vm2509_vm5, %v4180_v33, %v4177_v35  ;;  %v3992_v43 = vadd.f32 %v3898_v39, %v13211_v13  ;;  %v3993_v36 = vadd.f32 %v3937_v60, %v13214_v17  ;;  %v3941_v45 = vpop.f32.mrf.mxu0  ;;  %v3982_v31 = vpop.f32.mrf.mxu1  ;;  %v14179_v52 = vld [vmem:[#allocation29_spill] sm:$0xff] }
 0x1f8   : > { %v4003_v22 = vadd.f32 %v3991_v21, %v14176_v46  ;;  %v4002_v37 = vadd.f32 %v3990_v18, %v14177_v57  ;;  %v3995_v41 = vadd.f32 %v3978_v1, %v13219_v38  ;;  %10627 = vmatpush3.bf16.msra.mxu0 %v11330_v32  ;;  %v3994_v55 = vadd.f32 %v3939_v63, %v13222_v27  ;;  %v14180_v38 = vld [vmem:[#allocation30_spill] sm:$0xff]  ;;  %v11334_v21 = vld [vmem:[#allocation5 + $0x198] sm:$0xff]  }
 0x1f9   : > { %v4045_v50 = vrot.slane %v4025_v59, 6  ;;  %v4113_v11 = vrot.slane %v4025_v59, 7  ;;  %v4183_v61 = vsel %vm2512_vm6, %v4025_v59, %v4182_v30  ;;  %v4004_v13 = vadd.f32 %v3992_v43, %v14178_v53  ;;  %10628 = vmatprep.subr.bf16.mxu0 %v14110_v3  ;;  %v3942_v17 = vpop.f32.mrf.mxu0  ;;  %v3983_v39 = vpop.f32.mrf.mxu1  ;;  %v14181_v43 = vld [vmem:[#allocation31_spill] sm:$0xff] }
 0x1fa   : > { %v4015_v51 = vmax.f32 %v4003_v22, 0.0  ;;  %v4014_v60 = vmax.f32 %v4002_v37, 0.0  ;;  %v13277_v25 = vadd.f32 %v3993_v36, %v14179_v52  ;;  %v13280_v1 = vadd.f32 %v3995_v41, %v14180_v38 }
 0x1fb   : > { %v4046_v27 = vsel %vm2512_vm6, %v4045_v50, %v4044_v5  ;;  %v4082_v28 = vshrl.u32 %v4045_v50, 16  ;;  %v4114_v32 = vsel %vm2512_vm6, %v4113_v11, %v4112_v8  ;;  %v4150_v33 = vshrl.u32 %v4113_v11, 16 }
 0x1fc   : > { %v4027_v44 = vpack.c.bf16 %v4015_v51, %v4015_v51  ;;  %v4026_v12 = vpack.c.bf16 %v4014_v60, %v4014_v60  ;;  %v4016_v63 = vmax.f32 %v4004_v13, 0.0  ;;  %v4017_v35 = vmax.f32 %v13277_v25, 0.0  ;;  %10629 = vmatpush3.bf16.msra.mxu0 %v11332_v62  ;;  %v11336_v62 = vld [vmem:[#allocation5 + $0x190] sm:$0xff]  }
 0x1fd   : > { %v4084_v18 = vsel %vm2512_vm6, %v4082_v28, %v4080_v58  ;;  %v4152_v59 = vsel %vm2512_vm6, %v4150_v33, %v4148_v16  ;;  %v13289_v36 = vadd.f32 %v3994_v55, %v14181_v43  ;;  %10630 = vmatprep.subr.bf16.mxu0 %v14110_v3  ;;  %v14182_v9 = vmax.f32 %v13280_v1, 0.0 }
 0x1fe   : > { %v4052_v8 = vsel %vm2495_vm2, %v4027_v44, 0  ;;  %v4087_v5 = vshrl.u32 %v4027_v44, 16  ;;  %v4120_v45 = vrot.slane %v4027_v44, 1  ;;  %v4188_v31 = vrot.slane %v4027_v44, 2 }
 0x1ff   : > { %v4047_v46 = vrot.slane %v4026_v12, 6  ;;  %v4115_v22 = vrot.slane %v4026_v12, 7  ;;  %v4185_v57 = vshll.u32 %v4026_v12, 16  ;;  %v13293_v37 = vpack.c.bf16 %v4016_v63, %v4016_v63  ;;  %v11338_v12 = vld [vmem:[#allocation5 + $0x188] sm:$0xff]  }
 0x200   : > { %v4089_v58 = vsel %vm2495_vm2, %v4087_v5, 0  ;;  %v4121_v16 = vsel %vm2495_vm2, %v4120_v45, 0  ;;  %v4155_v41 = vshrl.u32 %v4120_v45, 16  ;;  %v13298_v55 = vsel %vm2495_vm2, %v4188_v31, 0  ;;  %10631 = vmatpush3.bf16.msra.mxu0 %v11334_v21 }
 0x201   : > { %v4049_v50 = vshll.u32 %v4047_v46, 16  ;;  %v13301_v11 = vsel %vm2518_vm7, %v4047_v46, %v4084_v18  ;;  %v4117_v53 = vshll.u32 %v4115_v22, 16  ;;  %v13304_v13 = vsel %vm2518_vm7, %v4115_v22, %v4152_v59  ;;  %10632 = vmatprep.subr.bf16.mxu0 %v14110_v3 }
 0x202   : > { %v13308_v17 = vsel %vm2495_vm2, %v4155_v41, 0  ;;  %v13311_v39 = vsel %vm2518_vm7, %v4185_v57, %v4183_v61  ;;  %v13315_v51 = vrot.slane %v13301_v11, %v12435_v7  ;;  %v13319_v60 = vrot.slane %v13304_v13, %v12435_v7 }
 0x203   : > { %v13322_v52 = vsel %vm2518_vm7, %v4049_v50, %v4046_v27  ;;  %v13325_v38 = vsel %vm2518_vm7, %v4117_v53, %v4114_v32  ;;  %v13331_v61 = vrot.slane %v13311_v39, %v12435_v7  ;;  %v4090_v5 = vsel %vm2500_vm3, %v13293_v37, %v4089_v58 }
 0x204   : > { %v13339_v27 = vrot.slane %v13322_v52, %v12435_v7  ;;  %v13343_v32 = vcombine.high %v13315_v51, %v13315_v51  ;;  %10633 = vmatpush3.bf16.msra.mxu0 %v11336_v62  ;;  %v13347_v63 = vrot.slane %v13325_v38, %v12435_v7  ;;  %v13351_v21 = vcombine.high %v13319_v60, %v13319_v60 }
 0x205   : > { %v5353_v18 = vshrl.u32 %v13315_v51, 16  ;;  %v5356_v59 = vshll.u32 %v13315_v51, 16  ;;  %10634 = vmatprep.subr.bf16.mxu0 %v14110_v3  ;;  %v5381_v31 = vshrl.u32 %v13319_v60, 16  ;;  %v5384_v57 = vshll.u32 %v13319_v60, 16 }
 0x206   : > { %v13358_v43 = vcombine.high %v13339_v27, %v13339_v27  ;;  %v13374_v50 = vcombine.high %v13331_v61, %v13331_v61  ;;  %v6819_v53 = vshrl.u32 %v13331_v61, 16  ;;  %v6822_v28 = vshll.u32 %v13331_v61, 16 }
 0x207   : > { %v13363_v46 = vrot.slane %v5353_v18, 6  ;;  %v13365_v22 = vrot.slane %v5356_v59, 7  ;;  %v13370_v62 = vrot.slane %v5381_v31, 6  ;;  %v11340_v18 = vld [vmem:[#allocation5 + $0x180] sm:$0xff]   ;;  %v13378_v45 = vrot.slane %v5384_v57, 7 }
 0x208   : > { %10635 = vmatpush3.bf16.msra.mxu0 %v11338_v12  ;;  %v4054_v59 = vshll.u32 %v13293_v37, 16  ;;  %v4122_v31 = vrot.slane %v13293_v37, 1  ;;  %v13385_v41 = vrot.slane %v6819_v53, 6  ;;  %v13387_v44 = vrot.slane %v6822_v28, 7 }
 0x209   : > { %10636 = vmatprep.subr.bf16.mxu0 %v14110_v3  ;;  %v4190_v33 = vrot.slane %v13293_v37, 2  ;;  %v4029_v12 = vpack.c.bf16 %v4017_v35, %v4017_v35  ;;  %v4031_v58 = vpack.c.bf16 %v14182_v9, %v14182_v9  ;;  %v4018_v54 = vmax.f32 %v13289_v36, 0.0 }
 0x20a   : > { %v4056_v57 = vsel %vm2500_vm3, %v4054_v59, %v4052_v8  ;;  %v4124_v30 = vshll.u32 %v4122_v31, 16 }
 0x20b   : > { %v4192_v29 = vshll.u32 %v4190_v33, 16  ;;  %v4057_v53 = vrot.slane %v4029_v12, 7  ;;  %v4160_v0 = vshrl.u32 %v4029_v12, 16  ;;  %v4195_v28 = vrot.slane %v4029_v12, 1 }
 0x20c   : > { %10637 = vmatpush3.bf16.msra.mxu0 %v11340_v18  ;;  %v4126_v37 = vsel %vm2500_vm3, %v4124_v30, %v4121_v16  ;;  %v4064_v42 = vrot.slane %v4031_v58, 6  ;;  %v4132_v25 = vrot.slane %v4031_v58, 7  ;;  %v4030_v49 = vpack.c.bf16 %v4018_v54, %v4018_v54 }
 0x20d   : > { %10662 = vmatprep.subr.bf16.mxu0 %v14110_v3  ;;  %v4194_v35 = vsel %vm2500_vm3, %v4192_v29, %v13298_v55  ;;  %v4058_v1 = vsel %vm2503_vm4, %v4057_v53, %v4056_v57  ;;  %v4092_v9 = vshrl.u32 %v4057_v53, 16  ;;  %v4127_v36 = vsel %vm2503_vm4, %v4029_v12, %v4126_v37 }
 0x20e   : > { %v4196_v8 = vsel %vm2503_vm4, %v4195_v28, %v4194_v35  ;;  %v4097_v33 = vshrl.u32 %v4064_v42, 16  ;;  %v4165_v59 = vshrl.u32 %v4132_v25, 16  ;;  %v4059_v18 = vrot.slane %v4030_v49, 7 }
 0x20f   : > { %v4094_v30 = vsel %vm2503_vm4, %v4092_v9, %v4090_v5  ;;  %v4129_v16 = vshll.u32 %v4030_v49, 16  ;;  %v4158_v54 = vsel %vm2500_vm3, %v4122_v31, %v13308_v17  ;;  %v4197_v14 = vrot.slane %v4030_v49, 1  ;;  %v14183_v31 = vld [vmem:[#allocation32_spill] sm:$0xff] }
 0x210   : > { %v4061_v15 = vshll.u32 %v4059_v18, 16  ;;  %v4095_v29 = vsel %vm2509_vm5, %v4059_v18, %v4094_v30  ;;  %v4162_v55 = vsel %vm2503_vm4, %v4160_v0, %v4158_v54  ;;  %v3996_v12 = vadd.f32 %v13259_v10, %v13225_v47 }
 0x211   : > { %v4131_v57 = vsel %vm2509_vm5, %v4129_v16, %v4127_v36  ;;  %v4163_v53 = vsel %vm2509_vm5, %v4030_v49, %v4162_v55  ;;  %v4199_v28 = vshll.u32 %v4197_v14, 16  ;;  %v4099_v5 = vsel %vm2512_vm6, %v4097_v33, %v4095_v29  ;;  %v11337_v36 = vld [vmem:[#allocation5 + $0x1f8] sm:$0xff]  }
 0x212   : > { %v4063_v37 = vsel %vm2509_vm5, %v4061_v15, %v4058_v1  ;;  %v4167_v17 = vsel %vm2512_vm6, %v4165_v59, %v4163_v53  ;;  %v4008_v35 = vadd.f32 %v3996_v12, %v14183_v31  ;;  %v4133_v9 = vsel %vm2512_vm6, %v4132_v25, %v4131_v57 }
 0x213   : > { %v4201_v0 = vsel %vm2509_vm5, %v4199_v28, %v4196_v8  ;;  %v4065_v18 = vsel %vm2512_vm6, %v4064_v42, %v4063_v37  ;;  %v14184_v47 = vcombine.low %v13322_v52, %v13301_v11  ;;  %v14185_v14 = vcombine.low %v13325_v38, %v13304_v13 }
 0x214   : > { %v4020_v10 = vmax.f32 %v4008_v35, 0.0  ;;  %v4202_v1 = vsel %vm2512_vm6, %v4031_v58, %v4201_v0  ;;  %v13432_v25 = vcombine.high %v13347_v63, %v13347_v63  ;;  %v14186_v42 = vshrl.u32 %v13339_v27, 16 }
 0x215   : > { %v5075_v49 = vrot.slane %v14184_v47, %v12435_v7  ;;  %v5082_v15 = vrot.slane %v14185_v14, %v12435_v7  ;;  %v14187_v52 = vshll.u32 %v13339_v27, 16  ;;  %v5348_v30 = vshll.u32 %v13358_v43, 16 }
 0x216   : > { %v5341_v8 = vrot.slane %v14186_v42, 6  ;;  %v5359_v16 = vor.u32 %v13365_v22, %v13363_v46  ;;  %v4032_v54 = vpack.c.bf16 %v4020_v10, %v4020_v10  ;;  %v5362_v58 = vshll.u32 %v13343_v32, 16  ;;  %v11339_v46 = vld [vmem:[#allocation5 + $0x1f0] sm:$0xff]  }
 0x217   : > { %v5083_v33 = vcombine.low %v5075_v49, %v5082_v15  ;;  %v5344_v59 = vrot.slane %v14187_v52, 7  ;;  %v5367_v29 = vshrl.u32 %v13347_v63, 16  ;;  %v5370_v55 = vshll.u32 %v13347_v63, 16 }
 0x218   : > { %v13444_v57 = vrot.slane %v5348_v30, 7  ;;  %v13446_v53 = vrot.slane %v5359_v16, 2  ;;  %v5376_v28 = vshll.u32 %v13432_v25, 16  ;;  %v4066_v37 = vrot.slane %v4032_v54, 6  ;;  %v11341_v16 = vld [vmem:[#allocation5 + $0x1e8] sm:$0xff]  }
 0x219   : > { %10619 = vmatmul.mubr.bf16.vlgmr.msra.gmra.mxu1 %v5083_v33  ;;  %v5345_v12 = vor.u32 %v5344_v59, %v5341_v8  ;;  %v4134_v31 = vrot.slane %v4032_v54, 7  ;;  %v4204_v35 = vshll.u32 %v4032_v54, 16  ;;  %v13451_v22 = vrot.slane %v5362_v58, 7 }
 0x21a   : > { %10643 = vmatpush3.bf16.msra.mxu1 %v11337_v36  ;;  %10658 = vmatprep.mubr.msk.bf16.mxu1 %vm11902_vm1, %v14110_v3  ;;  %v13456_v47 = vrot.slane %v5367_v29, 6  ;;  %v13458_v49 = vrot.slane %v5370_v55, 7  ;;  %v13460_v14 = vrot.slane %v5376_v28, 7  ;;  %v4068_v15 = vshll.u32 %v4066_v37, 16 }
 0x21b   : > { %10644 = vmatprep.subr.bf16.mxu1 %v14110_v3  ;;  %v13454_v0 = vrot.slane %v5345_v12, 2  ;;  %v13463_v10 = vsel %vm2518_vm7, %v4066_v37, %v4099_v5  ;;  %v4136_v36 = vshll.u32 %v4134_v31, 16  ;;  %v13466_v42 = vsel %vm2518_vm7, %v4134_v31, %v4167_v17 }
 0x21c   : > { %v13469_v8 = vsel %vm2518_vm7, %v4204_v35, %v4202_v1  ;;  %v5534_v33 = vrot.slane %v13463_v10, %v12435_v7  ;;  %v5550_v52 = vrot.slane %v13466_v42, %v12435_v7  ;;  %v4070_v5 = vsel %vm2518_vm7, %v4068_v15, %v4065_v18 }
 0x21d   : > { %v13481_v30 = vsel %vm2518_vm7, %v4136_v36, %v4133_v9  ;;  %v6964_v1 = vrot.slane %v13469_v8, %v12435_v7  ;;  %v5197_v54 = vcombine.low %v4070_v5, %v13463_v10  ;;  %v5526_v29 = vrot.slane %v4070_v5, %v12435_v7  ;;  %v11343_v5 = vld [vmem:[#allocation5 + $0x1e0] sm:$0xff]  }
 0x21e   : > { %10645 = vmatpush3.bf16.msra.mxu1 %v11339_v46  ;;  %v5198_v58 = vcombine.low %v13481_v30, %v13466_v42  ;;  %v5535_v55 = vcombine.high %v5534_v33, %v5534_v33  ;;  %v5542_v9 = vrot.slane %v13481_v30, %v12435_v7  ;;  %v5551_v18 = vcombine.high %v5550_v52, %v5550_v52 }
 0x21f   : > { %10646 = vmatprep.subr.bf16.mxu1 %v14110_v3  ;;  %v5567_v12 = vshrl.u32 %v5534_v33, 16  ;;  %v5570_v28 = vshll.u32 %v5534_v33, 16  ;;  %v5527_v37 = vcombine.high %v5526_v29, %v5526_v29  ;;  %v5553_v31 = vshrl.u32 %v5526_v29, 16 }
 0x220   : > { %v5556_v35 = vshll.u32 %v5526_v29, 16  ;;  %v13494_v46 = vshll.u32 %v5535_v55, 16  ;;  %v5543_v15 = vcombine.high %v5542_v9, %v5542_v9  ;;  %v5581_v59 = vshrl.u32 %v5542_v9, 16 }
 0x221   : > { %v5569_v36 = vrot.slane %v5567_v12, 6  ;;  %v5572_v17 = vrot.slane %v5570_v28, 7  ;;  %v5555_v34 = vrot.slane %v5553_v31, 6  ;;  %v13496_v24 = vshll.u32 %v5527_v37, 16 }
 0x222   : > { %10647 = vmatpush3.bf16.msra.mxu1 %v11341_v16  ;;  %v5558_v19 = vrot.slane %v5556_v35, 7  ;;  %v5578_v26 = vrot.slane %v13494_v46, 7  ;;  %v5583_v2 = vrot.slane %v5581_v59, 6  ;;  %v5584_v6 = vshll.u32 %v5542_v9, 16  ;;  %v11345_v46 = vld [vmem:[#allocation5 + $0x1d8] sm:$0xff]  }
 0x223   : > { %10648 = vmatprep.subr.bf16.mxu1 %v14110_v3  ;;  %v5573_v33 = vor.u32 %v5572_v17, %v5569_v36  ;;  %v5590_v29 = vshll.u32 %v5543_v15, 16  ;;  %v5564_v55 = vrot.slane %v13496_v24, 7  ;;  %v5595_v4 = vshrl.u32 %v5550_v52, 16  ;;  %v11342_v36 = vld [vmem:[#allocation5 + $0x238] sm:$0xff]  }
 0x224   : > { %v5598_v12 = vshll.u32 %v5550_v52, 16  ;;  %v13501_v28 = vshll.u32 %v5551_v18, 16  ;;  %v5586_v16 = vrot.slane %v5584_v6, 7  ;;  %v6701_v31 = vcombine.low %v13463_v10, %v13481_v30 }
 0x225   : > { %v6965_v37 = vcombine.high %v6964_v1, %v6964_v1  ;;  %v6967_v35 = vshrl.u32 %v6964_v1, 16  ;;  %v5597_v56 = vrot.slane %v5595_v4, 6  ;;  %v6970_v17 = vshll.u32 %v6964_v1, 16 }
 0x226   : > { %10649 = vmatpush3.bf16.msra.mxu1 %v11343_v5  ;;  %v5600_v40 = vrot.slane %v5598_v12, 7  ;;  %v5606_v59 = vrot.slane %v13501_v28, 7  ;;  %v5205_v52 = vrot.slane %v5197_v54, %v12435_v7  ;;  %v5212_v6 = vrot.slane %v5198_v58, %v12435_v7  ;;  %v11347_v28 = vld [vmem:[#allocation5 + $0x1d0] sm:$0xff]  }
 0x227   : > { %10650 = vmatprep.subr.bf16.mxu1 %v14110_v3  ;;  %v6969_v24 = vrot.slane %v6967_v35, 6  ;;  %v13507_v9 = vshll.u32 %v6965_v37, 16  ;;  %v6972_v15 = vrot.slane %v6970_v17, 7  ;;  %v13515_v4 = vsel %vm12821_vm14, %v13446_v53, %v13451_v22 }
 0x228   : > { %v5601_v18 = vor.u32 %v5600_v40, %v5597_v56  ;;  %v5373_v1 = vor.u32 %v13458_v49, %v13456_v47  ;;  %v5213_v12 = vcombine.low %v5205_v52, %v5212_v6  ;;  %v5387_v54 = vor.u32 %v13378_v45, %v13370_v62  ;;  %v11344_v62 = vld [vmem:[#allocation5 + $0x230] sm:$0xff]  }
 0x229   : > { %v6978_v5 = vrot.slane %v13507_v9, 7  ;;  %v5390_v40 = vshll.u32 %v13351_v21, 16  ;;  %v6973_v56 = vor.u32 %v6972_v15, %v6969_v24  ;;  %v14188_v53 = vsel %vm12821_vm14, %v13454_v0, %v13444_v57 }
 0x22a   : > { %10651 = vmatpush3.bf16.msra.mxu1 %v11345_v46  ;;  %v5374_v58 = vrot.slane %v5373_v1, 2  ;;  %v5411_v22 = vcombine.low %v14188_v53, %v13515_v4  ;;  %v5559_v47 = vor.u32 %v5558_v19, %v5555_v34  ;;  %10639 = vmatmul.mubr.bf16.vlgmr.msra.gmra.mxu0 %v5213_v12  ;;  %v5388_v49 = vrot.slane %v5387_v54, 2  ;;  %v11349_v19 = vld [vmem:[#allocation5 + $0x1c8] sm:$0xff]  }
 0x22b   : > { %10652 = vmatprep.subr.bf16.mxu1 %v14110_v3  ;;  %v5392_v37 = vrot.slane %v5390_v40, 7  ;;  %v5574_v35 = vrot.slane %v5573_v33, 2  ;;  %v5587_v46 = vor.u32 %v5586_v16, %v5583_v2  ;;  %v13530_v45 = vrot.slane %v6973_v56, 2  ;;  %10663 = vmatpush3.bf16.msra.mxu0 %v11342_v36  ;;  %v11346_v1 = vld [vmem:[#allocation5 + $0x228] sm:$0xff]  }
 0x22c   : > { %v13535_v17 = vsel %vm12821_vm14, %v5374_v58, %v13460_v14  ;;  %v5419_v24 = vrot.slane %v5411_v22, %v12435_v7  ;;  %10678 = vmatprep.mubr.msk.bf16.mxu0 %vm11902_vm1, %v14110_v3  ;;  %v5560_v34 = vrot.slane %v5559_v47, 2  ;;  %10664 = vmatprep.subr.bf16.mxu0 %v14110_v3  ;;  %v5592_v14 = vrot.slane %v5590_v29, 7 }
 0x22d   : > { %v13543_v2 = vsel %vm12821_vm14, %v5388_v49, %v5392_v37  ;;  %v13547_v57 = vsel %vm12821_vm14, %v5574_v35, %v5578_v26  ;;  %v5588_v0 = vrot.slane %v5587_v46, 2  ;;  %v5602_v52 = vrot.slane %v5601_v18, 2  ;;  %v11351_v18 = vld [vmem:[#allocation5 + $0x1c0] sm:$0xff]   ;;  %v11353_v46 = vld [vmem:[#allocation5 + $0x278] sm:$0xff]  }
 0x22e   : > { %10653 = vmatpush3.bf16.msra.mxu1 %v11347_v28  ;;  %v5412_v33 = vcombine.low %v13535_v17, %v13543_v2  ;;  %v5565_v16 = vsel %vm12821_vm14, %v5560_v34, %v5564_v55  ;;  %v9814_v6 = vrot.slane %v13339_v27, 9  ;;  %v5736_v26 = vrot.slane %v13358_v43, 7  ;;  %v11348_v49 = vld [vmem:[#allocation5 + $0x220] sm:$0xff]  }
 0x22f   : > { %10654 = vmatprep.subr.bf16.mxu1 %v14110_v3  ;;  %v5593_v15 = vsel %vm12821_vm14, %v5588_v0, %v5592_v14  ;;  %v5625_v36 = vcombine.low %v5565_v16, %v13547_v57  ;;  %v9815_v29 = vrot.slane %v13315_v51, 9  ;;  %10665 = vmatpush3.bf16.msra.mxu0 %v11344_v62  ;;  %v5607_v28 = vsel %vm12821_vm14, %v5602_v52, %v5606_v59  ;;  %v11350_v0 = vld [vmem:[#allocation5 + $0x218] sm:$0xff]  }
 0x230   : > { %v5426_v12 = vrot.slane %v5412_v33, %v12435_v7  ;;  %v5740_v55 = vrot.slane %v13343_v32, 7  ;;  %v9816_v27 = vrot.slane %v13347_v63, 9  ;;  %10666 = vmatprep.subr.bf16.mxu0 %v14110_v3  ;;  %v5626_v54 = vcombine.low %v5593_v15, %v5607_v28 }
 0x231   : > { %v13567_v43 = vrot.slane %v5625_v36, %v12435_v7  ;;  %v5737_v51 = vsel %vm12960_vm12, %v9814_v6, %v5736_v26  ;;  %v5744_v40 = vrot.slane %v13432_v25, 7  ;;  %v9817_v63 = vrot.slane %v13319_v60, 9 }
 0x232   : > { %10655 = vmatpush3.bf16.msra.mxu1 %v11349_v19  ;;  %v5427_v59 = vcombine.low %v5419_v24, %v5426_v12  ;;  %v5741_v32 = vsel %vm12960_vm12, %v9815_v29, %v5740_v55  ;;  %v5748_v56 = vrot.slane %v13351_v21, 7  ;;  %v13578_v58 = vrot.slane %v5626_v54, %v12435_v7  ;;  %v11356_v55 = vld [vmem:[#allocation5 + $0x200] sm:$0xff]   ;;  %v11360_v54 = vld [vmem:[#allocation5 + $0x2b0] sm:$0xff]  }
 0x233   : > { %10656 = vmatprep.subr.bf16.mxu1 %v14110_v3  ;;  %v5745_v53 = vsel %vm12960_vm12, %v9816_v27, %v5744_v40  ;;  %v5767_v22 = vcombine.low %v5737_v51, %v5741_v32  ;;  %v14189_v25 = vcombine.low %v13301_v11, %v13325_v38  ;;  %10667 = vmatpush3.bf16.msra.mxu0 %v11346_v1  ;;  %v6828_v10 = vshll.u32 %v13374_v50, 16  ;;  %v11354_v1 = vld [vmem:[#allocation5 + $0x208] sm:$0xff]   ;;  %v11358_v27 = vld [vmem:[#allocation5 + $0x2b8] sm:$0xff]  }
 0x234   : > { %v5749_v60 = vsel %vm12960_vm12, %v9817_v63, %v5748_v56  ;;  %v14190_v21 = vcombine.low %v13304_v13, %v13311_v39  ;;  %v13600_v35 = vrot.slane %v6701_v31, %v12435_v7  ;;  %v14191_v11 = vcombine.low %v13466_v42, %v13469_v8  ;;  %10668 = vmatprep.subr.bf16.mxu0 %v14110_v3  ;;  %v11365_v51 = vld [vmem:[#allocation5 + $0x248] sm:$0xff]   ;;  %v11366_v63 = vld [vmem:[#allocation5 + $0x298] sm:$0xff]   ;;  %v11371_v56 = vld [vmem:[#allocation5 + $0x2f0] sm:$0xff]  }
 0x235   : > { %v13586_v47 = vrot.slane %v14189_v25, %v12435_v7  ;;  %v5641_v13 = vcombine.low %v13567_v43, %v13578_v58  ;;  %v5768_v39 = vcombine.low %v5745_v53, %v5749_v60  ;;  %v13612_v62 = vrot.slane %v5767_v22, %v12435_v7  ;;  %v11362_v40 = vld [vmem:[#allocation5 + $0x2a8] sm:$0xff]   ;;  %v11364_v43 = vld [vmem:[#allocation5 + $0x2a0] sm:$0xff]   ;;  %v11368_v58 = vld [vmem:[#allocation5 + $0x290] sm:$0xff]  }
 0x236   : > { %v13594_v37 = vrot.slane %v14190_v21, %v12435_v7  ;;  %v13606_v38 = vrot.slane %v14191_v11, %v12435_v7  ;;  %10657 = vmatpush3.bf16.msra.mxu1 %v11351_v18  ;;  %v6825_v30 = vor.u32 %v13387_v44, %v13385_v41  ;;  %v6849_v31 = vcombine.low %v13515_v4, %v13535_v17  ;;  %v11355_v4 = vld [vmem:[#allocation5 + $0x270] sm:$0xff]   ;;  %v11370_v22 = vld [vmem:[#allocation5 + $0x288] sm:$0xff]   ;;  %v11375_v25 = vld [vmem:[#allocation5 + $0x2e0] sm:$0xff]  }
 0x237   : > { %10682 = vmatprep.subr.bf16.mxu1 %v14110_v3  ;;  %v13625_v24 = vrot.slane %v5768_v39, %v12435_v7  ;;  %v6979_v34 = vsel %vm12821_vm14, %v13530_v45, %v6978_v5  ;;  %v6997_v19 = vcombine.low %v13547_v57, %v5593_v15  ;;  %10669 = vmatpush3.bf16.msra.mxu0 %v11348_v49  ;;  %v6830_v33 = vrot.slane %v6828_v10, 7  ;;  %v11363_v18 = vld [vmem:[#allocation5 + $0x250] sm:$0xff]   ;;  %v11372_v49 = vld [vmem:[#allocation5 + $0x280] sm:$0xff]   ;;  %v11377_v21 = vld [vmem:[#allocation5 + $0x2d8] sm:$0xff]  }
 0x238   : > { %v6590_v42 = vcombine.low %v13586_v47, %v13594_v37  ;;  %v6717_v8 = vcombine.low %v13600_v35, %v13606_v38  ;;  %v6826_v14 = vrot.slane %v6825_v30, 2  ;;  %v6998_v44 = vcombine.low %v5607_v28, %v6979_v34  ;;  %10670 = vmatprep.subr.bf16.mxu0 %v14110_v3  ;;  %v11359_v28 = vld [vmem:[#allocation5 + $0x260] sm:$0xff]   ;;  %v11379_v39 = vld [vmem:[#allocation5 + $0x2d0] sm:$0xff]   ;;  %v11418_v47 = vld [vmem:[#allocation5 + $0x408] sm:$0xff]  }
 0x239   : > { %10659 = vmatmul.mubr.bf16.vlgmr.msra.gmra.mxu1 %v5427_v59  ;;  %v9899_v41 = vrot.slane %v13331_v61, 9  ;;  %v5783_v9 = vcombine.low %v13612_v62, %v13625_v24  ;;  %v13638_v17 = vrot.slane %v6997_v19, %v12435_v7  ;;  %v7108_v5 = vrot.slane %v13374_v50, 7  ;;  %v11352_v50 = vld [vmem:[#allocation5 + $0x210] sm:$0xff]   ;;  %v11367_v59 = vld [vmem:[#allocation5 + $0x240] sm:$0xff]   ;;  %v11381_v24 = vld [vmem:[#allocation5 + $0x2c8] sm:$0xff]  }
 0x23a   : > { %10683 = vmatpush3.bf16.msra.mxu1 %v11353_v46  ;;  %v7127_v45 = vcombine.low %v5741_v32, %v5745_v53  ;;  %10698 = vmatprep.mubr.msk.bf16.mxu1 %vm11902_vm1, %v14110_v3  ;;  %v6831_v61 = vsel %vm12821_vm14, %v6826_v14, %v6830_v33  ;;  %v13647_v57 = vrot.slane %v6998_v44, %v12435_v7  ;;  %v11369_v32 = vld [vmem:[#allocation5 + $0x2f8] sm:$0xff]   ;;  %v11373_v53 = vld [vmem:[#allocation5 + $0x2e8] sm:$0xff]   ;;  %v11423_v37 = vld [vmem:[#allocation5 + $0x460] sm:$0xff]  }
 0x23b   : > { %10684 = vmatprep.subr.bf16.mxu1 %v14110_v3  ;;  %v6850_v16 = vcombine.low %v13543_v2, %v6831_v61  ;;  %v6857_v52 = vrot.slane %v6849_v31, %v12435_v7  ;;  %v7109_v6 = vsel %vm12960_vm12, %v9899_v41, %v7108_v5  ;;  %10671 = vmatpush3.bf16.msra.mxu0 %v11350_v0  ;;  %v11374_v46 = vld [vmem:[#allocation5 + $0x338] sm:$0xff]   ;;  %v11376_v31 = vld [vmem:[#allocation5 + $0x330] sm:$0xff]   ;;  %v11378_v0 = vld [vmem:[#allocation5 + $0x328] sm:$0xff]  }
 0x23c   : > { %v7013_v15 = vcombine.low %v13638_v17, %v13647_v57  ;;  %v7128_v36 = vcombine.low %v5749_v60, %v7109_v6  ;;  %v13656_v26 = vrot.slane %v7127_v45, %v12435_v7  ;;  %10672 = vmatprep.subr.bf16.mxu0 %v14110_v3  ;;  %v14192_v10 = vld [vmem:[#allocation48_spill] sm:$0xff]  ;;  %v14194_v45 = vld [vmem:[#allocation49_spill] sm:$0xff]  ;;  %v14195_v61 = vld [vmem:[#allocation50_spill] sm:$0xff] }
 0x23d   : > { %v6864_v2 = vrot.slane %v6850_v16, %v12435_v7  ;;  %v14193_v30 = vcombine.low %v13025_v20, %v14192_v10  ;;  %v11383_v20 = vld [vmem:[#allocation5 + $0x2c0] sm:$0xff]   ;;  %v11382_v5 = vld [vmem:[#allocation5 + $0x318] sm:$0xff]   ;;  %v14196_v16 = vcombine.low %v14194_v45, %v14195_v61  ;;  %v11384_v6 = vld [vmem:[#allocation5 + $0x310] sm:$0xff]  }
 0x23e   : > { %10685 = vmatpush3.bf16.msra.mxu1 %v11355_v4  ;;  %v13662_v48 = vrot.slane %v7128_v36, %v12435_v7  ;;  %v11361_v7 = vld [vmem:[#allocation5 + $0x258] sm:$0xff]   ;;  %v11380_v41 = vld [vmem:[#allocation5 + $0x320] sm:$0xff]   ;;  %v11386_v36 = vld [vmem:[#allocation5 + $0x308] sm:$0xff]  }
 0x23f   : > { %10686 = vmatprep.subr.bf16.mxu1 %v14110_v3  ;;  %v13664_v29 = vcombine.low %v6857_v52, %v6864_v2  ;;  %10673 = vmatpush3.bf16.msra.mxu0 %v11352_v50  ;;  %v11387_v52 = vld [vmem:[#allocation5 + $0x370] sm:$0xff]   ;;  %v11389_v50 = vld [vmem:[#allocation5 + $0x368] sm:$0xff]   ;;  %v11388_v2 = vld [vmem:[#allocation5 + $0x300] sm:$0xff]  }
 0x240   : > { %v7143_v12 = vcombine.low %v13656_v26, %v13662_v48  ;;  %10674 = vmatprep.subr.bf16.mxu0 %v14110_v3  ;;  %v14201_v10 = vld [vmem:[#allocation42_spill] sm:$0xff]  ;;  %v11428_v35 = vld [vmem:[#allocation5 + $0x4a0] sm:$0xff]   ;;  %v11433_v38 = vld [vmem:[#allocation5 + $0x4f8] sm:$0xff]  }
 0x241   : > { %v11413_v45 = vld [vmem:[#allocation5 + $0x3c8] sm:$0xff]   ;;  %v11447_v57 = vld [vmem:[#allocation5 + $0x4c0] sm:$0xff]  }
 0x242   : > { %10687 = vmatpush3.bf16.msra.mxu1 %v11357_v23  ;;  %v11391_v23 = vld [vmem:[#allocation5 + $0x360] sm:$0xff]   ;;  %v11453_v26 = vld [vmem:[#allocation5 + $0x568] sm:$0xff]  }
 0x243   : > { %10688 = vmatprep.subr.bf16.mxu1 %v14110_v3  ;;  %10675 = vmatpush3.bf16.msra.mxu0 %v11354_v1 }
 0x244   : > { %10676 = vmatprep.subr.bf16.mxu0 %v14110_v3 }
 0x246   : > { %10689 = vmatpush3.bf16.msra.mxu1 %v11359_v28  ;;  %v11393_v28 = vld [vmem:[#allocation5 + $0x358] sm:$0xff]  }
 0x247   : > { %10690 = vmatprep.subr.bf16.mxu1 %v14110_v3  ;;  %10677 = vmatpush3.bf16.msra.mxu0 %v11356_v55 }
 0x248   : > { %10702 = vmatprep.subr.bf16.mxu0 %v14110_v3 }
 0x24a   : > { %10691 = vmatpush3.bf16.msra.mxu1 %v11361_v7  ;;  %10679 = vmatmul.mubr.bf16.vlgmr.msra.gmra.mxu0 %v5641_v13  ;;  %v11390_v7 = vld [vmem:[#allocation5 + $0x3b8] sm:$0xff]  }
 0x24b   : > { %10692 = vmatprep.subr.bf16.mxu1 %v14110_v3  ;;  %10703 = vmatpush3.bf16.msra.mxu0 %v11358_v27 }
 0x24c   : > { %10718 = vmatprep.mubr.msk.bf16.mxu0 %vm11902_vm1, %v14110_v3  ;;  %10704 = vmatprep.subr.bf16.mxu0 %v14110_v3 }
 0x24e   : > { %10693 = vmatpush3.bf16.msra.mxu1 %v11363_v18  ;;  %v11395_v18 = vld [vmem:[#allocation5 + $0x350] sm:$0xff]  }
 0x24f   : > { %10694 = vmatprep.subr.bf16.mxu1 %v14110_v3  ;;  %10705 = vmatpush3.bf16.msra.mxu0 %v11360_v54 }
 0x250   : > { %10706 = vmatprep.subr.bf16.mxu0 %v14110_v3 }
 0x252   : > { %10695 = vmatpush3.bf16.msra.mxu1 %v11365_v51  ;;  %v14197_v51 = vld [vmem:[#allocation38_spill] sm:$0xff] }
 0x253   : > { %10696 = vmatprep.subr.bf16.mxu1 %v14110_v3  ;;  %10707 = vmatpush3.bf16.msra.mxu0 %v11362_v40  ;;  %v14198_v40 = vld [vmem:[#allocation46_spill] sm:$0xff] }
 0x254   : > { %10708 = vmatprep.subr.bf16.mxu0 %v14110_v3 }
 0x256   : > { %10697 = vmatpush3.bf16.msra.mxu1 %v11367_v59  ;;  %v14199_v59 = vcombine.low %v14197_v51, %v14198_v40  ;;  %v11422_v51 = vld [vmem:[#allocation5 + $0x4b8] sm:$0xff]   ;;  %v11427_v40 = vld [vmem:[#allocation5 + $0x450] sm:$0xff]  }
 0x257   : > { %10722 = vmatprep.subr.bf16.mxu1 %v14110_v3  ;;  %10709 = vmatpush3.bf16.msra.mxu0 %v11364_v43  ;;  %v11392_v43 = vld [vmem:[#allocation5 + $0x3b0] sm:$0xff]  }
 0x258   : > { %10710 = vmatprep.subr.bf16.mxu0 %v14110_v3 }
 0x259   : > { %10699 = vmatmul.mubr.bf16.vlgmr.msra.gmra.mxu1 %v5783_v9  ;;  %v11385_v9 = vld [vmem:[#allocation5 + $0x378] sm:$0xff]  }
 0x25a   : > { %10723 = vmatpush3.bf16.msra.mxu1 %v11369_v32  ;;  %10738 = vmatprep.mubr.msk.bf16.mxu1 %vm11902_vm1, %v14110_v3  ;;  %v11397_v32 = vld [vmem:[#allocation5 + $0x348] sm:$0xff]  }
 0x25b   : > { %10724 = vmatprep.subr.bf16.mxu1 %v14110_v3  ;;  %10711 = vmatpush3.bf16.msra.mxu0 %v11366_v63 }
 0x25c   : > { %10712 = vmatprep.subr.bf16.mxu0 %v14110_v3 }
 0x25e   : > { %10725 = vmatpush3.bf16.msra.mxu1 %v11371_v56 }
 0x25f   : > { %10726 = vmatprep.subr.bf16.mxu1 %v14110_v3  ;;  %10713 = vmatpush3.bf16.msra.mxu0 %v11368_v58  ;;  %v11394_v58 = vld [vmem:[#allocation5 + $0x3a8] sm:$0xff]  }
 0x260   : > { %10714 = vmatprep.subr.bf16.mxu0 %v14110_v3 }
 0x262   : > { %10727 = vmatpush3.bf16.msra.mxu1 %v11373_v53 }
 0x263   : > { %10728 = vmatprep.subr.bf16.mxu1 %v14110_v3  ;;  %10715 = vmatpush3.bf16.msra.mxu0 %v11370_v22  ;;  %v11399_v22 = vld [vmem:[#allocation5 + $0x340] sm:$0xff]  }
 0x264   : > { %v4455_v60 = vpop.f32.mrf.mxu1  ;;  %10716 = vmatprep.subr.bf16.mxu0 %v14110_v3 }
 0x266   : > { %10729 = vmatpush3.bf16.msra.mxu1 %v11375_v25  ;;  %v10540_v11 = vpop.f32.mrf.mxu1 }
 0x267   : > { %10730 = vmatprep.subr.bf16.mxu1 %v14110_v3  ;;  %10717 = vmatpush3.bf16.msra.mxu0 %v11372_v49 }
 0x268   : > { %v4458_v13 = vpop.f32.mrf.mxu1  ;;  %10742 = vmatprep.subr.bf16.mxu0 %v14110_v3 }
 0x26a   : > { %10731 = vmatpush3.bf16.msra.mxu1 %v11377_v21  ;;  %v10541_v62 = vpop.f32.mrf.mxu1  ;;  %10719 = vmatmul.mubr.bf16.vlgmr.msra.gmra.mxu0 %v14193_v30  ;;  %v11396_v21 = vld [vmem:[#allocation5 + $0x3a0] sm:$0xff]  }
 0x26b   : > { %10732 = vmatprep.subr.bf16.mxu1 %v14110_v3  ;;  %10743 = vmatpush3.bf16.msra.mxu0 %v11374_v46  ;;  %v11401_v46 = vld [vmem:[#allocation5 + $0x3f8] sm:$0xff]   ;;  %v14200_v62 = vld [vmem:[#allocation34_spill] sm:$0xff] }
 0x26c   : > { %10758 = vmatprep.mubr.msk.bf16.mxu0 %vm11902_vm1, %v14110_v3  ;;  %10744 = vmatprep.subr.bf16.mxu0 %v14110_v3  ;;  %v14202_v30 = vcombine.low %v14200_v62, %v14201_v10  ;;  %v11438_v62 = vld [vmem:[#allocation5 + $0x538] sm:$0xff]   ;;  %v11443_v10 = vld [vmem:[#allocation5 + $0x4d0] sm:$0xff]  }
 0x26e   : > { %10733 = vmatpush3.bf16.msra.mxu1 %v11379_v39  ;;  %v4344_v34 = vpop.f32.mrf.mxu0  ;;  %v11398_v39 = vld [vmem:[#allocation5 + $0x398] sm:$0xff]  }
 0x26f   : > { %10734 = vmatprep.subr.bf16.mxu1 %v14110_v3  ;;  %10745 = vmatpush3.bf16.msra.mxu0 %v11376_v31  ;;  %v4456_v19 = vadd.f32 %v4455_v60, %v4344_v34  ;;  %v11403_v31 = vld [vmem:[#allocation5 + $0x3f0] sm:$0xff]   ;;  %v11405_v34 = vld [vmem:[#allocation5 + $0x3e8] sm:$0xff]  }
 0x270   : > { %10746 = vmatprep.subr.bf16.mxu0 %v14110_v3  ;;  %v10520_v14 = vpop.f32.mrf.mxu0 }
 0x271   : > { %v11404_v14 = vld [vmem:[#allocation5 + $0x380] sm:$0xff]  }
 0x272   : > { %10735 = vmatpush3.bf16.msra.mxu1 %v11381_v24  ;;  %v4347_v33 = vpop.f32.mrf.mxu0  ;;  %v11400_v24 = vld [vmem:[#allocation5 + $0x390] sm:$0xff]  }
 0x273   : > { %10736 = vmatprep.subr.bf16.mxu1 %v14110_v3  ;;  %10747 = vmatpush3.bf16.msra.mxu0 %v11378_v0  ;;  %v13709_v44 = vadd.f32 %v4458_v13, %v4347_v33  ;;  %v11407_v0 = vld [vmem:[#allocation5 + $0x3e0] sm:$0xff]   ;;  %v11406_v33 = vld [vmem:[#allocation5 + $0x438] sm:$0xff]  }
 0x274   : > { %10748 = vmatprep.subr.bf16.mxu0 %v14110_v3  ;;  %v10521_v4 = vpop.f32.mrf.mxu0 }
 0x275   : > { %v14204_v4 = vld [vmem:[#allocation41_spill] sm:$0xff] }
 0x276   : > { %10737 = vmatpush3.bf16.msra.mxu1 %v11383_v20  ;;  %v11409_v20 = vld [vmem:[#allocation5 + $0x3d8] sm:$0xff]  }
 0x277   : > { %10762 = vmatprep.subr.bf16.mxu1 %v14110_v3  ;;  %10749 = vmatpush3.bf16.msra.mxu0 %v11380_v41  ;;  %v14203_v41 = vld [vmem:[#allocation40_spill] sm:$0xff] }
 0x278   : > { %10750 = vmatprep.subr.bf16.mxu0 %v14110_v3 }
 0x279   : > { %10739 = vmatmul.mubr.bf16.vlgmr.msra.gmra.mxu1 %v14196_v16 }
 0x27a   : > { %10763 = vmatpush3.bf16.msra.mxu1 %v11385_v9  ;;  %10778 = vmatprep.mubr.msk.bf16.mxu1 %vm11902_vm1, %v14110_v3  ;;  %v14205_v9 = vcombine.low %v14203_v41, %v14204_v4 }
 0x27b   : > { %10764 = vmatprep.subr.bf16.mxu1 %v14110_v3  ;;  %10751 = vmatpush3.bf16.msra.mxu0 %v11382_v5  ;;  %v11408_v5 = vld [vmem:[#allocation5 + $0x430] sm:$0xff]  }
 0x27c   : > { %10752 = vmatprep.subr.bf16.mxu0 %v14110_v3 }
 0x27e   : > { %10765 = vmatpush3.bf16.msra.mxu1 %v11387_v52  ;;  %v11410_v52 = vld [vmem:[#allocation5 + $0x428] sm:$0xff]  }
 0x27f   : > { %10766 = vmatprep.subr.bf16.mxu1 %v14110_v3  ;;  %10753 = vmatpush3.bf16.msra.mxu0 %v11384_v6 }
 0x280   : > { %10754 = vmatprep.subr.bf16.mxu0 %v14110_v3 }
 0x282   : > { %10767 = vmatpush3.bf16.msra.mxu1 %v11389_v50  ;;  %v11415_v50 = vld [vmem:[#allocation5 + $0x3c0] sm:$0xff]  }
 0x283   : > { %10768 = vmatprep.subr.bf16.mxu1 %v14110_v3  ;;  %10755 = vmatpush3.bf16.msra.mxu0 %v11386_v36 }
 0x284   : > { %v4888_v1 = vpop.f32.mrf.mxu1  ;;  %10756 = vmatprep.subr.bf16.mxu0 %v14110_v3 }
 0x286   : > { %10769 = vmatpush3.bf16.msra.mxu1 %v11391_v23  ;;  %v10580_v55 = vpop.f32.mrf.mxu1 }
 0x287   : > { %10770 = vmatprep.subr.bf16.mxu1 %v14110_v3  ;;  %10757 = vmatpush3.bf16.msra.mxu0 %v11388_v2  ;;  %v11412_v2 = vld [vmem:[#allocation5 + $0x420] sm:$0xff]   ;;  %v11414_v55 = vld [vmem:[#allocation5 + $0x418] sm:$0xff]  }
 0x288   : > { %v4891_v27 = vpop.f32.mrf.mxu1  ;;  %10782 = vmatprep.subr.bf16.mxu0 %v14110_v3 }
 0x28a   : > { %10771 = vmatpush3.bf16.msra.mxu1 %v11393_v28  ;;  %v10581_v54 = vpop.f32.mrf.mxu1  ;;  %10759 = vmatmul.mubr.bf16.vlgmr.msra.gmra.mxu0 %v14199_v59  ;;  %v11417_v28 = vld [vmem:[#allocation5 + $0x478] sm:$0xff]   ;;  %v11424_v59 = vld [vmem:[#allocation5 + $0x4b0] sm:$0xff]  }
 0x28b   : > { %10772 = vmatprep.subr.bf16.mxu1 %v14110_v3  ;;  %10783 = vmatpush3.bf16.msra.mxu0 %v11390_v7  ;;  %v11419_v7 = vld [vmem:[#allocation5 + $0x470] sm:$0xff]   ;;  %v11425_v54 = vld [vmem:[#allocation5 + $0x458] sm:$0xff]  }
 0x28c   : > { %10798 = vmatprep.mubr.msk.bf16.mxu0 %vm11902_vm1, %v14110_v3  ;;  %10784 = vmatprep.subr.bf16.mxu0 %v14110_v3 }
 0x28e   : > { %10773 = vmatpush3.bf16.msra.mxu1 %v11395_v18  ;;  %v4674_v63 = vpop.f32.mrf.mxu0  ;;  %v11421_v18 = vld [vmem:[#allocation5 + $0x468] sm:$0xff]  }
 0x28f   : > { %10774 = vmatprep.subr.bf16.mxu1 %v14110_v3  ;;  %10785 = vmatpush3.bf16.msra.mxu0 %v11392_v43  ;;  %v4681_v56 = vadd.f32 %v4674_v63, %v4456_v19  ;;  %v11402_v19 = vld [vmem:[#allocation5 + $0x388] sm:$0xff]   ;;  %v11431_v63 = vld [vmem:[#allocation5 + $0x440] sm:$0xff]  }
 0x290   : > { %10786 = vmatprep.subr.bf16.mxu0 %v14110_v3  ;;  %v10560_v53 = vpop.f32.mrf.mxu0  ;;  %v11429_v43 = vld [vmem:[#allocation5 + $0x448] sm:$0xff]  }
 0x291   : > { %v4895_v25 = vadd.f32 %v4888_v1, %v4681_v56  ;;  %v11435_v53 = vld [vmem:[#allocation5 + $0x4f0] sm:$0xff]  }
 0x292   : > { %10775 = vmatpush3.bf16.msra.mxu1 %v11397_v32  ;;  %v4677_v49 = vpop.f32.mrf.mxu0  ;;  %v11426_v32 = vld [vmem:[#allocation5 + $0x4a8] sm:$0xff]  }
 0x293   : > { %10776 = vmatprep.subr.bf16.mxu1 %v14110_v3  ;;  %10787 = vmatpush3.bf16.msra.mxu0 %v11394_v58  ;;  %v4682_v60 = vadd.f32 %v4677_v49, %v13709_v44  ;;  %v11411_v44 = vld [vmem:[#allocation5 + $0x3d0] sm:$0xff]  }
 0x294   : > { %10788 = vmatprep.subr.bf16.mxu0 %v14110_v3  ;;  %v10561_v11 = vpop.f32.mrf.mxu0 }
 0x295   : > { %v4896_v13 = vadd.f32 %v4891_v27, %v4682_v60  ;;  %v11416_v27 = vld [vmem:[#allocation5 + $0x410] sm:$0xff]   ;;  %v11437_v60 = vld [vmem:[#allocation5 + $0x4e8] sm:$0xff]  }
 0x296   : > { %10777 = vmatpush3.bf16.msra.mxu1 %v11399_v22  ;;  %v11434_v11 = vld [vmem:[#allocation5 + $0x488] sm:$0xff]  }
 0x297   : > { %10802 = vmatprep.subr.bf16.mxu1 %v14110_v3  ;;  %10789 = vmatpush3.bf16.msra.mxu0 %v11396_v21 }
 0x298   : > { %10790 = vmatprep.subr.bf16.mxu0 %v14110_v3 }
 0x299   : > { %10779 = vmatmul.mubr.bf16.vlgmr.msra.gmra.mxu1 %v14202_v30 }
 0x29a   : > { %10803 = vmatpush3.bf16.msra.mxu1 %v11401_v46  ;;  %10818 = vmatprep.mubr.msk.bf16.mxu1 %vm11902_vm1, %v14110_v3  ;;  %v11439_v46 = vld [vmem:[#allocation5 + $0x4e0] sm:$0xff]  }
 0x29b   : > { %10804 = vmatprep.subr.bf16.mxu1 %v14110_v3  ;;  %10791 = vmatpush3.bf16.msra.mxu0 %v11398_v39  ;;  %v11441_v39 = vld [vmem:[#allocation5 + $0x4d8] sm:$0xff]  }
 0x29c   : > { %10792 = vmatprep.subr.bf16.mxu0 %v14110_v3 }
 0x29e   : > { %10805 = vmatpush3.bf16.msra.mxu1 %v11403_v31 }
 0x29f   : > { %10806 = vmatprep.subr.bf16.mxu1 %v14110_v3  ;;  %10793 = vmatpush3.bf16.msra.mxu0 %v11400_v24  ;;  %v11440_v24 = vld [vmem:[#allocation5 + $0x530] sm:$0xff]  }
 0x2a0   : > { %10794 = vmatprep.subr.bf16.mxu0 %v14110_v3 }
 0x2a2   : > { %10807 = vmatpush3.bf16.msra.mxu1 %v11405_v34 }
 0x2a3   : > { %10808 = vmatprep.subr.bf16.mxu1 %v14110_v3  ;;  %10795 = vmatpush3.bf16.msra.mxu0 %v11402_v19  ;;  %v11445_v19 = vld [vmem:[#allocation5 + $0x4c8] sm:$0xff]  }
 0x2a4   : > { %10796 = vmatprep.subr.bf16.mxu0 %v14110_v3 }
 0x2a6   : > { %10809 = vmatpush3.bf16.msra.mxu1 %v11407_v0 }
 0x2a7   : > { %10810 = vmatprep.subr.bf16.mxu1 %v14110_v3  ;;  %10797 = vmatpush3.bf16.msra.mxu0 %v11404_v14 }
 0x2a8   : > { %10822 = vmatprep.subr.bf16.mxu0 %v14110_v3 }
 0x2aa   : > { %10811 = vmatpush3.bf16.msra.mxu1 %v11409_v20  ;;  %10799 = vmatmul.mubr.bf16.vlgmr.msra.gmra.mxu0 %v14205_v9  ;;  %v11442_v20 = vld [vmem:[#allocation5 + $0x528] sm:$0xff]   ;;  %v11451_v9 = vld [vmem:[#allocation5 + $0x570] sm:$0xff]  }
 0x2ab   : > { %10812 = vmatprep.subr.bf16.mxu1 %v14110_v3  ;;  %10823 = vmatpush3.bf16.msra.mxu0 %v11406_v33  ;;  %v11449_v33 = vld [vmem:[#allocation5 + $0x578] sm:$0xff]  }
 0x2ac   : > { %10838 = vmatprep.mubr.msk.bf16.mxu0 %vm11902_vm1, %v14110_v3  ;;  %10824 = vmatprep.subr.bf16.mxu0 %v14110_v3 }
 0x2ae   : > { %10813 = vmatpush3.bf16.msra.mxu1 %v11411_v44  ;;  %v11446_v44 = vld [vmem:[#allocation5 + $0x518] sm:$0xff]  }
 0x2af   : > { %10814 = vmatprep.subr.bf16.mxu1 %v14110_v3  ;;  %v5037_v61 = vpop.f32.mrf.mxu0  ;;  %10825 = vmatpush3.bf16.msra.mxu0 %v11408_v5 }
 0x2b0   : > { %v13762_v16 = vadd.f32 %v5037_v61, %v4895_v25  ;;  %10826 = vmatprep.subr.bf16.mxu0 %v14110_v3  ;;  %v11432_v25 = vld [vmem:[#allocation5 + $0x490] sm:$0xff]  }
 0x2b1   : > { %v10600_v6 = vpop.f32.mrf.mxu0 }
 0x2b2   : > { %10815 = vmatpush3.bf16.msra.mxu1 %v11413_v45  ;;  %v11448_v45 = vld [vmem:[#allocation5 + $0x510] sm:$0xff]   ;;  %v11452_v6 = vld [vmem:[#allocation5 + $0x500] sm:$0xff]  }
 0x2b3   : > { %10816 = vmatprep.subr.bf16.mxu1 %v14110_v3  ;;  %v5040_v36 = vpop.f32.mrf.mxu0  ;;  %10827 = vmatpush3.bf16.msra.mxu0 %v11410_v52  ;;  %v11455_v52 = vld [vmem:[#allocation5 + $0x560] sm:$0xff]  }
 0x2b4   : > { %v13766_v23 = vadd.f32 %v5040_v36, %v4896_v13  ;;  %10828 = vmatprep.subr.bf16.mxu0 %v14110_v3  ;;  %v11436_v13 = vld [vmem:[#allocation5 + $0x480] sm:$0xff]   ;;  %v11454_v36 = vld [vmem:[#allocation5 + $0x5b8] sm:$0xff]  }
 0x2b5   : > { %v10601_v1 = vpop.f32.mrf.mxu0 }
 0x2b6   : > { %10817 = vmatpush3.bf16.msra.mxu1 %v11415_v50  ;;  %v11457_v50 = vld [vmem:[#allocation5 + $0x558] sm:$0xff]  }
 0x2b7   : > { %10842 = vmatprep.subr.bf16.mxu1 %v14110_v3  ;;  %10829 = vmatpush3.bf16.msra.mxu0 %v11412_v2  ;;  %v14206_v1 = vld [vmem:[#allocation35_spill] sm:$0xff] }
 0x2b8   : > { %10830 = vmatprep.subr.bf16.mxu0 %v14110_v3 }
 0x2b9   : > { %10819 = vmatmul.mubr.bf16.vlgmr.msra.gmra.mxu1 %v6590_v42  ;;  %v11420_v42 = vld [vmem:[#allocation5 + $0x400] sm:$0xff]  }
 0x2ba   : > { %10843 = vmatpush3.bf16.msra.mxu1 %v11417_v28  ;;  %10858 = vmatprep.mubr.msk.bf16.mxu1 %vm11902_vm1, %v14110_v3  ;;  %v14207_v28 = vld [vmem:[#allocation37_spill] sm:$0xff] }
 0x2bb   : > { %10844 = vmatprep.subr.bf16.mxu1 %v14110_v3  ;;  %10831 = vmatpush3.bf16.msra.mxu0 %v11414_v55  ;;  %v14208_v55 = vcombine.low %v14206_v1, %v14207_v28 }
 0x2bc   : > { %10832 = vmatprep.subr.bf16.mxu0 %v14110_v3 }
 0x2be   : > { %10845 = vmatpush3.bf16.msra.mxu1 %v11419_v7 }
 0x2bf   : > { %10846 = vmatprep.subr.bf16.mxu1 %v14110_v3  ;;  %10833 = vmatpush3.bf16.msra.mxu0 %v11416_v27  ;;  %v11456_v27 = vld [vmem:[#allocation5 + $0x5b0] sm:$0xff]  }
 0x2c0   : > { %10834 = vmatprep.subr.bf16.mxu0 %v14110_v3 }
 0x2c2   : > { %10847 = vmatpush3.bf16.msra.mxu1 %v11421_v18 }
 0x2c3   : > { %10848 = vmatprep.subr.bf16.mxu1 %v14110_v3  ;;  %10835 = vmatpush3.bf16.msra.mxu0 %v11418_v47  ;;  %v11461_v47 = vld [vmem:[#allocation5 + $0x548] sm:$0xff]  }
 0x2c4   : > { %10836 = vmatprep.subr.bf16.mxu0 %v14110_v3 }
 0x2c6   : > { %10849 = vmatpush3.bf16.msra.mxu1 %v11423_v37 }
 0x2c7   : > { %10850 = vmatprep.subr.bf16.mxu1 %v14110_v3  ;;  %10837 = vmatpush3.bf16.msra.mxu0 %v11420_v42 }
 0x2c8   : > { %10862 = vmatprep.subr.bf16.mxu0 %v14110_v3 }
 0x2ca   : > { %10851 = vmatpush3.bf16.msra.mxu1 %v11425_v54  ;;  %10839 = vmatmul.mubr.bf16.vlgmr.msra.gmra.mxu0 %v6717_v8  ;;  %v11430_v8 = vld [vmem:[#allocation5 + $0x498] sm:$0xff]   ;;  %v11458_v54 = vld [vmem:[#allocation5 + $0x5a8] sm:$0xff]  }
 0x2cb   : > { %10852 = vmatprep.subr.bf16.mxu1 %v14110_v3  ;;  %10863 = vmatpush3.bf16.msra.mxu0 %v11422_v51 }
 0x2cc   : > { %10878 = vmatprep.mubr.msk.bf16.mxu0 %vm11902_vm1, %v14110_v3  ;;  %10864 = vmatprep.subr.bf16.mxu0 %v14110_v3 }
 0x2ce   : > { %10853 = vmatpush3.bf16.msra.mxu1 %v11427_v40  ;;  %v11463_v40 = vld [vmem:[#allocation5 + $0x540] sm:$0xff]  }
 0x2cf   : > { %10854 = vmatprep.subr.bf16.mxu1 %v14110_v3  ;;  %10865 = vmatpush3.bf16.msra.mxu0 %v11424_v59  ;;  %v11460_v59 = vld [vmem:[#allocation5 + $0x5a0] sm:$0xff]  }
 0x2d0   : > { %10866 = vmatprep.subr.bf16.mxu0 %v14110_v3 }
 0x2d2   : > { %10855 = vmatpush3.bf16.msra.mxu1 %v11429_v43  ;;  %v11465_v43 = vld [vmem:[#allocation5 + $0x5f8] sm:$0xff]  }
 0x2d3   : > { %10856 = vmatprep.subr.bf16.mxu1 %v14110_v3  ;;  %10867 = vmatpush3.bf16.msra.mxu0 %v11426_v32  ;;  %v11462_v32 = vld [vmem:[#allocation5 + $0x598] sm:$0xff]  }
 0x2d4   : > { %10868 = vmatprep.subr.bf16.mxu0 %v14110_v3 }
 0x2d6   : > { %10857 = vmatpush3.bf16.msra.mxu1 %v11431_v63 }
 0x2d7   : > { %10882 = vmatprep.subr.bf16.mxu1 %v14110_v3  ;;  %10869 = vmatpush3.bf16.msra.mxu0 %v11428_v35  ;;  %v14209_v35 = vld [vmem:[#allocation43_spill] sm:$0xff] }
 0x2d8   : > { %10870 = vmatprep.subr.bf16.mxu0 %v14110_v3 }
 0x2d9   : > { %10859 = vmatmul.mubr.bf16.vlgmr.msra.gmra.mxu1 %v13664_v29  ;;  %v5167_v56 = vpop.f32.mrf.mxu1 }
 0x2da   : > { %v5174_v58 = vadd.f32 %v5167_v56, %v13762_v16  ;;  %10883 = vmatpush3.bf16.msra.mxu1 %v11433_v38  ;;  %10898 = vmatprep.mubr.msk.bf16.mxu1 %vm11902_vm1, %v14110_v3  ;;  %v14210_v38 = vld [vmem:[#allocation39_spill] sm:$0xff] }
 0x2db   : > { %v10620_v22 = vpop.f32.mrf.mxu1  ;;  %10884 = vmatprep.subr.bf16.mxu1 %v14110_v3  ;;  %10871 = vmatpush3.bf16.msra.mxu0 %v11430_v8  ;;  %v14211_v8 = vcombine.low %v14209_v35, %v14210_v38  ;;  %v11483_v35 = vld [vmem:[#allocation7 + $0x78] sm:$0xff]  }
 0x2dc   : > { %10872 = vmatprep.subr.bf16.mxu0 %v14110_v3  ;;  %v11464_v22 = vld [vmem:[#allocation5 + $0x590] sm:$0xff]   ;;  %v11484_v38 = vld [vmem:[#allocation7 + $0xf8] sm:$0xff]  }
 0x2dd   : > { %v5170_v49 = vpop.f32.mrf.mxu1 }
 0x2de   : > { %v5175_v29 = vadd.f32 %v5170_v49, %v13766_v23  ;;  %10885 = vmatpush3.bf16.msra.mxu1 %v11435_v53  ;;  %v11459_v23 = vld [vmem:[#allocation5 + $0x550] sm:$0xff]  }
 0x2df   : > { %v10621_v21 = vpop.f32.mrf.mxu1  ;;  %10886 = vmatprep.subr.bf16.mxu1 %v14110_v3  ;;  %10873 = vmatpush3.bf16.msra.mxu0 %v11432_v25 }
 0x2e0   : > { %10874 = vmatprep.subr.bf16.mxu0 %v14110_v3  ;;  %v11466_v21 = vld [vmem:[#allocation5 + $0x588] sm:$0xff]  }
 0x2e2   : > { %10887 = vmatpush3.bf16.msra.mxu1 %v11437_v60 }
 0x2e3   : > { %10888 = vmatprep.subr.bf16.mxu1 %v14110_v3  ;;  %10875 = vmatpush3.bf16.msra.mxu0 %v11434_v11  ;;  %v11471_v11 = vld [vmem:[#allocation5 + $0x5e0] sm:$0xff]  }
 0x2e4   : > { %10876 = vmatprep.subr.bf16.mxu0 %v14110_v3 }
 0x2e6   : > { %10889 = vmatpush3.bf16.msra.mxu1 %v11439_v46  ;;  %v11468_v46 = vld [vmem:[#allocation5 + $0x580] sm:$0xff]  }
 0x2e7   : > { %10890 = vmatprep.subr.bf16.mxu1 %v14110_v3  ;;  %10877 = vmatpush3.bf16.msra.mxu0 %v11436_v13  ;;  %v11473_v13 = vld [vmem:[#allocation5 + $0x5d8] sm:$0xff]  }
 0x2e8   : > { %10902 = vmatprep.subr.bf16.mxu0 %v14110_v3 }
 0x2ea   : > { %10891 = vmatpush3.bf16.msra.mxu1 %v11441_v39  ;;  %10879 = vmatmul.mubr.bf16.vlgmr.msra.gmra.mxu0 %v7013_v15  ;;  %v5297_v30 = vpop.f32.mrf.mxu0  ;;  %v11444_v15 = vld [vmem:[#allocation5 + $0x520] sm:$0xff]   ;;  %v11470_v39 = vld [vmem:[#allocation5 + $0x638] sm:$0xff]  }
 0x2eb   : > { %10892 = vmatprep.subr.bf16.mxu1 %v14110_v3  ;;  %v5304_v31 = vadd.f32 %v5297_v30, %v5174_v58  ;;  %10903 = vmatpush3.bf16.msra.mxu0 %v11438_v62  ;;  %v11467_v58 = vld [vmem:[#allocation5 + $0x5f0] sm:$0xff]   ;;  %v14212_v30 = vld [vmem:[#allocation36_spill] sm:$0xff] }
 0x2ec   : > { %10918 = vmatprep.mubr.msk.bf16.mxu0 %vm11902_vm1, %v14110_v3  ;;  %v10640_v34 = vpop.f32.mrf.mxu0  ;;  %10904 = vmatprep.subr.bf16.mxu0 %v14110_v3  ;;  %v11475_v62 = vld [vmem:[#allocation5 + $0x5d0] sm:$0xff]  }
 0x2ee   : > { %10893 = vmatpush3.bf16.msra.mxu1 %v11443_v10  ;;  %v5300_v0 = vpop.f32.mrf.mxu0 }
 0x2ef   : > { %10894 = vmatprep.subr.bf16.mxu1 %v14110_v3  ;;  %v5305_v14 = vadd.f32 %v5300_v0, %v5175_v29  ;;  %10905 = vmatpush3.bf16.msra.mxu0 %v11440_v24  ;;  %v11469_v29 = vld [vmem:[#allocation5 + $0x5e8] sm:$0xff]   ;;  %v11472_v24 = vld [vmem:[#allocation5 + $0x630] sm:$0xff]  }
 0x2f0   : > { %v10641_v17 = vpop.f32.mrf.mxu0  ;;  %10906 = vmatprep.subr.bf16.mxu0 %v14110_v3 }
 0x2f2   : > { %10895 = vmatpush3.bf16.msra.mxu1 %v11445_v19  ;;  %v11477_v19 = vld [vmem:[#allocation5 + $0x5c8] sm:$0xff]  }
 0x2f3   : > { %10896 = vmatprep.subr.bf16.mxu1 %v14110_v3  ;;  %10907 = vmatpush3.bf16.msra.mxu0 %v11442_v20  ;;  %v11474_v20 = vld [vmem:[#allocation5 + $0x628] sm:$0xff]  }
 0x2f4   : > { %10908 = vmatprep.subr.bf16.mxu0 %v14110_v3 }
 0x2f6   : > { %10897 = vmatpush3.bf16.msra.mxu1 %v11447_v57  ;;  %v11479_v57 = vld [vmem:[#allocation5 + $0x5c0] sm:$0xff]  }
 0x2f7   : > { %10922 = vmatprep.subr.bf16.mxu1 %v14110_v3  ;;  %10909 = vmatpush3.bf16.msra.mxu0 %v11444_v15  ;;  %v11476_v15 = vld [vmem:[#allocation5 + $0x620] sm:$0xff]  }
 0x2f8   : > { %10910 = vmatprep.subr.bf16.mxu0 %v14110_v3 }
 0x2f9   : > { %v5511_v41 = vpop.f32.mrf.mxu1  ;;  %10899 = vmatmul.mubr.bf16.vlgmr.msra.gmra.mxu1 %v7143_v12  ;;  %v11450_v12 = vld [vmem:[#allocation5 + $0x508] sm:$0xff]  }
 0x2fa   : > { %v5518_v4 = vadd.f32 %v5511_v41, %v5304_v31  ;;  %10923 = vmatpush3.bf16.msra.mxu1 %v11449_v33  ;;  %10938 = vmatprep.mubr.msk.bf16.mxu1 %vm11902_vm1, %v14110_v3  ;;  %v11478_v33 = vld [vmem:[#allocation5 + $0x618] sm:$0xff]  }
 0x2fb   : > { %v10660_v5 = vpop.f32.mrf.mxu1  ;;  %10924 = vmatprep.subr.bf16.mxu1 %v14110_v3  ;;  %10911 = vmatpush3.bf16.msra.mxu0 %v11446_v44  ;;  %v14213_v41 = vld [vmem:[#allocation47_spill] sm:$0xff] }
 0x2fc   : > { %10912 = vmatprep.subr.bf16.mxu0 %v14110_v3 }
 0x2fd   : > { %v5514_v61 = vpop.f32.mrf.mxu1 }
 0x2fe   : > { %v5519_v16 = vadd.f32 %v5514_v61, %v5305_v14  ;;  %10925 = vmatpush3.bf16.msra.mxu1 %v11451_v9  ;;  %v11480_v61 = vld [vmem:[#allocation5 + $0x610] sm:$0xff]  }
 0x2ff   : > { %v10661_v48 = vpop.f32.mrf.mxu1  ;;  %10926 = vmatprep.subr.bf16.mxu1 %v14110_v3  ;;  %10913 = vmatpush3.bf16.msra.mxu0 %v11448_v45 }
 0x300   : > { %10914 = vmatprep.subr.bf16.mxu0 %v14110_v3 }
 0x302   : > { %10927 = vmatpush3.bf16.msra.mxu1 %v11453_v26 }
 0x303   : > { %10928 = vmatprep.subr.bf16.mxu1 %v14110_v3  ;;  %10915 = vmatpush3.bf16.msra.mxu0 %v11450_v12  ;;  %v11481_v12 = vld [vmem:[#allocation5 + $0x608] sm:$0xff]  }
 0x304   : > { %10916 = vmatprep.subr.bf16.mxu0 %v14110_v3 }
 0x306   : > { %10929 = vmatpush3.bf16.msra.mxu1 %v11455_v52  ;;  %v11482_v52 = vld [vmem:[#allocation5 + $0x600] sm:$0xff]  }
 0x307   : > { %10930 = vmatprep.subr.bf16.mxu1 %v14110_v3  ;;  %10917 = vmatpush3.bf16.msra.mxu0 %v11452_v6 }
 0x308   : > { %10942 = vmatprep.subr.bf16.mxu0 %v14110_v3 }
 0x30a   : > { %10931 = vmatpush3.bf16.msra.mxu1 %v11457_v50  ;;  %v5725_v2 = vpop.f32.mrf.mxu0  ;;  %10919 = vmatmul.mubr.bf16.vlgmr.msra.gmra.mxu0 %v14208_v55  ;;  %v14216_v50 = vld [vmem:[#allocation51_spill] sm:$0xff] }
 0x30b   : > { %10932 = vmatprep.subr.bf16.mxu1 %v14110_v3  ;;  %v5732_v7 = vadd.f32 %v5725_v2, %v5518_v4  ;;  %10943 = vmatpush3.bf16.msra.mxu0 %v11454_v36  ;;  %v14214_v4 = vld [vmem:[#allocation44_spill] sm:$0xff]  ;;  %v14217_v36 = vld [vmem:[#allocation33_spill] sm:$0xff] }
 0x30c   : > { %10958 = vmatprep.mubr.msk.bf16.mxu0 %vm11902_vm1, %v14110_v3  ;;  %v10680_v18 = vpop.f32.mrf.mxu0  ;;  %10944 = vmatprep.subr.bf16.mxu0 %v14110_v3  ;;  %v14215_v9 = vcombine.low %v14213_v41, %v14214_v4 }
 0x30e   : > { %10933 = vmatpush3.bf16.msra.mxu1 %v11459_v23  ;;  %v5728_v37 = vpop.f32.mrf.mxu0  ;;  %v14218_v23 = vcombine.low %v14216_v50, %v14217_v36  ;;  %v11513_v50 = vld [vmem:[#allocation7] sm:$0xff]  }
 0x30f   : > { %10934 = vmatprep.subr.bf16.mxu1 %v14110_v3  ;;  %v5733_v42 = vadd.f32 %v5728_v37, %v5519_v16  ;;  %10945 = vmatpush3.bf16.msra.mxu0 %v11456_v27  ;;  %v11514_v36 = vld [vmem:[#allocation7 + $0x80] sm:$0xff]  }
 0x310   : > { %v10681_v51 = vpop.f32.mrf.mxu0  ;;  %10946 = vmatprep.subr.bf16.mxu0 %v14110_v3 }
 0x312   : > { %10935 = vmatpush3.bf16.msra.mxu1 %v11461_v47 }
 0x313   : > { %10936 = vmatprep.subr.bf16.mxu1 %v14110_v3  ;;  %10947 = vmatpush3.bf16.msra.mxu0 %v11458_v54 }
 0x314   : > { %10948 = vmatprep.subr.bf16.mxu0 %v14110_v3 }
 0x316   : > { %10937 = vmatpush3.bf16.msra.mxu1 %v11463_v40 }
 0x317   : > { %10962 = vmatprep.subr.bf16.mxu1 %v14110_v3  ;;  %10949 = vmatpush3.bf16.msra.mxu0 %v11460_v59 }
 0x318   : > { %10950 = vmatprep.subr.bf16.mxu0 %v14110_v3 }
 0x319   : > { %v5867_v63 = vpop.f32.mrf.mxu1  ;;  %10939 = vmatmul.mubr.bf16.vlgmr.msra.gmra.mxu1 %v14211_v8  ;;  %v11485_v8 = vld [vmem:[#allocation7 + $0x38] sm:$0xff]  }
 0x31a   : > { %v5874_v56 = vadd.f32 %v5867_v63, %v5732_v7  ;;  %10963 = vmatpush3.bf16.msra.mxu1 %v11465_v43  ;;  %10978 = vmatprep.mubr.msk.bf16.mxu1 %vm11902_vm1, %v14110_v3 }
 0x31b   : > { %v10700_v53 = vpop.f32.mrf.mxu1  ;;  %10964 = vmatprep.subr.bf16.mxu1 %v14110_v3  ;;  %10951 = vmatpush3.bf16.msra.mxu0 %v11462_v32 }
 0x31c   : > { %10952 = vmatprep.subr.bf16.mxu0 %v14110_v3  ;;  %v11488_v53 = vld [vmem:[#allocation7 + $0xf0] sm:$0xff]  }
 0x31d   : > { %v5870_v25 = vpop.f32.mrf.mxu1 }
 0x31e   : > { %v5875_v49 = vadd.f32 %v5870_v25, %v5733_v42  ;;  %10965 = vmatpush3.bf16.msra.mxu1 %v11467_v58  ;;  %v11487_v58 = vld [vmem:[#allocation7 + $0x70] sm:$0xff]  }
 0x31f   : > { %v10701_v60 = vpop.f32.mrf.mxu1  ;;  %10966 = vmatprep.subr.bf16.mxu1 %v14110_v3  ;;  %10953 = vmatpush3.bf16.msra.mxu0 %v11464_v22  ;;  %v11489_v22 = vld [vmem:[#allocation7 + $0x30] sm:$0xff]  }
 0x320   : > { %10954 = vmatprep.subr.bf16.mxu0 %v14110_v3  ;;  %v11490_v25 = vld [vmem:[#allocation7 + $0xb0] sm:$0xff]  }
 0x322   : > { %10967 = vmatpush3.bf16.msra.mxu1 %v11469_v29  ;;  %v11492_v29 = vld [vmem:[#allocation7 + $0xe8] sm:$0xff]  }
 0x323   : > { %10968 = vmatprep.subr.bf16.mxu1 %v14110_v3  ;;  %10955 = vmatpush3.bf16.msra.mxu0 %v11466_v21  ;;  %v11493_v21 = vld [vmem:[#allocation7 + $0x28] sm:$0xff]  }
 0x324   : > { %10956 = vmatprep.subr.bf16.mxu0 %v14110_v3 }
 0x326   : > { %10969 = vmatpush3.bf16.msra.mxu1 %v11471_v11  ;;  %v11494_v11 = vld [vmem:[#allocation7 + $0xa8] sm:$0xff]  }
 0x327   : > { %10970 = vmatprep.subr.bf16.mxu1 %v14110_v3  ;;  %10957 = vmatpush3.bf16.msra.mxu0 %v11468_v46 }
 0x328   : > { %10982 = vmatprep.subr.bf16.mxu0 %v14110_v3 }
 0x32a   : > { %10971 = vmatpush3.bf16.msra.mxu1 %v11473_v13  ;;  %v5994_v10 = vpop.f32.mrf.mxu0  ;;  %10959 = vmatmul.mubr.bf16.vlgmr.msra.gmra.mxu0 %v14212_v30  ;;  %v11495_v13 = vld [vmem:[#allocation7 + $0x60] sm:$0xff]  }
 0x32b   : > { %10972 = vmatprep.subr.bf16.mxu1 %v14110_v3  ;;  %v6001_v31 = vadd.f32 %v5994_v10, %v5874_v56  ;;  %10983 = vmatpush3.bf16.msra.mxu0 %v11470_v39  ;;  %v11486_v56 = vld [vmem:[#allocation7 + $0xb8] sm:$0xff]   ;;  %v11496_v39 = vld [vmem:[#allocation7 + $0xe0] sm:$0xff]  }
 0x32c   : > { %10998 = vmatprep.mubr.msk.bf16.mxu0 %vm11902_vm1, %v14110_v3  ;;  %v10720_v34 = vpop.f32.mrf.mxu0  ;;  %10984 = vmatprep.subr.bf16.mxu0 %v14110_v3  ;;  %v11497_v30 = vld [vmem:[#allocation7 + $0x20] sm:$0xff]  }
 0x32d   : > { %v11499_v34 = vld [vmem:[#allocation7 + $0x58] sm:$0xff]  }
 0x32e   : > { %10973 = vmatpush3.bf16.msra.mxu1 %v11475_v62  ;;  %v5997_v0 = vpop.f32.mrf.mxu0 }
 0x32f   : > { %10974 = vmatprep.subr.bf16.mxu1 %v14110_v3  ;;  %v6002_v14 = vadd.f32 %v5997_v0, %v5875_v49  ;;  %10985 = vmatpush3.bf16.msra.mxu0 %v11472_v24  ;;  %v11491_v49 = vld [vmem:[#allocation7 + $0x68] sm:$0xff]  }
 0x330   : > { %v10721_v17 = vpop.f32.mrf.mxu0  ;;  %10986 = vmatprep.subr.bf16.mxu0 %v14110_v3 }
 0x331   : > { %v11503_v17 = vld [vmem:[#allocation7 + $0x50] sm:$0xff]  }
 0x332   : > { %10975 = vmatpush3.bf16.msra.mxu1 %v11477_v19  ;;  %v11500_v19 = vld [vmem:[#allocation7 + $0xd8] sm:$0xff]  }
 0x333   : > { %10976 = vmatprep.subr.bf16.mxu1 %v14110_v3  ;;  %10987 = vmatpush3.bf16.msra.mxu0 %v11474_v20  ;;  %v11502_v20 = vld [vmem:[#allocation7 + $0x98] sm:$0xff]  }
 0x334   : > { %10988 = vmatprep.subr.bf16.mxu0 %v14110_v3 }
 0x336   : > { %10977 = vmatpush3.bf16.msra.mxu1 %v11479_v57  ;;  %v11504_v57 = vld [vmem:[#allocation7 + $0xd0] sm:$0xff]  }
 0x337   : > { %10989 = vmatpush3.bf16.msra.mxu0 %v11476_v15  ;;  %10317 = vmatprep.subr.bf16.mxu1 %v11483_v35 }
 0x338   : > { %10990 = vmatprep.subr.bf16.mxu0 %v14110_v3 }
 0x339   : > { %v6121_v44 = vpop.f32.mrf.mxu1  ;;  %10979 = vmatmul.mubr.bf16.vlgmr.msra.gmra.mxu1 %v14215_v9 }
 0x33a   : > { %v6128_v5 = vadd.f32 %v6121_v44, %v6001_v31  ;;  %10318 = vmatpush3.bf16.msra.mxu1 %v11485_v8  ;;  %v11498_v31 = vld [vmem:[#allocation7 + $0xa0] sm:$0xff]  }
 0x33b   : > { %v10740_v45 = vpop.f32.mrf.mxu1  ;;  %10991 = vmatpush3.bf16.msra.mxu0 %v11478_v33  ;;  %10319 = vmatprep.subr.bf16.mxu1 %v11487_v58 }
 0x33c   : > { %10992 = vmatprep.subr.bf16.mxu0 %v14110_v3  ;;  %v11506_v45 = vld [vmem:[#allocation7 + $0x90] sm:$0xff]  }
 0x33d   : > { %v6124_v16 = vpop.f32.mrf.mxu1 }
 0x33e   : > { %v6129_v26 = vadd.f32 %v6124_v16, %v6002_v14  ;;  %10320 = vmatpush3.bf16.msra.mxu1 %v11489_v22  ;;  %v11501_v14 = vld [vmem:[#allocation7 + $0x18] sm:$0xff]   ;;  %v11508_v16 = vld [vmem:[#allocation7 + $0xc8] sm:$0xff]  }
 0x33f   : > { %v10741_v48 = vpop.f32.mrf.mxu1  ;;  %10993 = vmatpush3.bf16.msra.mxu0 %v11480_v61  ;;  %10321 = vmatprep.subr.bf16.mxu1 %v11491_v49  ;;  %v11507_v61 = vld [vmem:[#allocation7 + $0x48] sm:$0xff]  }
 0x340   : > { %10994 = vmatprep.subr.bf16.mxu0 %v14110_v3  ;;  %v11510_v48 = vld [vmem:[#allocation7 + $0x88] sm:$0xff]  }
 0x342   : > { %10322 = vmatpush3.bf16.msra.mxu1 %v11493_v21 }
 0x343   : > { %10995 = vmatpush3.bf16.msra.mxu0 %v11481_v12  ;;  %10323 = vmatprep.subr.bf16.mxu1 %v11495_v13  ;;  %v11511_v12 = vld [vmem:[#allocation7 + $0x40] sm:$0xff]  }
 0x344   : > { %10996 = vmatprep.subr.bf16.mxu0 %v14110_v3 }
 0x346   : > { %10324 = vmatpush3.bf16.msra.mxu1 %v11497_v30 }
 0x347   : > { %10997 = vmatpush3.bf16.msra.mxu0 %v11482_v52  ;;  %10325 = vmatprep.subr.bf16.mxu1 %v11499_v34  ;;  %v11512_v52 = vld [vmem:[#allocation7 + $0xc0] sm:$0xff]  }
 0x348   : > { %10339 = vmatprep.subr.bf16.mxu0 %v11484_v38 }
 0x34a   : > { %v6269_v6 = vpop.f32.mrf.mxu0  ;;  %10999 = vmatmul.mubr.bf16.vlgmr.msra.gmra.mxu0 %v14218_v23  ;;  %10326 = vmatpush3.bf16.msra.mxu1 %v11501_v14  ;;  %v13886_v14 = vld [vmem:[%s14008_s4] ss:$0 sm:$0xff] }
 0x34b   : > { %v6276_v2 = vadd.f32 %v6269_v6, %v6128_v5  ;;  %10340 = vmatpush3.bf16.msra.mxu0 %v11486_v56  ;;  %10327 = vmatprep.subr.bf16.mxu1 %v11503_v17  ;;  %v11505_v5 = vld [vmem:[#allocation7 + $0x10] sm:$0xff]  }
 0x34c   : > { %v10760_v1 = vpop.f32.mrf.mxu0  ;;  %10341 = vmatprep.subr.bf16.mxu0 %v11488_v53 }
 0x34d   : > { %v11516_v1 = vld [vmem:[#allocation7 + $0x1f8] sm:$0xff]  }
 0x34e   : > { %v6272_v28 = vpop.f32.mrf.mxu0  ;;  %10328 = vmatpush3.bf16.msra.mxu1 %v11505_v5  ;;  %v14220_v5 = vld [vmem:[#allocation16_spill] sm:$0xff] }
 0x34f   : > { %v6277_v55 = vadd.f32 %v6272_v28, %v6129_v26  ;;  %10342 = vmatpush3.bf16.msra.mxu0 %v11490_v25  ;;  %10329 = vmatprep.subr.bf16.mxu1 %v11507_v61  ;;  %v11509_v26 = vld [vmem:[#allocation7 + $0x8] sm:$0xff]  }
 0x350   : > { %v10761_v7 = vpop.f32.mrf.mxu0  ;;  %10343 = vmatprep.subr.bf16.mxu0 %v11492_v29  ;;  %v14221_v61 = vld [vmem:[#allocation13_spill] sm:$0xff] }
 0x352   : > { %10330 = vmatpush3.bf16.msra.mxu1 %v11509_v26  ;;  %v11517_v26 = vld [vmem:[#allocation7 + $0x138] sm:$0xff]  }
 0x353   : > { %10344 = vmatpush3.bf16.msra.mxu0 %v11494_v11  ;;  %10331 = vmatprep.subr.bf16.mxu1 %v11511_v12  ;;  %v14222_v12 = vld [vmem:[#allocation14_spill] sm:$0xff] }
 0x354   : > { %10345 = vmatprep.subr.bf16.mxu0 %v11496_v39 }
 0x356   : > { %10332 = vmatpush3.bf16.msra.mxu1 %v11513_v50  ;;  %v11520_v50 = vld [vmem:[#allocation7 + $0x1f0] sm:$0xff]  }
 0x357   : > { %10346 = vmatpush3.bf16.msra.mxu0 %v11498_v31 }
 0x358   : > { %10347 = vmatprep.subr.bf16.mxu0 %v11500_v19 }
 0x359   : > { %v6417_v27 = vpop.f32.mrf.mxu1 }
 0x35a   : > { %v6424_v18 = vadd.f32 %v6417_v27, %v6276_v2  ;;  %v11515_v2 = vld [vmem:[#allocation7 + $0x178] sm:$0xff]  }
 0x35b   : > { %v10780_v47 = vpop.f32.mrf.mxu1  ;;  %10348 = vmatpush3.bf16.msra.mxu0 %v11502_v20  ;;  %10361 = vmatprep.subr.bf16.mxu1 %v11515_v2  ;;  %v14224_v2 = vld [vmem:[#allocation20_spill] sm:$0xff] }
 0x35c   : > { %10349 = vmatprep.subr.bf16.mxu0 %v11504_v57 }
 0x35d   : > { %v6420_v37 = vpop.f32.mrf.mxu1 }
 0x35e   : > { %v6425_v42 = vadd.f32 %v6420_v37, %v6277_v55 }
 0x35f   : > { %v10781_v54 = vpop.f32.mrf.mxu1  ;;  %10350 = vmatpush3.bf16.msra.mxu0 %v11506_v45 }
 0x360   : > { %10351 = vmatprep.subr.bf16.mxu0 %v11508_v16 }
 0x363   : > { %10352 = vmatpush3.bf16.msra.mxu0 %v11510_v48  ;;  %v11518_v48 = vld [vmem:[#allocation7 + $0x1b8] sm:$0xff]  }
 0x364   : > { %10353 = vmatprep.subr.bf16.mxu0 %v11512_v52 }
 0x367   : > { %10354 = vmatpush3.bf16.msra.mxu0 %v11514_v36  ;;  %v14223_v36 = vld [vmem:[#allocation19_spill] sm:$0xff] }
 0x368   : > { %10383 = vmatprep.subr.bf16.mxu0 %v11516_v1 }
 0x36a   : > { %v6547_v51 = vpop.f32.mrf.mxu0 }
 0x36b   : > { %v6554_v40 = vadd.f32 %v6547_v51, %v6424_v18 }
 0x36c   : > { %v10800_v59 = vpop.f32.mrf.mxu0 }
 0x36e   : > { %v6550_v43 = vpop.f32.mrf.mxu0 }
 0x36f   : > { %v6555_v32 = vadd.f32 %v6550_v43, %v6425_v42 }
 0x370   : > { %v10801_v63 = vpop.f32.mrf.mxu0 }
 0x379   : > { %v6674_v60 = vpop.f32.mrf.mxu1 }
 0x37a   : > { %v6681_v46 = vadd.f32 %v6674_v60, %v6554_v40 }
 0x37b   : > { %v10820_v62 = vpop.f32.mrf.mxu1 }
 0x37d   : > { %v6677_v10 = vpop.f32.mrf.mxu1 }
 0x37e   : > { %v6682_v24 = vadd.f32 %v6677_v10, %v6555_v32 }
 0x37f   : > { %v10821_v0 = vpop.f32.mrf.mxu1 }
 0x38a   : > { %v6801_v15 = vpop.f32.mrf.mxu0 }
 0x38b   : > { %v6808_v33 = vadd.f32 %v6801_v15, %v6681_v46 }
 0x38c   : > { %v10840_v44 = vpop.f32.mrf.mxu0 }
 0x38e   : > { %v6804_v41 = vpop.f32.mrf.mxu0 }
 0x38f   : > { %v6809_v4 = vadd.f32 %v6804_v41, %v6682_v24 }
 0x390   : > { %v10841_v9 = vpop.f32.mrf.mxu0 }
 0x399   : > { %v6949_v6 = vpop.f32.mrf.mxu1 }
 0x39a   : > { %v6956_v23 = vadd.f32 %v6949_v6, %v6808_v33  ;;  %v11519_v6 = vld [vmem:[#allocation7 + $0x170] sm:$0xff]  }
 0x39b   : > { %v10860_v28 = vpop.f32.mrf.mxu1 }
 0x39c   : > { %v11521_v28 = vld [vmem:[#allocation7 + $0x130] sm:$0xff]  }
 0x39d   : > { %v6952_v55 = vpop.f32.mrf.mxu1 }
 0x39e   : > { %v6957_v7 = vadd.f32 %v6952_v55, %v6809_v4  ;;  %v14219_v4 = vld [vmem:[#allocation15_spill] sm:$0xff] }
 0x39f   : > { %v10861_v27 = vpop.f32.mrf.mxu1  ;;  %v11522_v55 = vld [vmem:[#allocation7 + $0x1b0] sm:$0xff]  }
 0x3a0   : > { %v11524_v27 = vld [vmem:[#allocation7 + $0x1e8] sm:$0xff]  }
 0x3aa   : > { %v7097_v18 = vpop.f32.mrf.mxu0 }
 0x3ab   : > { %v7104_v47 = vadd.f32 %v7097_v18, %v6956_v23  ;;  %v11525_v18 = vld [vmem:[#allocation7 + $0x128] sm:$0xff]  }
 0x3ac   : > { %v10880_v37 = vpop.f32.mrf.mxu0 }
 0x3ad   : > { %v11527_v37 = vld [vmem:[#allocation7 + $0x160] sm:$0xff]  }
 0x3ae   : > { %v7100_v42 = vpop.f32.mrf.mxu0 }
 0x3af   : > { %v7105_v54 = vadd.f32 %v7100_v42, %v6957_v7  ;;  %v11523_v7 = vld [vmem:[#allocation7 + $0x168] sm:$0xff]   ;;  %v11528_v42 = vld [vmem:[#allocation7 + $0x1e0] sm:$0xff]  }
 0x3b0   : > { %v10881_v51 = vpop.f32.mrf.mxu0 }
 0x3b1   : > { %v11530_v51 = vld [vmem:[#allocation7 + $0x1a0] sm:$0xff]  }
 0x3b9   : > { %v7227_v40 = vpop.f32.mrf.mxu1 }
 0x3ba   : > { %v7234_v59 = vadd.f32 %v7227_v40, %v7104_v47  ;;  %v11526_v47 = vld [vmem:[#allocation7 + $0x1a8] sm:$0xff]   ;;  %v11531_v40 = vld [vmem:[#allocation7 + $0x158] sm:$0xff]  }
 0x3bb   : > { %v10900_v43 = vpop.f32.mrf.mxu1 }
 0x3bd   : > { %v7230_v32 = vpop.f32.mrf.mxu1 }
 0x3be   : > { %v7235_v63 = vadd.f32 %v7230_v32, %v7105_v54  ;;  %v11529_v54 = vld [vmem:[#allocation7 + $0x120] sm:$0xff]  }
 0x3bf   : > { %v10901_v35 = vpop.f32.mrf.mxu1 }
 0x3c0   : > { %v11534_v35 = vld [vmem:[#allocation7 + $0x198] sm:$0xff]  }
 0x3ca   : > { %v7346_v38 = vpop.f32.mrf.mxu0 }
 0x3cb   : > { %v7353_v31 = vadd.f32 %v7346_v38, %v7234_v59  ;;  %v11532_v59 = vld [vmem:[#allocation7 + $0x1d8] sm:$0xff]   ;;  %v11535_v38 = vld [vmem:[#allocation7 + $0x150] sm:$0xff]  }
 0x3cc   : > { %v10920_v8 = vpop.f32.mrf.mxu0 }
 0x3cd   : > { %v11536_v8 = vld [vmem:[#allocation7 + $0x1d0] sm:$0xff]  }
 0x3ce   : > { %v7349_v56 = vpop.f32.mrf.mxu0 }
 0x3cf   : > { %v7354_v58 = vadd.f32 %v7349_v56, %v7235_v63  ;;  %v11533_v63 = vld [vmem:[#allocation7 + $0x118] sm:$0xff]  }
 0x3d0   : > { %v10921_v53 = vpop.f32.mrf.mxu0 }
 0x3d1   : > { %v11538_v53 = vld [vmem:[#allocation7 + $0x190] sm:$0xff]  }
 0x3d9   : > { %v7465_v22 = vpop.f32.mrf.mxu1 }
 0x3da   : > { %v7472_v24 = vadd.f32 %v7465_v22, %v7353_v31  ;;  %v11539_v22 = vld [vmem:[#allocation7 + $0x148] sm:$0xff]   ;;  %v11549_v31 = vld [vmem:[#allocation7 + $0x238] sm:$0xff]  }
 0x3db   : > { %v10940_v25 = vpop.f32.mrf.mxu1 }
 0x3dc   : > { %v11540_v25 = vld [vmem:[#allocation7 + $0x1c8] sm:$0xff]  }
 0x3dd   : > { %v7468_v49 = vpop.f32.mrf.mxu1 }
 0x3de   : > { %v13881_v29 = vadd.f32 %v7468_v49, %v7354_v58  ;;  %v11537_v58 = vld [vmem:[#allocation7 + $0x110] sm:$0xff]  }
 0x3df   : > { %v10941_v60 = vpop.f32.mrf.mxu1 }
 0x3e0   : > { %v11542_v60 = vld [vmem:[#allocation7 + $0x188] sm:$0xff]  }
 0x3ea   : > { %v7605_v21 = vpop.f32.mrf.mxu0 }
 0x3eb   : > { %v7612_v34 = vadd.f32 %v7605_v21, %v7472_v24  ;;  %v11543_v21 = vld [vmem:[#allocation7 + $0x140] sm:$0xff]  }
 0x3ec   : > { %v10960_v11 = vpop.f32.mrf.mxu0  ;;  %v14225_v24 = vld [vmem:[#allocation17_spill] sm:$0xff] }
 0x3ed   : > { %v11544_v11 = vld [vmem:[#allocation7 + $0x1c0] sm:$0xff]  }
 0x3ee   : > { %v7608_v46 = vpop.f32.mrf.mxu0 }
 0x3ef   : > { %v7613_v43 = vadd.f32 %v7608_v46, %v13881_v29  ;;  %v11541_v29 = vld [vmem:[#allocation7 + $0x108] sm:$0xff]  }
 0x3f0   : > { %v10961_v13 = vpop.f32.mrf.mxu0 }
 0x3f1   : > { %v11545_v13 = vld [vmem:[#allocation7 + $0x100] sm:$0xff]  }
 0x3f9   : > { %v7745_v39 = vpop.f32.mrf.mxu1 }
 0x3fa   : > { %v7752_v19 = vadd.f32 %v7745_v39, %v7612_v34  ;;  %v11546_v39 = vld [vmem:[#allocation7 + $0x180] sm:$0xff]  }
 0x3fb   : > { %v10980_v62 = vpop.f32.mrf.mxu1 }
 0x3fc   : > { %v11547_v62 = vld [vmem:[#allocation7 + $0x278] sm:$0xff]  }
 0x3fd   : > { %v7748_v10 = vpop.f32.mrf.mxu1 }
 0x3fe   : > { %v7753_v32 = vadd.f32 %v7748_v10, %v7613_v43  ;;  %v11548_v10 = vld [vmem:[#allocation7 + $0x2f8] sm:$0xff]  }
 0x3ff   : > { %v10981_v30 = vpop.f32.mrf.mxu1  ;;  %v11580_v43 = vld [vmem:[#allocation7 + $0x3f8] sm:$0xff]  }
 0x40a   : > { %v7867_v0 = vpop.f32.mrf.mxu0 }
 0x40b   : > { %v7874_v20 = vadd.f32 %v7867_v0, %v7752_v19  ;;  %v14226_v19 = vld [vmem:[#allocation18_spill] sm:$0xff] }
 0x40c   : > { %v11000_v17 = vpop.f32.mrf.mxu0 }
 0x40d   : > { %v7883_v57 = vadd.f32 %v13886_v14, %v7874_v20  ;;  %v11551_v17 = vld [vmem:[#allocation7 + $0x270] sm:$0xff]  }
 0x40e   : > { %v7870_v15 = vpop.f32.mrf.mxu0 }
 0x40f   : > { %v7885_v33 = vmax.f32 %v7883_v57, 0.0  ;;  %v7875_v56 = vadd.f32 %v7870_v15, %v7753_v32  ;;  %v11552_v57 = vld [vmem:[#allocation7 + $0x2f0] sm:$0xff]   ;;  %v11581_v32 = vld [vmem:[#allocation7 + $0x338] sm:$0xff]  }
 0x410   : > { %v11001_v44 = vpop.f32.mrf.mxu0 }
 0x411   : > { %v13889_v41 = vpack.i.bf16 %v7885_v33, %v7885_v33  ;;  %v7884_v49 = vadd.f32 %v13886_v14, %v7875_v56  ;;  %v11550_v14 = vld [vmem:[#allocation7 + $0x2b8] sm:$0xff]   ;;  %v11553_v33 = vld [vmem:[#allocation7 + $0x230] sm:$0xff]  }
 0x412   : > { %v11554_v44 = vld [vmem:[#allocation7 + $0x2b0] sm:$0xff]  }
 0x413   : > { %v8157_v9 = vrot.slane %v13889_v41, %v14219_v4  ;;  %v8165_v45 = vrot.slane %v13889_v41, %v14220_v5  ;;  %v8153_v16 = vrot.slane %v13889_v41, %v14221_v61  ;;  %v8161_v52 = vrot.slane %v13889_v41, %v14222_v12 }
 0x414   : > { %v8173_v23 = vrot.slane %v13889_v41, %v14223_v36  ;;  %v8181_v1 = vrot.slane %v13889_v41, %v14224_v2  ;;  %v7886_v46 = vmax.f32 %v7884_v49, 0.0  ;;  %v8169_v34 = vrot.slane %v13889_v41, %v14225_v24  ;;  %v11589_v49 = vld [vmem:[#allocation7 + $0x328] sm:$0xff]  }
 0x415   : > { %9030 = vmatprep.mubr.bf16.mxu1 %v8157_v9  ;;  %9070 = vmatprep.mubr.bf16.mxu0 %v8165_v45  ;;  %v8177_v0 = vrot.slane %v13889_v41, %v14226_v19  ;;  %v11555_v41 = vld [vmem:[#allocation7 + $0x268] sm:$0xff]  }
 0x416   : > { %9031 = vmatmul.mubr.bf16.vlgmr.msra.gmra.mxu1 %v8153_v16  ;;  %9071 = vmatmul.mubr.bf16.vlgmr.msra.gmra.mxu0 %v8161_v52  ;;  %v13905_v30 = vpack.i.bf16 %v7886_v46, %v7886_v46  ;;  %v11556_v9 = vld [vmem:[#allocation7 + $0x2e8] sm:$0xff]   ;;  %v11559_v16 = vld [vmem:[#allocation7 + $0x260] sm:$0xff]   ;;  %v11563_v52 = vld [vmem:[#allocation7 + $0x258] sm:$0xff]  }
 0x417   : > { %10362 = vmatpush3.bf16.msra.mxu1 %v11517_v26  ;;  %10384 = vmatpush3.bf16.msra.mxu0 %v11518_v48  ;;  %v11557_v45 = vld [vmem:[#allocation7 + $0x228] sm:$0xff]   ;;  %v11560_v26 = vld [vmem:[#allocation7 + $0x2e0] sm:$0xff]   ;;  %v11596_v46 = vld [vmem:[#allocation7 + $0x3d8] sm:$0xff]  }
 0x418   : > { %9110 = vmatprep.mubr.bf16.mxu1 %v8173_v23  ;;  %9150 = vmatprep.mubr.bf16.mxu0 %v8181_v1  ;;  %v8189_v20 = vrot.slane %v13905_v30, %v14219_v4  ;;  %v8197_v15 = vrot.slane %v13905_v30, %v14220_v5  ;;  %v11558_v4 = vld [vmem:[#allocation7 + $0x2a8] sm:$0xff]   ;;  %v11561_v5 = vld [vmem:[#allocation7 + $0x220] sm:$0xff]   ;;  %v11566_v23 = vld [vmem:[#allocation7 + $0x298] sm:$0xff]   ;;  %v8205_v56 = vrot.slane %v13905_v30, %v14223_v36 }
 0x419   : > { %10363 = vmatprep.subr.bf16.mxu1 %v11519_v6  ;;  %10385 = vmatprep.subr.bf16.mxu0 %v11520_v50  ;;  %v11562_v48 = vld [vmem:[#allocation7 + $0x2a0] sm:$0xff]   ;;  %v11564_v6 = vld [vmem:[#allocation7 + $0x2d8] sm:$0xff]   ;;  %v11567_v1 = vld [vmem:[#allocation7 + $0x250] sm:$0xff]  }
 0x41a   : > { %v11565_v50 = vld [vmem:[#allocation7 + $0x218] sm:$0xff]   ;;  %v11590_v36 = vld [vmem:[#allocation7 + $0x3a8] sm:$0xff]  }
 0x41b   : > { %10364 = vmatpush3.bf16.msra.mxu1 %v11521_v28  ;;  %10386 = vmatpush3.bf16.msra.mxu0 %v11522_v55  ;;  %v11568_v28 = vld [vmem:[#allocation7 + $0x2d0] sm:$0xff]  }
 0x41c   : > { %10365 = vmatprep.subr.bf16.mxu1 %v11523_v7  ;;  %10387 = vmatprep.subr.bf16.mxu0 %v11524_v27  ;;  %v11569_v55 = vld [vmem:[#allocation7 + $0x210] sm:$0xff]   ;;  %v11571_v27 = vld [vmem:[#allocation7 + $0x248] sm:$0xff]  }
 0x41d   : > { %v11570_v7 = vld [vmem:[#allocation7 + $0x290] sm:$0xff]  }
 0x41f   : > { %10366 = vmatpush3.bf16.msra.mxu1 %v11525_v18  ;;  %10388 = vmatpush3.bf16.msra.mxu0 %v11526_v47  ;;  %v11572_v18 = vld [vmem:[#allocation7 + $0x2c8] sm:$0xff]  }
 0x420   : > { %10367 = vmatprep.subr.bf16.mxu1 %v11527_v37  ;;  %10389 = vmatprep.subr.bf16.mxu0 %v11528_v42  ;;  %v11573_v47 = vld [vmem:[#allocation7 + $0x208] sm:$0xff]   ;;  %v11575_v42 = vld [vmem:[#allocation7 + $0x240] sm:$0xff]  }
 0x421   : > { %v11574_v37 = vld [vmem:[#allocation7 + $0x288] sm:$0xff]  }
 0x423   : > { %10368 = vmatpush3.bf16.msra.mxu1 %v11529_v54  ;;  %10390 = vmatpush3.bf16.msra.mxu0 %v11530_v51  ;;  %v11576_v54 = vld [vmem:[#allocation7 + $0x2c0] sm:$0xff]  }
 0x424   : > { %10369 = vmatprep.subr.bf16.mxu1 %v11531_v40  ;;  %10391 = vmatprep.subr.bf16.mxu0 %v11532_v59  ;;  %v11577_v51 = vld [vmem:[#allocation7 + $0x200] sm:$0xff]   ;;  %v11579_v59 = vld [vmem:[#allocation7 + $0x378] sm:$0xff]  }
 0x425   : > { %v11578_v40 = vld [vmem:[#allocation7 + $0x280] sm:$0xff]  }
 0x427   : > { %10370 = vmatpush3.bf16.msra.mxu1 %v11533_v63  ;;  %10392 = vmatpush3.bf16.msra.mxu0 %v11534_v35  ;;  %v8185_v63 = vrot.slane %v13905_v30, %v14221_v61  ;;  %v11582_v35 = vld [vmem:[#allocation7 + $0x3b8] sm:$0xff]   ;;  %v11586_v61 = vld [vmem:[#allocation7 + $0x3b0] sm:$0xff]  }
 0x428   : > { %10371 = vmatprep.subr.bf16.mxu1 %v11535_v38  ;;  %10393 = vmatprep.subr.bf16.mxu0 %v11536_v8  ;;  %v8193_v38 = vrot.slane %v13905_v30, %v14222_v12  ;;  %v11583_v8 = vld [vmem:[#allocation7 + $0x370] sm:$0xff]   ;;  %v11588_v12 = vld [vmem:[#allocation7 + $0x3e8] sm:$0xff]  }
 0x42b   : > { %10372 = vmatpush3.bf16.msra.mxu1 %v11537_v58  ;;  %10394 = vmatpush3.bf16.msra.mxu0 %v11538_v53  ;;  %v11584_v58 = vld [vmem:[#allocation7 + $0x3f0] sm:$0xff]   ;;  %v8213_v53 = vrot.slane %v13905_v30, %v14224_v2  ;;  %v11594_v2 = vld [vmem:[#allocation7 + $0x3a0] sm:$0xff]  }
 0x42c   : > { %10373 = vmatprep.subr.bf16.mxu1 %v11539_v22  ;;  %10395 = vmatprep.subr.bf16.mxu0 %v11540_v25  ;;  %v11585_v22 = vld [vmem:[#allocation7 + $0x330] sm:$0xff]   ;;  %v11587_v25 = vld [vmem:[#allocation7 + $0x368] sm:$0xff]  }
 0x42f   : > { %10374 = vmatpush3.bf16.msra.mxu1 %v11541_v29  ;;  %10396 = vmatpush3.bf16.msra.mxu0 %v11542_v60  ;;  %v11591_v29 = vld [vmem:[#allocation7 + $0x360] sm:$0xff]  }
 0x430   : > { %10375 = vmatprep.subr.bf16.mxu1 %v11543_v21  ;;  %10397 = vmatprep.subr.bf16.mxu0 %v11544_v11  ;;  %v11592_v60 = vld [vmem:[#allocation7 + $0x3e0] sm:$0xff]   ;;  %v11595_v11 = vld [vmem:[#allocation7 + $0x358] sm:$0xff]  }
 0x431   : > { %v11593_v21 = vld [vmem:[#allocation7 + $0x320] sm:$0xff]  }
 0x433   : > { %10376 = vmatpush3.bf16.msra.mxu1 %v11545_v13  ;;  %10398 = vmatpush3.bf16.msra.mxu0 %v11546_v39  ;;  %v11597_v13 = vld [vmem:[#allocation7 + $0x318] sm:$0xff]  }
 0x434   : > { %10405 = vmatprep.subr.bf16.mxu1 %v11547_v62  ;;  %10427 = vmatprep.subr.bf16.mxu0 %v11548_v10  ;;  %v11598_v39 = vld [vmem:[#allocation7 + $0x398] sm:$0xff]   ;;  %v11599_v62 = vld [vmem:[#allocation7 + $0x350] sm:$0xff]  }
 0x435   : > { %v11600_v10 = vld [vmem:[#allocation7 + $0x3d0] sm:$0xff]  }
 0x436   : > { %9111 = vmatmul.mubr.bf16.vlgmr.msra.gmra.mxu1 %v8169_v34  ;;  %9151 = vmatmul.mubr.bf16.vlgmr.msra.gmra.mxu0 %v8177_v0  ;;  %v11602_v34 = vld [vmem:[#allocation7 + $0x390] sm:$0xff]   ;;  %v11603_v0 = vld [vmem:[#allocation7 + $0x348] sm:$0xff]  }
 0x437   : > { %10406 = vmatpush3.bf16.msra.mxu1 %v11549_v31  ;;  %9190 = vmatprep.mubr.bf16.mxu1 %v8189_v20  ;;  %v11601_v31 = vld [vmem:[#allocation7 + $0x310] sm:$0xff]   ;;  %v11605_v20 = vld [vmem:[#allocation7 + $0x308] sm:$0xff]  }
 0x438   : > { %10428 = vmatpush3.bf16.msra.mxu0 %v11550_v14  ;;  %9230 = vmatprep.mubr.bf16.mxu0 %v8197_v15  ;;  %v11604_v14 = vld [vmem:[#allocation7 + $0x3c8] sm:$0xff]   ;;  %v11608_v15 = vld [vmem:[#allocation7 + $0x3c0] sm:$0xff]  }
 0x439   : > { %10407 = vmatprep.subr.bf16.mxu1 %v11551_v17  ;;  %10429 = vmatprep.subr.bf16.mxu0 %v11552_v57  ;;  %v11606_v17 = vld [vmem:[#allocation7 + $0x388] sm:$0xff]   ;;  %v11607_v57 = vld [vmem:[#allocation7 + $0x340] sm:$0xff]  }
 0x43b   : > { %10408 = vmatpush3.bf16.msra.mxu1 %v11553_v33  ;;  %v11609_v33 = vld [vmem:[#allocation7 + $0x300] sm:$0xff]  }
 0x43c   : > { %10430 = vmatpush3.bf16.msra.mxu0 %v11554_v44  ;;  %10409 = vmatprep.subr.bf16.mxu1 %v11555_v41  ;;  %v11610_v44 = vld [vmem:[#allocation7 + $0x380] sm:$0xff]   ;;  %v8201_v41 = vrot.slane %v13905_v30, %v14225_v24 }
 0x43d   : > { %10431 = vmatprep.subr.bf16.mxu0 %v11556_v9  ;;  %v8209_v9 = vrot.slane %v13905_v30, %v14226_v19  ;;  %v11613_v30 = vld [vmem:[%s14011_s7 + $0x28] sm:$0xff]   ;;  %v11614_v24 = vld [vmem:[%s14011_s7 + $0x20] sm:$0xff]   ;;  %v11615_v19 = vld [vmem:[%s14011_s7 + $0x18] sm:$0xff]  }
 0x43f   : > { %10410 = vmatpush3.bf16.msra.mxu1 %v11557_v45  ;;  %v11611_v45 = vld [vmem:[%s14011_s7 + $0x38] sm:$0xff]  }
 0x440   : > { %10432 = vmatpush3.bf16.msra.mxu0 %v11558_v4  ;;  %10411 = vmatprep.subr.bf16.mxu1 %v11559_v16  ;;  %v11612_v4 = vld [vmem:[%s14011_s7 + $0x30] sm:$0xff]  }
 0x441   : > { %10433 = vmatprep.subr.bf16.mxu0 %v11560_v26  ;;  %v11616_v16 = vld [vmem:[%s14011_s7 + $0x10] sm:$0xff]   ;;  %v11617_v26 = vld [vmem:[%s14011_s7 + $0x8] sm:$0xff]  }
 0x443   : > { %10412 = vmatpush3.bf16.msra.mxu1 %v11561_v5  ;;  %v11618_v5 = vld [vmem:[%s14011_s7] sm:$0xff]  }
 0x444   : > { %10434 = vmatpush3.bf16.msra.mxu0 %v11562_v48  ;;  %10413 = vmatprep.subr.bf16.mxu1 %v11563_v52 }
 0x445   : > { %10435 = vmatprep.subr.bf16.mxu0 %v11564_v6  ;;  %v8144_v6 = vld [vmem:[%s14010_s6] sm:$0x1] }
 0x447   : > { %10414 = vmatpush3.bf16.msra.mxu1 %v11565_v50 }
 0x448   : > { %10436 = vmatpush3.bf16.msra.mxu0 %v11566_v23  ;;  %10415 = vmatprep.subr.bf16.mxu1 %v11567_v1 }
 0x449   : > { %10437 = vmatprep.subr.bf16.mxu0 %v11568_v28 }
 0x44b   : > { %10416 = vmatpush3.bf16.msra.mxu1 %v11569_v55 }
 0x44c   : > { %10438 = vmatpush3.bf16.msra.mxu0 %v11570_v7  ;;  %10417 = vmatprep.subr.bf16.mxu1 %v11571_v27 }
 0x44d   : > { %10439 = vmatprep.subr.bf16.mxu0 %v11572_v18 }
 0x44f   : > { %10418 = vmatpush3.bf16.msra.mxu1 %v11573_v47 }
 0x450   : > { %10440 = vmatpush3.bf16.msra.mxu0 %v11574_v37  ;;  %10419 = vmatprep.subr.bf16.mxu1 %v11575_v42 }
 0x451   : > { %10441 = vmatprep.subr.bf16.mxu0 %v11576_v54 }
 0x453   : > { %10420 = vmatpush3.bf16.msra.mxu1 %v11577_v51 }
 0x454   : > { %10442 = vmatpush3.bf16.msra.mxu0 %v11578_v40  ;;  %10449 = vmatprep.subr.bf16.mxu1 %v11579_v59 }
 0x455   : > { %10471 = vmatprep.subr.bf16.mxu0 %v11580_v43 }
 0x456   : > { %9191 = vmatmul.mubr.bf16.vlgmr.msra.gmra.mxu1 %v8185_v63 }
 0x457   : > { %9231 = vmatmul.mubr.bf16.vlgmr.msra.gmra.mxu0 %v8193_v38  ;;  %10450 = vmatpush3.bf16.msra.mxu1 %v11581_v32 }
 0x458   : > { %9270 = vmatprep.mubr.bf16.mxu1 %v8205_v56  ;;  %10472 = vmatpush3.bf16.msra.mxu0 %v11582_v35 }
 0x459   : > { %9310 = vmatprep.mubr.bf16.mxu0 %v8213_v53  ;;  %10451 = vmatprep.subr.bf16.mxu1 %v11583_v8 }
 0x45a   : > { %10473 = vmatprep.subr.bf16.mxu0 %v11584_v58 }
 0x45b   : > { %10452 = vmatpush3.bf16.msra.mxu1 %v11585_v22 }
 0x45c   : > { %10474 = vmatpush3.bf16.msra.mxu0 %v11586_v61  ;;  %10453 = vmatprep.subr.bf16.mxu1 %v11587_v25 }
 0x45d   : > { %10475 = vmatprep.subr.bf16.mxu0 %v11588_v12 }
 0x45f   : > { %10454 = vmatpush3.bf16.msra.mxu1 %v11589_v49 }
 0x460   : > { %10476 = vmatpush3.bf16.msra.mxu0 %v11590_v36  ;;  %10455 = vmatprep.subr.bf16.mxu1 %v11591_v29 }
 0x461   : > { %10477 = vmatprep.subr.bf16.mxu0 %v11592_v60 }
 0x463   : > { %10456 = vmatpush3.bf16.msra.mxu1 %v11593_v21 }
 0x464   : > { %10478 = vmatpush3.bf16.msra.mxu0 %v11594_v2  ;;  %10457 = vmatprep.subr.bf16.mxu1 %v11595_v11 }
 0x465   : > { %10479 = vmatprep.subr.bf16.mxu0 %v11596_v46 }
 0x467   : > { %10458 = vmatpush3.bf16.msra.mxu1 %v11597_v13 }
 0x468   : > { %10480 = vmatpush3.bf16.msra.mxu0 %v11598_v39  ;;  %10459 = vmatprep.subr.bf16.mxu1 %v11599_v62 }
 0x469   : > { %10481 = vmatprep.subr.bf16.mxu0 %v11600_v10 }
 0x46b   : > { %10460 = vmatpush3.bf16.msra.mxu1 %v11601_v31 }
 0x46c   : > { %10482 = vmatpush3.bf16.msra.mxu0 %v11602_v34  ;;  %10461 = vmatprep.subr.bf16.mxu1 %v11603_v0 }
 0x46d   : > { %10483 = vmatprep.subr.bf16.mxu0 %v11604_v14 }
 0x46f   : > { %10462 = vmatpush3.bf16.msra.mxu1 %v11605_v20 }
 0x470   : > { %10484 = vmatpush3.bf16.msra.mxu0 %v11606_v17  ;;  %10463 = vmatprep.subr.bf16.mxu1 %v11607_v57 }
 0x471   : > { %10485 = vmatprep.subr.bf16.mxu0 %v11608_v15  ;;  %v14227_v15 = vlaneseq }
 0x473   : > { %10464 = vmatpush3.bf16.msra.mxu1 %v11609_v33  ;;  %v9426_v33 = vand.u32 127, %v14227_v15 }
 0x474   : > { %10486 = vmatpush3.bf16.msra.mxu0 %v11610_v44  ;;  %11002 = vmatprep.subr.bf16.mxu1 %v14110_v3  ;;  %v9336_v44 = vld [vmem:[%s14012_s8] sm:$0x1] }
 0x476   : > { %9271 = vmatmul.mubr.bf16.vlgmr.msra.gmra.mxu1 %v8201_v41 }
 0x477   : > { %9311 = vmatmul.mubr.bf16.vlgmr.msra.gmra.mxu0 %v8209_v9  ;;  %11018 = vmatprep.mubr.msk.bf16.mxu1 %vm11902_vm1, %v14110_v3  ;;  %vm9427_vm1 = vcmp.lt.s32.totalorder %v9426_v33, 10 }
 0x478   : > { %11003 = vmatpush3.bf16.msra.mxu1 %v11611_v45 }
 0x479   : > { %11004 = vmatprep.subr.bf16.mxu1 %v14110_v3 }
 0x47c   : > { %11005 = vmatpush3.bf16.msra.mxu1 %v11612_v4 }
 0x47d   : > { %11006 = vmatprep.subr.bf16.mxu1 %v14110_v3 }
 0x480   : > { %11007 = vmatpush3.bf16.msra.mxu1 %v11613_v30 }
 0x481   : > { %11008 = vmatprep.subr.bf16.mxu1 %v14110_v3 }
 0x484   : > { %11009 = vmatpush3.bf16.msra.mxu1 %v11614_v24 }
 0x485   : > { %11010 = vmatprep.subr.bf16.mxu1 %v14110_v3 }
 0x488   : > { %11011 = vmatpush3.bf16.msra.mxu1 %v11615_v19 }
 0x489   : > { %11012 = vmatprep.subr.bf16.mxu1 %v14110_v3 }
 0x48c   : > { %11013 = vmatpush3.bf16.msra.mxu1 %v11616_v16 }
 0x48d   : > { %11014 = vmatprep.subr.bf16.mxu1 %v14110_v3 }
 0x490   : > { %11015 = vmatpush3.bf16.msra.mxu1 %v11617_v26 }
 0x491   : > { %11016 = vmatprep.subr.bf16.mxu1 %v14110_v3 }
 0x494   : > { %11017 = vmatpush3.bf16.msra.mxu1 %v11618_v5 }
 0x4d6   : > { %v10333_v48 = vpop.f32.mrf.mxu1  ;;  %v10355_v52 = vpop.f32.mrf.mxu0 }
 0x4d8   : > { %v10334_v50 = vpop.f32.mrf.mxu1  ;;  %v10356_v23 = vpop.f32.mrf.mxu0 }
 0x4d9   : > { %v10335_v1 = vadd.f32 %v10334_v50, %v10333_v48  ;;  %v10357_v28 = vadd.f32 %v10356_v23, %v10355_v52 }
 0x4da   : > { %v10336_v55 = vpop.f32.mrf.mxu1  ;;  %v10358_v7 = vpop.f32.mrf.mxu0 }
 0x4db   : > { %v9033_v27 = vadd.f32 %v10335_v1, %v8144_v6 }
 0x4dc   : > { %v10337_v18 = vpop.f32.mrf.mxu1  ;;  %v10359_v47 = vpop.f32.mrf.mxu0 }
 0x4dd   : > { %v9073_v37 = vadd.f32 %v10357_v28, %v9033_v27 }
 0x4f6   : > { %v10377_v42 = vpop.f32.mrf.mxu1  ;;  %v10399_v54 = vpop.f32.mrf.mxu0 }
 0x4f8   : > { %v10378_v3 = vpop.f32.mrf.mxu1  ;;  %v10400_v51 = vpop.f32.mrf.mxu0 }
 0x4f9   : > { %v10379_v61 = vadd.f32 %v10378_v3, %v10377_v42  ;;  %v10401_v12 = vadd.f32 %v10400_v51, %v10399_v54 }
 0x4fa   : > { %v10380_v40 = vpop.f32.mrf.mxu1  ;;  %v10402_v59 = vpop.f32.mrf.mxu0 }
 0x4fb   : > { %v9113_v25 = vadd.f32 %v10379_v61, %v9073_v37 }
 0x4fc   : > { %v10381_v43 = vpop.f32.mrf.mxu1  ;;  %v10403_v32 = vpop.f32.mrf.mxu0 }
 0x4fd   : > { %v9153_v36 = vadd.f32 %v10401_v12, %v9113_v25 }
 0x516   : > { %v10421_v63 = vpop.f32.mrf.mxu1 }
 0x517   : > { %v10443_v35 = vpop.f32.mrf.mxu0 }
 0x518   : > { %v10422_v38 = vpop.f32.mrf.mxu1 }
 0x519   : > { %v10444_v8 = vpop.f32.mrf.mxu0  ;;  %v10423_v49 = vadd.f32 %v10422_v38, %v10421_v63 }
 0x51a   : > { %v10424_v56 = vpop.f32.mrf.mxu1  ;;  %v10445_v21 = vadd.f32 %v10444_v8, %v10443_v35 }
 0x51b   : > { %v10446_v58 = vpop.f32.mrf.mxu0  ;;  %v9193_v29 = vadd.f32 %v10423_v49, %v9153_v36 }
 0x51c   : > { %v10425_v53 = vpop.f32.mrf.mxu1 }
 0x51d   : > { %v10447_v22 = vpop.f32.mrf.mxu0  ;;  %v9233_v46 = vadd.f32 %v10445_v21, %v9193_v29 }
 0x536   : > { %v10465_v60 = vpop.f32.mrf.mxu1 }
 0x537   : > { %v10487_v2 = vpop.f32.mrf.mxu0 }
 0x538   : > { %v10466_v11 = vpop.f32.mrf.mxu1 }
 0x539   : > { %v10467_v13 = vadd.f32 %v10466_v11, %v10465_v60  ;;  %v10488_v39 = vpop.f32.mrf.mxu0 }
 0x53a   : > { %v10468_v62 = vpop.f32.mrf.mxu1  ;;  %v10489_v31 = vadd.f32 %v10488_v39, %v10487_v2 }
 0x53b   : > { %v9273_v10 = vadd.f32 %v10467_v13, %v9233_v46  ;;  %v10490_v34 = vpop.f32.mrf.mxu0 }
 0x53c   : > { %v10469_v0 = vpop.f32.mrf.mxu1 }
 0x53d   : > { %v9313_v14 = vadd.f32 %v10489_v31, %v9273_v10  ;;  %v10491_v20 = vpop.f32.mrf.mxu0 }
 0x53f   : > { %v9318_v17 = vmax.f32 %v9313_v14, 0.0 }
 0x541   : > { %v9319_v57 = vpack.c.bf16 %v9318_v17, %v9318_v17 }
 0x543   : > { %11019 = vmatmul.mubr.bf16.vlgmr.msra.gmra.mxu1 %v9319_v57 }
 0x603   : > { %v9419_v41 = vpop.f32.mrf.mxu1 }
 0x604   : > { %v9420_v9 = vadd.f32 %v9419_v41, %v9336_v44 }
 0x605   : > { %v11020_v45 = vpop.f32.mrf.mxu1 }
 0x606   : > { %v9428_v4 = vsel %vm9427_vm1, %v9420_v9, -1e+30 }
 0x607   : > { %v9422_v30 = vpop.f32.mrf.mxu1  ;;  %v9430_v24 = vsel %vm4897_vm15, %v9428_v4, -inf }
 0x608   : > { %9431 = vmax.xlane.f32.xlu0 %v9430_v24 }
 0x609   : > { %v11021_v19 = vpop.f32.mrf.mxu1 }
 0x691   : > { %v9432_v16 = vpop.xlane.xlu0 %9431 }
 0x692   : > { %v9433_v26 = vsub.f32 %v9428_v4, %v9432_v16 }
 0x694   : > { %v9434_v5 = vmul.f32 1.442695, %v9433_v26 }
 0x696   : > { %11619 = vpow2.f32 %v9434_v5 }
 0x6a3   : > { %v11620_v48 = vpop.eup %11619 }
 0x6a4   : > { %v9436_v52 = vsel %vm4897_vm15, %v11620_v48, 0.0 }
 0x6a5   : > { %9437 = vadd.xlane.f32.xlu0 %v9436_v52 }
 0x72e   : > { %v9438_v6 = vpop.xlane.xlu0 %9437 }
 0x72f   : > { %11621 = vlog2.f32 %v9438_v6 }
 0x73c   : > { %v11622_v50 = vpop.eup %11621 }
 0x73d   : > { %v9440_v23 = vmul.f32 0.6931472, %v11622_v50 }
 0x73f   : > { %v9441_v1 = vadd.f32 %v9440_v23, %v9432_v16 }
 0x741   : > { %v9442_v28 = vsub.f32 %v9428_v4, %v9441_v1 }
 0x743   : > { %9443 = vst [vmem:[%s368_s27] sm:$0x1] %v9442_v28 }
 0x744   : > { %11836 = shalt.err (!%p11833_p0)
}
 0x745   : > { %s11837_s29 = scalar_lea.hbm %s9455_s18, 16  ;;  %s11841_s25 = scalar_lea.hbm %s14013_s9, 32 }
 0x746   : > { %p11838_p1 = scmp.ne.s32.totalorder %s9455_s18, %s11837_s29  ;;  %p11842_p4 = scmp.lt.s32.totalorder %s9455_s18, %s14013_s9 }
 0x747   : > { %p11843_p13 = scmp.lt.s32.totalorder %s11841_s25, %s11837_s29 }
 0x748   : > { %p11839_p2 = pnand %p11838_p1, %p11993_p5 }
 0x749   : > { %p11844_p9 = por %p11843_p13, %p11842_p4 }
 0x74a   : > { %p11840_p3 = pneg %p11839_p2 }
 0x74c   : > { %p11845_p10 = pnand %p11844_p9, %p11840_p3 }
 0x74e   : > { %11848 = shalt.err (!%p11845_p10)
}
 0x74f   : > { %11034 = dma.vmem_to_hbm [thread:$0]  (%p11993_p5), %s9458_s23, 16, %s9455_s18, %s9445_s26  }
 0x750 PF: > { %p11056_p12 = scmp.ge.s32.totalorder %s11891_s12, 2  ;;  %s9469_s16 = sand.u32 1, %s11879_s30  }
 0x751   : > { %s9470_s21 = scalar_lea.sflag [#allocation4], %s9469_s16 }
 0x752   : > { %p11047_p7 = pnand %p11056_p12, %p11997_p6 }
 0x754   : > { %p11048_p8 = pneg %p11047_p7 }
 0x756   : > { %11874 = dma.done.wait (%p11048_p8), %s9470_s21, 16  }
 0x757   : > { %11876 = vsyncadd (%p11048_p8), %s9470_s21, 4294967280  ;;  %s14228_s24 = sld [smem:[#allocation12_spill]]  ;;  %p21_p11 = scmp.ge.s32.totalorder %s11980_s15, 4  }
 0x758   : > { %s14229_s30 = smov %s11883_s10  ;;  %s14230_s10 = smov %s11887_s11 }
 0x759   : > { %s14232_s12 = smov %s11980_s15  ;;  %23 = sbr.rel (!%p21_p11) target bundleno = 5 (0x5), region = 132 }
 0x75d   : > { %s14231_s11 = smov %s14228_s24 }
 0x75e   :  { %9474 = vsyncpa [#allocation3], 1 }
 0x75f   :  { %9476 = vsyncpa [#allocation3 + $0x1], 1 }
 0x760   :  { %9477 = vsyncpa [#allocation6], 1 }
 0x761   :  { %9478 = vsyncpa [#allocation4], 1 }
 0x762   :  { %9480 = vsyncpa [#allocation4 + $0x1], 1 }

</bundles_post_ra>
